<compile_context>
chip_gen: v7x
topology: tpu7x:2x2x1
jax: 0.10.0
libtpu: 0.0.40
codegen_flags: <defaults>
</compile_context>

<pallas_src>
import numpy as np
import jax
import jax.numpy as jnp
from jax.experimental import pallas as pl
from jax.experimental.pallas import tpu as pltpu

# FashionMNIST geometry.
H1 = W1 = 28          # block_1 spatial size
H2 = W2 = 14          # block_2 spatial size (after pool 1)
HQ = WQ = 7           # spatial size after pool 2
HP1, WP1 = 30, 32     # padded block_1 slab (1px halo, x padded to 32 columns)
HP2, WP2 = 16, 16     # padded block_2 slab (1px halo + 1 pad column)


def _pick_nb(n):
    """Images per grid step: largest power-of-two divisor of n (capped at 64),
    keeping chunks >= 2 when possible so the parallel grid axis can shard
    across two TensorCores on v7x."""
    nb = 1
    while (nb * 2 <= 64) and (n % (nb * 2) == 0) and (n // (nb * 2) >= 2):
        nb *= 2
    return nb


def _band_weights(w_oihw, wp_in, wp_out, interior_w):
    """Banded block-Toeplitz matrices (one per dy tap) for a 3x3 'same' conv on
    the row-major (y rows, x*Cin lanes) slab layout.

    Returns (3, wp_in*Cin, wp_out*Cout) f32.  Only output column blocks
    xo in [1, interior_w] are nonzero, so conv outputs keep zero x-borders."""
    co, ci = int(w_oihw.shape[0]), int(w_oihw.shape[1])
    mats = []
    for dy in range(3):
        m = jnp.zeros((wp_in * ci, wp_out * co), jnp.float32)
        for dx in range(3):
            sel = np.zeros((wp_in, wp_out), np.float32)
            for xo in range(1, interior_w + 1):
                xi = xo + dx - 1
                if 0 <= xi < wp_in:
                    sel[xi, xo] = 1.0
            blk = jnp.transpose(w_oihw[:, :, dy, dx]).astype(jnp.float32)  # (Cin,Cout)
            m = m + jnp.kron(jnp.asarray(sel), blk)
        mats.append(m)
    return jnp.stack(mats)


def _bias_row(b, wp, interior_w):
    """Bias broadcast row (1, wp*C), zero on the padded x-border columns."""
    c = int(b.shape[0])
    mask = np.zeros((wp,), np.float32)
    mask[1:interior_w + 1] = 1.0
    return jnp.kron(jnp.asarray(mask), b.astype(jnp.float32)).reshape(1, wp * c)


def _pool_pair_selectors(wp_in, wp_out, n_pairs, out_block_off, c):
    """Two (wp_in*c, wp_out*c) 0/1 matrices selecting the left/right column of
    each horizontal 2x2-maxpool pair into output lane block (j + out_block_off)."""
    s1 = np.zeros((wp_in, wp_out), np.float32)
    s2 = np.zeros((wp_in, wp_out), np.float32)
    for j in range(n_pairs):
        s1[2 * j + 1, j + out_block_off] = 1.0
        s2[2 * j + 2, j + out_block_off] = 1.0
    eye = np.eye(c, dtype=np.float32)
    return (jnp.asarray(np.kron(s1, eye)), jnp.asarray(np.kron(s2, eye)))


def _make_kernel(nb, cin, c, o):
    L1 = WP1 * c          # block_1 lane width (256 for c=8)
    L2 = WP2 * c          # block_2 lane width (128 for c=8)
    M1 = H1 * nb          # conv1/2 output rows per step
    M2 = H2 * nb          # conv3/4 output rows per step

    def conv_band(src_ref, m, wb_ref, b_ref):
        # 3x3 conv + bias + ReLU == 3 banded matmuls (dy taps are row offsets of
        # -nb/0/+nb in the slab; dx taps + channel contraction live in the weights).
        acc = jnp.dot(src_ref[pl.ds(0, m), :], wb_ref[0],
                      preferred_element_type=jnp.float32)
        acc = acc + jnp.dot(src_ref[pl.ds(nb, m), :], wb_ref[1],
                            preferred_element_type=jnp.float32)
        acc = acc + jnp.dot(src_ref[pl.ds(2 * nb, m), :], wb_ref[2],
                            preferred_element_type=jnp.float32)
        return jnp.maximum(acc + b_ref[...], 0.0)

    def kernel(x_ref, wb1_ref, b1_ref, wb2_ref, b2_ref, pp_ref,
               wb3_ref, b3_ref, wb4_ref, b4_ref, qq_ref, wfc_ref, bfc_ref,
               out_ref, slab2, slab3, slab4, hbuf1, hbuf2):
        f32 = jnp.float32
        zrow1 = jnp.zeros((nb, L1), f32)
        zrow2 = jnp.zeros((nb, L2), f32)

        # ------------------------------ block_1 ------------------------------
        y1 = conv_band(x_ref, M1, wb1_ref, b1_ref)               # (M1, L1)
        slab2[pl.ds(0, nb), :] = zrow1                           # zero y-borders
        slab2[pl.ds((H1 + 1) * nb, nb), :] = zrow1
        slab2[pl.ds(nb, M1), :] = y1
        y2 = conv_band(slab2, M1, wb2_ref, b2_ref)               # (M1, L1)

        # -------- maxpool 1: horizontal via selection matmuls, vertical in rows
        hsel = jnp.maximum(
            jnp.dot(y2, pp_ref[0], preferred_element_type=f32),
            jnp.dot(y2, pp_ref[1], preferred_element_type=f32))  # (M1, L2)
        hbuf1[...] = hsel
        slab3[pl.ds(0, nb), :] = zrow2
        slab3[pl.ds((H2 + 1) * nb, nb), :] = zrow2
        for py in range(H2):
            va = hbuf1[pl.ds((2 * py) * nb, nb), :]
            vb = hbuf1[pl.ds((2 * py + 1) * nb, nb), :]
            slab3[pl.ds((py + 1) * nb, nb), :] = jnp.maximum(va, vb)

        # ------------------------------ block_2 ------------------------------
        y3 = conv_band(slab3, M2, wb3_ref, b3_ref)               # (M2, L2)
        slab4[pl.ds(0, nb), :] = zrow2
        slab4[pl.ds((H2 + 1) * nb, nb), :] = zrow2
        slab4[pl.ds(nb, M2), :] = y3
        y4 = conv_band(slab4, M2, wb4_ref, b4_ref)               # (M2, L2)

        # ------------- maxpool 2 fused with flatten + Linear ------------------
        hx2 = jnp.maximum(
            jnp.dot(y4, qq_ref[0], preferred_element_type=f32),
            jnp.dot(y4, qq_ref[1], preferred_element_type=f32))  # (M2, L2)
        hbuf2[...] = hx2
        acc = jnp.zeros((nb, o), f32)
        for yq in range(HQ):
            va = hbuf2[pl.ds((2 * yq) * nb, nb), :]
            vb = hbuf2[pl.ds((2 * yq + 1) * nb, nb), :]
            feat = jnp.maximum(va, vb)                           # (nb, L2)
            acc = acc + jnp.dot(feat, wfc_ref[yq],
                                preferred_element_type=f32)
        out_ref[...] = acc + bfc_ref[...]

    return kernel


def fashion_mnist_forward(x_nchw, params):
    (w1, b1, w2, b2, w3, b3, w4, b4, fc_w, fc_b) = params
    n, cin = int(x_nchw.shape[0]), int(x_nchw.shape[1])
    c = int(w1.shape[0])
    o = int(fc_w.shape[0])
    nb = _pick_nb(n)
    chunks = n // nb

    L1 = WP1 * c
    L2 = WP2 * c
    M1 = H1 * nb
    M2 = H2 * nb

    # Compact input DMA: NCHW -> NHWC -> 1px halo pad (x rounded to 32 cols) ->
    # per-chunk row-major slab  flat_row = yp*nb + img,  lanes = xp*cin + ci.
    x = jnp.transpose(x_nchw, (0, 2, 3, 1)).astype(jnp.float32)        # (N,28,28,cin)
    x = jnp.pad(x, ((0, 0), (1, HP1 - H1 - 1), (1, WP1 - W1 - 1), (0, 0)))
    x = x.reshape(n, HP1, WP1 * cin)
    x = x.reshape(chunks, nb, HP1, WP1 * cin).transpose(0, 2, 1, 3)
    x = x.reshape(chunks, HP1 * nb, WP1 * cin)

    # Banded conv weights (one matrix per dy tap) + interior-masked bias rows.
    wb1 = _band_weights(w1, WP1, WP1, W1)      # (3, WP1*cin, L1)
    wb2 = _band_weights(w2, WP1, WP1, W1)      # (3, L1, L1)
    wb3 = _band_weights(w3, WP2, WP2, W2)      # (3, L2, L2)
    wb4 = _band_weights(w4, WP2, WP2, W2)      # (3, L2, L2)
    b1r = _bias_row(b1, WP1, W1)
    b2r = _bias_row(b2, WP1, W1)
    b3r = _bias_row(b3, WP2, W2)
    b4r = _bias_row(b4, WP2, W2)

    # Horizontal-maxpool pair selectors (constant 0/1 matrices).
    p1, p2 = _pool_pair_selectors(WP1, WP2, W2, 1, c)   # (L1, L2) each
    q1, q2 = _pool_pair_selectors(WP2, WP2, WQ, 0, c)   # (L2, L2) each
    pp = jnp.stack([p1, p2])
    qq = jnp.stack([q1, q2])

    # FC weights: fold the NCHW flatten + pooled-feature lane layout in at trace
    # time; one (L2, O) slice per pooled output row y''.
    fc_r = fc_w.astype(jnp.float32).reshape(o, c, HQ, WQ)
    g = jnp.transpose(fc_r, (2, 3, 1, 0)).reshape(HQ, WQ * c, o)
    wfc = jnp.pad(g, ((0, 0), (0, L2 - WQ * c), (0, 0)))           # (HQ, L2, O)
    bfc = fc_b.astype(jnp.float32).reshape(1, o)

    kernel = _make_kernel(nb, cin, c, o)

    def full(a):
        nd = a.ndim
        return pl.BlockSpec(a.shape, lambda i, _nd=nd: (0,) * _nd)

    out = pl.pallas_call(
        kernel,
        out_shape=jax.ShapeDtypeStruct((chunks, nb, o), jnp.float32),
        grid_spec=pltpu.PrefetchScalarGridSpec(
            num_scalar_prefetch=0,
            grid=(chunks,),
            in_specs=[
                pl.BlockSpec((None, HP1 * nb, WP1 * cin), lambda i: (i, 0, 0)),
                full(wb1), full(b1r), full(wb2), full(b2r), full(pp),
                full(wb3), full(b3r), full(wb4), full(b4r), full(qq),
                full(wfc), full(bfc),
            ],
            out_specs=pl.BlockSpec((None, nb, o), lambda i: (i, 0, 0)),
            scratch_shapes=[
                pltpu.VMEM((HP1 * nb, L1), jnp.float32),   # slab2: conv2 input
                pltpu.VMEM((HP2 * nb, L2), jnp.float32),   # slab3: conv3 input
                pltpu.VMEM((HP2 * nb, L2), jnp.float32),   # slab4: conv4 input
                pltpu.VMEM((M1, L2), jnp.float32),         # hbuf1: pool-1 h-pooled rows
                pltpu.VMEM((M2, L2), jnp.float32),         # hbuf2: pool-2 h-pooled rows
            ],
        ),
        compiler_params=pltpu.CompilerParams(
            dimension_semantics=("parallel",),
            vmem_limit_bytes=32 * 1024 * 1024),
    )(x, wb1, b1r, wb2, b2r, pp, wb3, b3r, wb4, b4r, qq, wfc, bfc)
    return out.reshape(n, o)


# --------------------------------- pure-JAX reference --------------------------------

def reference_forward(x_nchw, params):
    (w1, b1, w2, b2, w3, b3, w4, b4, fc_w, fc_b) = params

    def conv(x, w, b):
        y = jax.lax.conv_general_dilated(
            x, w, window_strides=(1, 1), padding=((1, 1), (1, 1)),
            dimension_numbers=("NCHW", "OIHW", "NCHW"),
            precision=jax.lax.Precision.HIGHEST)
        return jax.nn.relu(y + b.reshape(1, -1, 1, 1))

    def pool(x):
        return jax.lax.reduce_window(x, -jnp.inf, jax.lax.max,
                                     (1, 1, 2, 2), (1, 1, 2, 2), "VALID")

    x = x_nchw
    x = conv(x, w1, b1)
    x = conv(x, w2, b2)
    x = pool(x)
    x = conv(x, w3, b3)
    x = conv(x, w4, b4)
    x = pool(x)
    x = x.reshape(x.shape[0], -1)
    return x @ fc_w.T + fc_b


# ---------------------------------------- main ---------------------------------------

if __name__ == "__main__":
    N, CIN = 2, 1
    HIDDEN, OUT = 8, 10

    key = jax.random.PRNGKey(0)
    ks = jax.random.split(key, 11)
    # Deterministic synthetic parameters (PyTorch layouts: conv OIHW, linear (O, F)).
    w1 = jax.random.normal(ks[0], (HIDDEN, CIN, 3, 3), jnp.float32) * 0.30
    b1 = jax.random.normal(ks[1], (HIDDEN,), jnp.float32) * 0.10
    w2 = jax.random.normal(ks[2], (HIDDEN, HIDDEN, 3, 3), jnp.float32) * 0.15
    b2 = jax.random.normal(ks[3], (HIDDEN,), jnp.float32) * 0.10
    w3 = jax.random.normal(ks[4], (HIDDEN, HIDDEN, 3, 3), jnp.float32) * 0.15
    b3 = jax.random.normal(ks[5], (HIDDEN,), jnp.float32) * 0.10
    w4 = jax.random.normal(ks[6], (HIDDEN, HIDDEN, 3, 3), jnp.float32) * 0.15
    b4 = jax.random.normal(ks[7], (HIDDEN,), jnp.float32) * 0.10
    fc_w = jax.random.normal(ks[8], (OUT, HIDDEN * HQ * WQ), jnp.float32) * 0.05
    fc_b = jax.random.normal(ks[9], (OUT,), jnp.float32) * 0.10
    params = (w1, b1, w2, b2, w3, b3, w4, b4, fc_w, fc_b)

    x = jax.random.normal(ks[10], (N, CIN, H1, W1), jnp.float32)

    fwd = jax.jit(fashion_mnist_forward)
    out = jax.block_until_ready(fwd(x, params))
    ref = jax.block_until_ready(reference_forward(x, params))

    assert out.shape == (N, OUT), out.shape
    err = float(jnp.max(jnp.abs(out - ref)))
    if not jnp.allclose(out, ref, atol=3e-2, rtol=3e-2):
        raise AssertionError(
            f"Pallas kernel mismatch vs reference, max abs err = {err}")
    print("KERNEL_OK")
</pallas_src>

<mosaic_0001>
module attributes {stable_mosaic.version = 11 : i64} {
  func.func @kernel(%arg0: i32, %arg1: memref<1x30x32xf32, #tpu.memory_space<vmem>>, %arg2: memref<3x32x256xf32, #tpu.memory_space<vmem>>, %arg3: memref<1x256xf32, #tpu.memory_space<vmem>>, %arg4: memref<3x256x256xf32, #tpu.memory_space<vmem>>, %arg5: memref<1x256xf32, #tpu.memory_space<vmem>>, %arg6: memref<2x256x128xf32, #tpu.memory_space<vmem>>, %arg7: memref<3x128x128xf32, #tpu.memory_space<vmem>>, %arg8: memref<1x128xf32, #tpu.memory_space<vmem>>, %arg9: memref<3x128x128xf32, #tpu.memory_space<vmem>>, %arg10: memref<1x128xf32, #tpu.memory_space<vmem>>, %arg11: memref<2x128x128xf32, #tpu.memory_space<vmem>>, %arg12: memref<7x128x10xf32, #tpu.memory_space<vmem>>, %arg13: memref<1x10xf32, #tpu.memory_space<vmem>>, %arg14: memref<1x1x10xf32, #tpu.memory_space<vmem>>, %arg15: memref<30x256xf32, #tpu.memory_space<vmem>>, %arg16: memref<16x128xf32, #tpu.memory_space<vmem>>, %arg17: memref<16x128xf32, #tpu.memory_space<vmem>>, %arg18: memref<28x128xf32, #tpu.memory_space<vmem>>, %arg19: memref<14x128xf32, #tpu.memory_space<vmem>>) attributes {dimension_semantics = [#tpu.dimension_semantics<parallel>], iteration_bounds = array<i64: 2>, scalar_prefetch = 0 : i64, scratch_operands = 5 : i64, tpu.core_type = #tpu.core_type<tc>, window_params = [{transform_indices = @transform_0, window_bounds = array<i64: 1, 30, 32>}, {pipeline_mode = #tpu.pipeline_mode<synchronous>, transform_indices = @transform_1, window_bounds = array<i64: 3, 32, 256>}, {pipeline_mode = #tpu.pipeline_mode<synchronous>, transform_indices = @transform_2, window_bounds = array<i64: 1, 256>}, {pipeline_mode = #tpu.pipeline_mode<synchronous>, transform_indices = @transform_3, window_bounds = array<i64: 3, 256, 256>}, {pipeline_mode = #tpu.pipeline_mode<synchronous>, transform_indices = @transform_4, window_bounds = array<i64: 1, 256>}, {pipeline_mode = #tpu.pipeline_mode<synchronous>, transform_indices = @transform_5, window_bounds = array<i64: 2, 256, 128>}, {pipeline_mode = #tpu.pipeline_mode<synchronous>, transform_indices = @transform_6, window_bounds = array<i64: 3, 128, 128>}, {pipeline_mode = #tpu.pipeline_mode<synchronous>, transform_indices = @transform_7, window_bounds = array<i64: 1, 128>}, {pipeline_mode = #tpu.pipeline_mode<synchronous>, transform_indices = @transform_8, window_bounds = array<i64: 3, 128, 128>}, {pipeline_mode = #tpu.pipeline_mode<synchronous>, transform_indices = @transform_9, window_bounds = array<i64: 1, 128>}, {pipeline_mode = #tpu.pipeline_mode<synchronous>, transform_indices = @transform_10, window_bounds = array<i64: 2, 128, 128>}, {pipeline_mode = #tpu.pipeline_mode<synchronous>, transform_indices = @transform_11, window_bounds = array<i64: 7, 128, 10>}, {pipeline_mode = #tpu.pipeline_mode<synchronous>, transform_indices = @transform_12, window_bounds = array<i64: 1, 10>}, {transform_indices = @transform_13, window_bounds = array<i64: 1, 1, 10>}]} {
    %cst = arith.constant 0.000000e+00 : f32
    %0 = vector.broadcast %cst : f32 to vector<1x256xf32>
    %cst_0 = arith.constant 0.000000e+00 : f32
    %1 = vector.broadcast %cst_0 : f32 to vector<1x128xf32>
    %c0 = arith.constant 0 : index
    %c0_1 = arith.constant 0 : index
    %c0_2 = arith.constant 0 : index
    %2 = vector.load %arg1[%c0, %c0_1, %c0_2] : memref<1x30x32xf32, #tpu.memory_space<vmem>>, vector<1x28x32xf32>
    %3 = vector.shape_cast %2 : vector<1x28x32xf32> to vector<28x32xf32>
    %c0_3 = arith.constant 0 : index
    %c0_4 = arith.constant 0 : index
    %c0_5 = arith.constant 0 : index
    %4 = vector.load %arg2[%c0_3, %c0_4, %c0_5] : memref<3x32x256xf32, #tpu.memory_space<vmem>>, vector<1x32x256xf32>
    %5 = vector.shape_cast %4 : vector<1x32x256xf32> to vector<32x256xf32>
    %cst_6 = arith.constant dense<0.000000e+00> : vector<28x256xf32>
    %6 = tpu.matmul %3, %5, %cst_6 {dimension_numbers = #tpu.dot_dimension_numbers<[1], [0], [0], [1], [0, 0, 1, 1], [], []>} : vector<28x32xf32>, vector<32x256xf32>, vector<28x256xf32> -> vector<28x256xf32>
    %c0_7 = arith.constant 0 : index
    %c1 = arith.constant 1 : index
    %c0_8 = arith.constant 0 : index
    %7 = vector.load %arg1[%c0_7, %c1, %c0_8] : memref<1x30x32xf32, #tpu.memory_space<vmem>>, vector<1x28x32xf32>
    %8 = vector.shape_cast %7 : vector<1x28x32xf32> to vector<28x32xf32>
    %c1_9 = arith.constant 1 : index
    %c0_10 = arith.constant 0 : index
    %c0_11 = arith.constant 0 : index
    %9 = vector.load %arg2[%c1_9, %c0_10, %c0_11] : memref<3x32x256xf32, #tpu.memory_space<vmem>>, vector<1x32x256xf32>
    %10 = vector.shape_cast %9 : vector<1x32x256xf32> to vector<32x256xf32>
    %cst_12 = arith.constant dense<0.000000e+00> : vector<28x256xf32>
    %11 = tpu.matmul %8, %10, %cst_12 {dimension_numbers = #tpu.dot_dimension_numbers<[1], [0], [0], [1], [0, 0, 1, 1], [], []>} : vector<28x32xf32>, vector<32x256xf32>, vector<28x256xf32> -> vector<28x256xf32>
    %12 = arith.addf %6, %11 : vector<28x256xf32>
    %c0_13 = arith.constant 0 : index
    %c2 = arith.constant 2 : index
    %c0_14 = arith.constant 0 : index
    %13 = vector.load %arg1[%c0_13, %c2, %c0_14] : memref<1x30x32xf32, #tpu.memory_space<vmem>>, vector<1x28x32xf32>
    %14 = vector.shape_cast %13 : vector<1x28x32xf32> to vector<28x32xf32>
    %c2_15 = arith.constant 2 : index
    %c0_16 = arith.constant 0 : index
    %c0_17 = arith.constant 0 : index
    %15 = vector.load %arg2[%c2_15, %c0_16, %c0_17] : memref<3x32x256xf32, #tpu.memory_space<vmem>>, vector<1x32x256xf32>
    %16 = vector.shape_cast %15 : vector<1x32x256xf32> to vector<32x256xf32>
    %cst_18 = arith.constant dense<0.000000e+00> : vector<28x256xf32>
    %17 = tpu.matmul %14, %16, %cst_18 {dimension_numbers = #tpu.dot_dimension_numbers<[1], [0], [0], [1], [0, 0, 1, 1], [], []>} : vector<28x32xf32>, vector<32x256xf32>, vector<28x256xf32> -> vector<28x256xf32>
    %18 = arith.addf %12, %17 : vector<28x256xf32>
    %c0_19 = arith.constant 0 : index
    %c0_20 = arith.constant 0 : index
    %19 = vector.load %arg3[%c0_19, %c0_20] : memref<1x256xf32, #tpu.memory_space<vmem>>, vector<1x256xf32>
    %20 = vector.broadcast %19 : vector<1x256xf32> to vector<28x256xf32>
    %21 = arith.addf %18, %20 : vector<28x256xf32>
    %cst_21 = arith.constant 0.000000e+00 : f32
    %22 = vector.broadcast %cst_21 : f32 to vector<28x256xf32>
    %23 = arith.maximumf %21, %22 : vector<28x256xf32>
    %c0_22 = arith.constant 0 : index
    %c0_23 = arith.constant 0 : index
    %24 = vector.load %arg15[%c0_22, %c0_23] : memref<30x256xf32, #tpu.memory_space<vmem>>, vector<1x256xf32>
    tpu.vector_store %arg15[%c0_22, %c0_23], %0 {strides = array<i32>} : memref<30x256xf32, #tpu.memory_space<vmem>>, vector<1x256xf32>,
    %c29 = arith.constant 29 : index
    %c0_24 = arith.constant 0 : index
    %25 = vector.load %arg15[%c29, %c0_24] : memref<30x256xf32, #tpu.memory_space<vmem>>, vector<1x256xf32>
    tpu.vector_store %arg15[%c29, %c0_24], %0 {strides = array<i32>} : memref<30x256xf32, #tpu.memory_space<vmem>>, vector<1x256xf32>,
    %c1_25 = arith.constant 1 : index
    %c0_26 = arith.constant 0 : index
    %26 = vector.load %arg15[%c1_25, %c0_26] : memref<30x256xf32, #tpu.memory_space<vmem>>, vector<28x256xf32>
    tpu.vector_store %arg15[%c1_25, %c0_26], %23 {strides = array<i32>} : memref<30x256xf32, #tpu.memory_space<vmem>>, vector<28x256xf32>,
    %c0_27 = arith.constant 0 : index
    %c0_28 = arith.constant 0 : index
    %27 = vector.load %arg15[%c0_27, %c0_28] : memref<30x256xf32, #tpu.memory_space<vmem>>, vector<28x256xf32>
    %c0_29 = arith.constant 0 : index
    %c0_30 = arith.constant 0 : index
    %c0_31 = arith.constant 0 : index
    %28 = vector.load %arg4[%c0_29, %c0_30, %c0_31] : memref<3x256x256xf32, #tpu.memory_space<vmem>>, vector<1x256x256xf32>
    %29 = vector.shape_cast %28 : vector<1x256x256xf32> to vector<256x256xf32>
    %cst_32 = arith.constant dense<0.000000e+00> : vector<28x256xf32>
    %30 = tpu.matmul %27, %29, %cst_32 {dimension_numbers = #tpu.dot_dimension_numbers<[1], [0], [0], [1], [0, 0, 1, 1], [], []>} : vector<28x256xf32>, vector<256x256xf32>, vector<28x256xf32> -> vector<28x256xf32>
    %c1_33 = arith.constant 1 : index
    %c0_34 = arith.constant 0 : index
    %31 = vector.load %arg15[%c1_33, %c0_34] : memref<30x256xf32, #tpu.memory_space<vmem>>, vector<28x256xf32>
    %c1_35 = arith.constant 1 : index
    %c0_36 = arith.constant 0 : index
    %c0_37 = arith.constant 0 : index
    %32 = vector.load %arg4[%c1_35, %c0_36, %c0_37] : memref<3x256x256xf32, #tpu.memory_space<vmem>>, vector<1x256x256xf32>
    %33 = vector.shape_cast %32 : vector<1x256x256xf32> to vector<256x256xf32>
    %cst_38 = arith.constant dense<0.000000e+00> : vector<28x256xf32>
    %34 = tpu.matmul %31, %33, %cst_38 {dimension_numbers = #tpu.dot_dimension_numbers<[1], [0], [0], [1], [0, 0, 1, 1], [], []>} : vector<28x256xf32>, vector<256x256xf32>, vector<28x256xf32> -> vector<28x256xf32>
    %35 = arith.addf %30, %34 : vector<28x256xf32>
    %c2_39 = arith.constant 2 : index
    %c0_40 = arith.constant 0 : index
    %36 = vector.load %arg15[%c2_39, %c0_40] : memref<30x256xf32, #tpu.memory_space<vmem>>, vector<28x256xf32>
    %c2_41 = arith.constant 2 : index
    %c0_42 = arith.constant 0 : index
    %c0_43 = arith.constant 0 : index
    %37 = vector.load %arg4[%c2_41, %c0_42, %c0_43] : memref<3x256x256xf32, #tpu.memory_space<vmem>>, vector<1x256x256xf32>
    %38 = vector.shape_cast %37 : vector<1x256x256xf32> to vector<256x256xf32>
    %cst_44 = arith.constant dense<0.000000e+00> : vector<28x256xf32>
    %39 = tpu.matmul %36, %38, %cst_44 {dimension_numbers = #tpu.dot_dimension_numbers<[1], [0], [0], [1], [0, 0, 1, 1], [], []>} : vector<28x256xf32>, vector<256x256xf32>, vector<28x256xf32> -> vector<28x256xf32>
    %40 = arith.addf %35, %39 : vector<28x256xf32>
    %c0_45 = arith.constant 0 : index
    %c0_46 = arith.constant 0 : index
    %41 = vector.load %arg5[%c0_45, %c0_46] : memref<1x256xf32, #tpu.memory_space<vmem>>, vector<1x256xf32>
    %42 = vector.broadcast %41 : vector<1x256xf32> to vector<28x256xf32>
    %43 = arith.addf %40, %42 : vector<28x256xf32>
    %cst_47 = arith.constant 0.000000e+00 : f32
    %44 = vector.broadcast %cst_47 : f32 to vector<28x256xf32>
    %45 = arith.maximumf %43, %44 : vector<28x256xf32>
    %c0_48 = arith.constant 0 : index
    %c0_49 = arith.constant 0 : index
    %c0_50 = arith.constant 0 : index
    %46 = vector.load %arg6[%c0_48, %c0_49, %c0_50] : memref<2x256x128xf32, #tpu.memory_space<vmem>>, vector<1x256x128xf32>
    %47 = vector.shape_cast %46 : vector<1x256x128xf32> to vector<256x128xf32>
    %cst_51 = arith.constant dense<0.000000e+00> : vector<28x128xf32>
    %48 = tpu.matmul %45, %47, %cst_51 {dimension_numbers = #tpu.dot_dimension_numbers<[1], [0], [0], [1], [0, 0, 1, 1], [], []>} : vector<28x256xf32>, vector<256x128xf32>, vector<28x128xf32> -> vector<28x128xf32>
    %c1_52 = arith.constant 1 : index
    %c0_53 = arith.constant 0 : index
    %c0_54 = arith.constant 0 : index
    %49 = vector.load %arg6[%c1_52, %c0_53, %c0_54] : memref<2x256x128xf32, #tpu.memory_space<vmem>>, vector<1x256x128xf32>
    %50 = vector.shape_cast %49 : vector<1x256x128xf32> to vector<256x128xf32>
    %cst_55 = arith.constant dense<0.000000e+00> : vector<28x128xf32>
    %51 = tpu.matmul %45, %50, %cst_55 {dimension_numbers = #tpu.dot_dimension_numbers<[1], [0], [0], [1], [0, 0, 1, 1], [], []>} : vector<28x256xf32>, vector<256x128xf32>, vector<28x128xf32> -> vector<28x128xf32>
    %52 = arith.maximumf %48, %51 : vector<28x128xf32>
    %c0_56 = arith.constant 0 : index
    %c0_57 = arith.constant 0 : index
    %53 = vector.load %arg18[%c0_56, %c0_57] : memref<28x128xf32, #tpu.memory_space<vmem>>, vector<28x128xf32>
    tpu.vector_store %arg18[%c0_56, %c0_57], %52 {strides = array<i32>} : memref<28x128xf32, #tpu.memory_space<vmem>>, vector<28x128xf32>,
    %c0_58 = arith.constant 0 : index
    %c0_59 = arith.constant 0 : index
    %54 = vector.load %arg16[%c0_58, %c0_59] : memref<16x128xf32, #tpu.memory_space<vmem>>, vector<1x128xf32>
    tpu.vector_store %arg16[%c0_58, %c0_59], %1 {strides = array<i32>} : memref<16x128xf32, #tpu.memory_space<vmem>>, vector<1x128xf32>,
    %c15 = arith.constant 15 : index
    %c0_60 = arith.constant 0 : index
    %55 = vector.load %arg16[%c15, %c0_60] : memref<16x128xf32, #tpu.memory_space<vmem>>, vector<1x128xf32>
    tpu.vector_store %arg16[%c15, %c0_60], %1 {strides = array<i32>} : memref<16x128xf32, #tpu.memory_space<vmem>>, vector<1x128xf32>,
    %c0_61 = arith.constant 0 : index
    %c0_62 = arith.constant 0 : index
    %56 = vector.load %arg18[%c0_61, %c0_62] : memref<28x128xf32, #tpu.memory_space<vmem>>, vector<1x128xf32>
    %c1_63 = arith.constant 1 : index
    %c0_64 = arith.constant 0 : index
    %57 = vector.load %arg18[%c1_63, %c0_64] : memref<28x128xf32, #tpu.memory_space<vmem>>, vector<1x128xf32>
    %58 = arith.maximumf %56, %57 : vector<1x128xf32>
    %c1_65 = arith.constant 1 : index
    %c0_66 = arith.constant 0 : index
    %59 = vector.load %arg16[%c1_65, %c0_66] : memref<16x128xf32, #tpu.memory_space<vmem>>, vector<1x128xf32>
    tpu.vector_store %arg16[%c1_65, %c0_66], %58 {strides = array<i32>} : memref<16x128xf32, #tpu.memory_space<vmem>>, vector<1x128xf32>,
    %c2_67 = arith.constant 2 : index
    %c0_68 = arith.constant 0 : index
    %60 = vector.load %arg18[%c2_67, %c0_68] : memref<28x128xf32, #tpu.memory_space<vmem>>, vector<1x128xf32>
    %c3 = arith.constant 3 : index
    %c0_69 = arith.constant 0 : index
    %61 = vector.load %arg18[%c3, %c0_69] : memref<28x128xf32, #tpu.memory_space<vmem>>, vector<1x128xf32>
    %62 = arith.maximumf %60, %61 : vector<1x128xf32>
    %c2_70 = arith.constant 2 : index
    %c0_71 = arith.constant 0 : index
    %63 = vector.load %arg16[%c2_70, %c0_71] : memref<16x128xf32, #tpu.memory_space<vmem>>, vector<1x128xf32>
    tpu.vector_store %arg16[%c2_70, %c0_71], %62 {strides = array<i32>} : memref<16x128xf32, #tpu.memory_space<vmem>>, vector<1x128xf32>,
    %c4 = arith.constant 4 : index
    %c0_72 = arith.constant 0 : index
    %64 = vector.load %arg18[%c4, %c0_72] : memref<28x128xf32, #tpu.memory_space<vmem>>, vector<1x128xf32>
    %c5 = arith.constant 5 : index
    %c0_73 = arith.constant 0 : index
    %65 = vector.load %arg18[%c5, %c0_73] : memref<28x128xf32, #tpu.memory_space<vmem>>, vector<1x128xf32>
    %66 = arith.maximumf %64, %65 : vector<1x128xf32>
    %c3_74 = arith.constant 3 : index
    %c0_75 = arith.constant 0 : index
    %67 = vector.load %arg16[%c3_74, %c0_75] : memref<16x128xf32, #tpu.memory_space<vmem>>, vector<1x128xf32>
    tpu.vector_store %arg16[%c3_74, %c0_75], %66 {strides = array<i32>} : memref<16x128xf32, #tpu.memory_space<vmem>>, vector<1x128xf32>,
    %c6 = arith.constant 6 : index
    %c0_76 = arith.constant 0 : index
    %68 = vector.load %arg18[%c6, %c0_76] : memref<28x128xf32, #tpu.memory_space<vmem>>, vector<1x128xf32>
    %c7 = arith.constant 7 : index
    %c0_77 = arith.constant 0 : index
    %69 = vector.load %arg18[%c7, %c0_77] : memref<28x128xf32, #tpu.memory_space<vmem>>, vector<1x128xf32>
    %70 = arith.maximumf %68, %69 : vector<1x128xf32>
    %c4_78 = arith.constant 4 : index
    %c0_79 = arith.constant 0 : index
    %71 = vector.load %arg16[%c4_78, %c0_79] : memref<16x128xf32, #tpu.memory_space<vmem>>, vector<1x128xf32>
    tpu.vector_store %arg16[%c4_78, %c0_79], %70 {strides = array<i32>} : memref<16x128xf32, #tpu.memory_space<vmem>>, vector<1x128xf32>,
    %c8 = arith.constant 8 : index
    %c0_80 = arith.constant 0 : index
    %72 = vector.load %arg18[%c8, %c0_80] : memref<28x128xf32, #tpu.memory_space<vmem>>, vector<1x128xf32>
    %c9 = arith.constant 9 : index
    %c0_81 = arith.constant 0 : index
    %73 = vector.load %arg18[%c9, %c0_81] : memref<28x128xf32, #tpu.memory_space<vmem>>, vector<1x128xf32>
    %74 = arith.maximumf %72, %73 : vector<1x128xf32>
    %c5_82 = arith.constant 5 : index
    %c0_83 = arith.constant 0 : index
    %75 = vector.load %arg16[%c5_82, %c0_83] : memref<16x128xf32, #tpu.memory_space<vmem>>, vector<1x128xf32>
    tpu.vector_store %arg16[%c5_82, %c0_83], %74 {strides = array<i32>} : memref<16x128xf32, #tpu.memory_space<vmem>>, vector<1x128xf32>,
    %c10 = arith.constant 10 : index
    %c0_84 = arith.constant 0 : index
    %76 = vector.load %arg18[%c10, %c0_84] : memref<28x128xf32, #tpu.memory_space<vmem>>, vector<1x128xf32>
    %c11 = arith.constant 11 : index
    %c0_85 = arith.constant 0 : index
    %77 = vector.load %arg18[%c11, %c0_85] : memref<28x128xf32, #tpu.memory_space<vmem>>, vector<1x128xf32>
    %78 = arith.maximumf %76, %77 : vector<1x128xf32>
    %c6_86 = arith.constant 6 : index
    %c0_87 = arith.constant 0 : index
    %79 = vector.load %arg16[%c6_86, %c0_87] : memref<16x128xf32, #tpu.memory_space<vmem>>, vector<1x128xf32>
    tpu.vector_store %arg16[%c6_86, %c0_87], %78 {strides = array<i32>} : memref<16x128xf32, #tpu.memory_space<vmem>>, vector<1x128xf32>,
    %c12 = arith.constant 12 : index
    %c0_88 = arith.constant 0 : index
    %80 = vector.load %arg18[%c12, %c0_88] : memref<28x128xf32, #tpu.memory_space<vmem>>, vector<1x128xf32>
    %c13 = arith.constant 13 : index
    %c0_89 = arith.constant 0 : index
    %81 = vector.load %arg18[%c13, %c0_89] : memref<28x128xf32, #tpu.memory_space<vmem>>, vector<1x128xf32>
    %82 = arith.maximumf %80, %81 : vector<1x128xf32>
    %c7_90 = arith.constant 7 : index
    %c0_91 = arith.constant 0 : index
    %83 = vector.load %arg16[%c7_90, %c0_91] : memref<16x128xf32, #tpu.memory_space<vmem>>, vector<1x128xf32>
    tpu.vector_store %arg16[%c7_90, %c0_91], %82 {strides = array<i32>} : memref<16x128xf32, #tpu.memory_space<vmem>>, vector<1x128xf32>,
    %c14 = arith.constant 14 : index
    %c0_92 = arith.constant 0 : index
    %84 = vector.load %arg18[%c14, %c0_92] : memref<28x128xf32, #tpu.memory_space<vmem>>, vector<1x128xf32>
    %c15_93 = arith.constant 15 : index
    %c0_94 = arith.constant 0 : index
    %85 = vector.load %arg18[%c15_93, %c0_94] : memref<28x128xf32, #tpu.memory_space<vmem>>, vector<1x128xf32>
    %86 = arith.maximumf %84, %85 : vector<1x128xf32>
    %c8_95 = arith.constant 8 : index
    %c0_96 = arith.constant 0 : index
    %87 = vector.load %arg16[%c8_95, %c0_96] : memref<16x128xf32, #tpu.memory_space<vmem>>, vector<1x128xf32>
    tpu.vector_store %arg16[%c8_95, %c0_96], %86 {strides = array<i32>} : memref<16x128xf32, #tpu.memory_space<vmem>>, vector<1x128xf32>,
    %c16 = arith.constant 16 : index
    %c0_97 = arith.constant 0 : index
    %88 = vector.load %arg18[%c16, %c0_97] : memref<28x128xf32, #tpu.memory_space<vmem>>, vector<1x128xf32>
    %c17 = arith.constant 17 : index
    %c0_98 = arith.constant 0 : index
    %89 = vector.load %arg18[%c17, %c0_98] : memref<28x128xf32, #tpu.memory_space<vmem>>, vector<1x128xf32>
    %90 = arith.maximumf %88, %89 : vector<1x128xf32>
    %c9_99 = arith.constant 9 : index
    %c0_100 = arith.constant 0 : index
    %91 = vector.load %arg16[%c9_99, %c0_100] : memref<16x128xf32, #tpu.memory_space<vmem>>, vector<1x128xf32>
    tpu.vector_store %arg16[%c9_99, %c0_100], %90 {strides = array<i32>} : memref<16x128xf32, #tpu.memory_space<vmem>>, vector<1x128xf32>,
    %c18 = arith.constant 18 : index
    %c0_101 = arith.constant 0 : index
    %92 = vector.load %arg18[%c18, %c0_101] : memref<28x128xf32, #tpu.memory_space<vmem>>, vector<1x128xf32>
    %c19 = arith.constant 19 : index
    %c0_102 = arith.constant 0 : index
    %93 = vector.load %arg18[%c19, %c0_102] : memref<28x128xf32, #tpu.memory_space<vmem>>, vector<1x128xf32>
    %94 = arith.maximumf %92, %93 : vector<1x128xf32>
    %c10_103 = arith.constant 10 : index
    %c0_104 = arith.constant 0 : index
    %95 = vector.load %arg16[%c10_103, %c0_104] : memref<16x128xf32, #tpu.memory_space<vmem>>, vector<1x128xf32>
    tpu.vector_store %arg16[%c10_103, %c0_104], %94 {strides = array<i32>} : memref<16x128xf32, #tpu.memory_space<vmem>>, vector<1x128xf32>,
    %c20 = arith.constant 20 : index
    %c0_105 = arith.constant 0 : index
    %96 = vector.load %arg18[%c20, %c0_105] : memref<28x128xf32, #tpu.memory_space<vmem>>, vector<1x128xf32>
    %c21 = arith.constant 21 : index
    %c0_106 = arith.constant 0 : index
    %97 = vector.load %arg18[%c21, %c0_106] : memref<28x128xf32, #tpu.memory_space<vmem>>, vector<1x128xf32>
    %98 = arith.maximumf %96, %97 : vector<1x128xf32>
    %c11_107 = arith.constant 11 : index
    %c0_108 = arith.constant 0 : index
    %99 = vector.load %arg16[%c11_107, %c0_108] : memref<16x128xf32, #tpu.memory_space<vmem>>, vector<1x128xf32>
    tpu.vector_store %arg16[%c11_107, %c0_108], %98 {strides = array<i32>} : memref<16x128xf32, #tpu.memory_space<vmem>>, vector<1x128xf32>,
    %c22 = arith.constant 22 : index
    %c0_109 = arith.constant 0 : index
    %100 = vector.load %arg18[%c22, %c0_109] : memref<28x128xf32, #tpu.memory_space<vmem>>, vector<1x128xf32>
    %c23 = arith.constant 23 : index
    %c0_110 = arith.constant 0 : index
    %101 = vector.load %arg18[%c23, %c0_110] : memref<28x128xf32, #tpu.memory_space<vmem>>, vector<1x128xf32>
    %102 = arith.maximumf %100, %101 : vector<1x128xf32>
    %c12_111 = arith.constant 12 : index
    %c0_112 = arith.constant 0 : index
    %103 = vector.load %arg16[%c12_111, %c0_112] : memref<16x128xf32, #tpu.memory_space<vmem>>, vector<1x128xf32>
    tpu.vector_store %arg16[%c12_111, %c0_112], %102 {strides = array<i32>} : memref<16x128xf32, #tpu.memory_space<vmem>>, vector<1x128xf32>,
    %c24 = arith.constant 24 : index
    %c0_113 = arith.constant 0 : index
    %104 = vector.load %arg18[%c24, %c0_113] : memref<28x128xf32, #tpu.memory_space<vmem>>, vector<1x128xf32>
    %c25 = arith.constant 25 : index
    %c0_114 = arith.constant 0 : index
    %105 = vector.load %arg18[%c25, %c0_114] : memref<28x128xf32, #tpu.memory_space<vmem>>, vector<1x128xf32>
    %106 = arith.maximumf %104, %105 : vector<1x128xf32>
    %c13_115 = arith.constant 13 : index
    %c0_116 = arith.constant 0 : index
    %107 = vector.load %arg16[%c13_115, %c0_116] : memref<16x128xf32, #tpu.memory_space<vmem>>, vector<1x128xf32>
    tpu.vector_store %arg16[%c13_115, %c0_116], %106 {strides = array<i32>} : memref<16x128xf32, #tpu.memory_space<vmem>>, vector<1x128xf32>,
    %c26 = arith.constant 26 : index
    %c0_117 = arith.constant 0 : index
    %108 = vector.load %arg18[%c26, %c0_117] : memref<28x128xf32, #tpu.memory_space<vmem>>, vector<1x128xf32>
    %c27 = arith.constant 27 : index
    %c0_118 = arith.constant 0 : index
    %109 = vector.load %arg18[%c27, %c0_118] : memref<28x128xf32, #tpu.memory_space<vmem>>, vector<1x128xf32>
    %110 = arith.maximumf %108, %109 : vector<1x128xf32>
    %c14_119 = arith.constant 14 : index
    %c0_120 = arith.constant 0 : index
    %111 = vector.load %arg16[%c14_119, %c0_120] : memref<16x128xf32, #tpu.memory_space<vmem>>, vector<1x128xf32>
    tpu.vector_store %arg16[%c14_119, %c0_120], %110 {strides = array<i32>} : memref<16x128xf32, #tpu.memory_space<vmem>>, vector<1x128xf32>,
    %c0_121 = arith.constant 0 : index
    %c0_122 = arith.constant 0 : index
    %112 = vector.load %arg16[%c0_121, %c0_122] : memref<16x128xf32, #tpu.memory_space<vmem>>, vector<14x128xf32>
    %c0_123 = arith.constant 0 : index
    %c0_124 = arith.constant 0 : index
    %c0_125 = arith.constant 0 : index
    %113 = vector.load %arg7[%c0_123, %c0_124, %c0_125] : memref<3x128x128xf32, #tpu.memory_space<vmem>>, vector<1x128x128xf32>
    %114 = vector.shape_cast %113 : vector<1x128x128xf32> to vector<128x128xf32>
    %cst_126 = arith.constant dense<0.000000e+00> : vector<14x128xf32>
    %115 = tpu.matmul %112, %114, %cst_126 {dimension_numbers = #tpu.dot_dimension_numbers<[1], [0], [0], [1], [0, 0, 1, 1], [], []>} : vector<14x128xf32>, vector<128x128xf32>, vector<14x128xf32> -> vector<14x128xf32>
    %c1_127 = arith.constant 1 : index
    %c0_128 = arith.constant 0 : index
    %116 = vector.load %arg16[%c1_127, %c0_128] : memref<16x128xf32, #tpu.memory_space<vmem>>, vector<14x128xf32>
    %c1_129 = arith.constant 1 : index
    %c0_130 = arith.constant 0 : index
    %c0_131 = arith.constant 0 : index
    %117 = vector.load %arg7[%c1_129, %c0_130, %c0_131] : memref<3x128x128xf32, #tpu.memory_space<vmem>>, vector<1x128x128xf32>
    %118 = vector.shape_cast %117 : vector<1x128x128xf32> to vector<128x128xf32>
    %cst_132 = arith.constant dense<0.000000e+00> : vector<14x128xf32>
    %119 = tpu.matmul %116, %118, %cst_132 {dimension_numbers = #tpu.dot_dimension_numbers<[1], [0], [0], [1], [0, 0, 1, 1], [], []>} : vector<14x128xf32>, vector<128x128xf32>, vector<14x128xf32> -> vector<14x128xf32>
    %120 = arith.addf %115, %119 : vector<14x128xf32>
    %c2_133 = arith.constant 2 : index
    %c0_134 = arith.constant 0 : index
    %121 = vector.load %arg16[%c2_133, %c0_134] : memref<16x128xf32, #tpu.memory_space<vmem>>, vector<14x128xf32>
    %c2_135 = arith.constant 2 : index
    %c0_136 = arith.constant 0 : index
    %c0_137 = arith.constant 0 : index
    %122 = vector.load %arg7[%c2_135, %c0_136, %c0_137] : memref<3x128x128xf32, #tpu.memory_space<vmem>>, vector<1x128x128xf32>
    %123 = vector.shape_cast %122 : vector<1x128x128xf32> to vector<128x128xf32>
    %cst_138 = arith.constant dense<0.000000e+00> : vector<14x128xf32>
    %124 = tpu.matmul %121, %123, %cst_138 {dimension_numbers = #tpu.dot_dimension_numbers<[1], [0], [0], [1], [0, 0, 1, 1], [], []>} : vector<14x128xf32>, vector<128x128xf32>, vector<14x128xf32> -> vector<14x128xf32>
    %125 = arith.addf %120, %124 : vector<14x128xf32>
    %c0_139 = arith.constant 0 : index
    %c0_140 = arith.constant 0 : index
    %126 = vector.load %arg8[%c0_139, %c0_140] : memref<1x128xf32, #tpu.memory_space<vmem>>, vector<1x128xf32>
    %127 = vector.broadcast %126 : vector<1x128xf32> to vector<14x128xf32>
    %128 = arith.addf %125, %127 : vector<14x128xf32>
    %cst_141 = arith.constant 0.000000e+00 : f32
    %129 = vector.broadcast %cst_141 : f32 to vector<14x128xf32>
    %130 = arith.maximumf %128, %129 : vector<14x128xf32>
    %c0_142 = arith.constant 0 : index
    %c0_143 = arith.constant 0 : index
    %131 = vector.load %arg17[%c0_142, %c0_143] : memref<16x128xf32, #tpu.memory_space<vmem>>, vector<1x128xf32>
    tpu.vector_store %arg17[%c0_142, %c0_143], %1 {strides = array<i32>} : memref<16x128xf32, #tpu.memory_space<vmem>>, vector<1x128xf32>,
    %c15_144 = arith.constant 15 : index
    %c0_145 = arith.constant 0 : index
    %132 = vector.load %arg17[%c15_144, %c0_145] : memref<16x128xf32, #tpu.memory_space<vmem>>, vector<1x128xf32>
    tpu.vector_store %arg17[%c15_144, %c0_145], %1 {strides = array<i32>} : memref<16x128xf32, #tpu.memory_space<vmem>>, vector<1x128xf32>,
    %c1_146 = arith.constant 1 : index
    %c0_147 = arith.constant 0 : index
    %133 = vector.load %arg17[%c1_146, %c0_147] : memref<16x128xf32, #tpu.memory_space<vmem>>, vector<14x128xf32>
    tpu.vector_store %arg17[%c1_146, %c0_147], %130 {strides = array<i32>} : memref<16x128xf32, #tpu.memory_space<vmem>>, vector<14x128xf32>,
    %c0_148 = arith.constant 0 : index
    %c0_149 = arith.constant 0 : index
    %134 = vector.load %arg17[%c0_148, %c0_149] : memref<16x128xf32, #tpu.memory_space<vmem>>, vector<14x128xf32>
    %c0_150 = arith.constant 0 : index
    %c0_151 = arith.constant 0 : index
    %c0_152 = arith.constant 0 : index
    %135 = vector.load %arg9[%c0_150, %c0_151, %c0_152] : memref<3x128x128xf32, #tpu.memory_space<vmem>>, vector<1x128x128xf32>
    %136 = vector.shape_cast %135 : vector<1x128x128xf32> to vector<128x128xf32>
    %cst_153 = arith.constant dense<0.000000e+00> : vector<14x128xf32>
    %137 = tpu.matmul %134, %136, %cst_153 {dimension_numbers = #tpu.dot_dimension_numbers<[1], [0], [0], [1], [0, 0, 1, 1], [], []>} : vector<14x128xf32>, vector<128x128xf32>, vector<14x128xf32> -> vector<14x128xf32>
    %c1_154 = arith.constant 1 : index
    %c0_155 = arith.constant 0 : index
    %138 = vector.load %arg17[%c1_154, %c0_155] : memref<16x128xf32, #tpu.memory_space<vmem>>, vector<14x128xf32>
    %c1_156 = arith.constant 1 : index
    %c0_157 = arith.constant 0 : index
    %c0_158 = arith.constant 0 : index
    %139 = vector.load %arg9[%c1_156, %c0_157, %c0_158] : memref<3x128x128xf32, #tpu.memory_space<vmem>>, vector<1x128x128xf32>
    %140 = vector.shape_cast %139 : vector<1x128x128xf32> to vector<128x128xf32>
    %cst_159 = arith.constant dense<0.000000e+00> : vector<14x128xf32>
    %141 = tpu.matmul %138, %140, %cst_159 {dimension_numbers = #tpu.dot_dimension_numbers<[1], [0], [0], [1], [0, 0, 1, 1], [], []>} : vector<14x128xf32>, vector<128x128xf32>, vector<14x128xf32> -> vector<14x128xf32>
    %142 = arith.addf %137, %141 : vector<14x128xf32>
    %c2_160 = arith.constant 2 : index
    %c0_161 = arith.constant 0 : index
    %143 = vector.load %arg17[%c2_160, %c0_161] : memref<16x128xf32, #tpu.memory_space<vmem>>, vector<14x128xf32>
    %c2_162 = arith.constant 2 : index
    %c0_163 = arith.constant 0 : index
    %c0_164 = arith.constant 0 : index
    %144 = vector.load %arg9[%c2_162, %c0_163, %c0_164] : memref<3x128x128xf32, #tpu.memory_space<vmem>>, vector<1x128x128xf32>
    %145 = vector.shape_cast %144 : vector<1x128x128xf32> to vector<128x128xf32>
    %cst_165 = arith.constant dense<0.000000e+00> : vector<14x128xf32>
    %146 = tpu.matmul %143, %145, %cst_165 {dimension_numbers = #tpu.dot_dimension_numbers<[1], [0], [0], [1], [0, 0, 1, 1], [], []>} : vector<14x128xf32>, vector<128x128xf32>, vector<14x128xf32> -> vector<14x128xf32>
    %147 = arith.addf %142, %146 : vector<14x128xf32>
    %c0_166 = arith.constant 0 : index
    %c0_167 = arith.constant 0 : index
    %148 = vector.load %arg10[%c0_166, %c0_167] : memref<1x128xf32, #tpu.memory_space<vmem>>, vector<1x128xf32>
    %149 = vector.broadcast %148 : vector<1x128xf32> to vector<14x128xf32>
    %150 = arith.addf %147, %149 : vector<14x128xf32>
    %cst_168 = arith.constant 0.000000e+00 : f32
    %151 = vector.broadcast %cst_168 : f32 to vector<14x128xf32>
    %152 = arith.maximumf %150, %151 : vector<14x128xf32>
    %c0_169 = arith.constant 0 : index
    %c0_170 = arith.constant 0 : index
    %c0_171 = arith.constant 0 : index
    %153 = vector.load %arg11[%c0_169, %c0_170, %c0_171] : memref<2x128x128xf32, #tpu.memory_space<vmem>>, vector<1x128x128xf32>
    %154 = vector.shape_cast %153 : vector<1x128x128xf32> to vector<128x128xf32>
    %cst_172 = arith.constant dense<0.000000e+00> : vector<14x128xf32>
    %155 = tpu.matmul %152, %154, %cst_172 {dimension_numbers = #tpu.dot_dimension_numbers<[1], [0], [0], [1], [0, 0, 1, 1], [], []>} : vector<14x128xf32>, vector<128x128xf32>, vector<14x128xf32> -> vector<14x128xf32>
    %c1_173 = arith.constant 1 : index
    %c0_174 = arith.constant 0 : index
    %c0_175 = arith.constant 0 : index
    %156 = vector.load %arg11[%c1_173, %c0_174, %c0_175] : memref<2x128x128xf32, #tpu.memory_space<vmem>>, vector<1x128x128xf32>
    %157 = vector.shape_cast %156 : vector<1x128x128xf32> to vector<128x128xf32>
    %cst_176 = arith.constant dense<0.000000e+00> : vector<14x128xf32>
    %158 = tpu.matmul %152, %157, %cst_176 {dimension_numbers = #tpu.dot_dimension_numbers<[1], [0], [0], [1], [0, 0, 1, 1], [], []>} : vector<14x128xf32>, vector<128x128xf32>, vector<14x128xf32> -> vector<14x128xf32>
    %159 = arith.maximumf %155, %158 : vector<14x128xf32>
    %c0_177 = arith.constant 0 : index
    %c0_178 = arith.constant 0 : index
    %160 = vector.load %arg19[%c0_177, %c0_178] : memref<14x128xf32, #tpu.memory_space<vmem>>, vector<14x128xf32>
    tpu.vector_store %arg19[%c0_177, %c0_178], %159 {strides = array<i32>} : memref<14x128xf32, #tpu.memory_space<vmem>>, vector<14x128xf32>,
    %cst_179 = arith.constant 0.000000e+00 : f32
    %161 = vector.broadcast %cst_179 : f32 to vector<1x10xf32>
    %c0_180 = arith.constant 0 : index
    %c0_181 = arith.constant 0 : index
    %162 = vector.load %arg19[%c0_180, %c0_181] : memref<14x128xf32, #tpu.memory_space<vmem>>, vector<1x128xf32>
    %c1_182 = arith.constant 1 : index
    %c0_183 = arith.constant 0 : index
    %163 = vector.load %arg19[%c1_182, %c0_183] : memref<14x128xf32, #tpu.memory_space<vmem>>, vector<1x128xf32>
    %164 = arith.maximumf %162, %163 : vector<1x128xf32>
    %c0_184 = arith.constant 0 : index
    %c0_185 = arith.constant 0 : index
    %c0_186 = arith.constant 0 : index
    %165 = vector.load %arg12[%c0_184, %c0_185, %c0_186] : memref<7x128x10xf32, #tpu.memory_space<vmem>>, vector<1x128x10xf32>
    %166 = vector.shape_cast %165 : vector<1x128x10xf32> to vector<128x10xf32>
    %cst_187 = arith.constant dense<0.000000e+00> : vector<1x10xf32>
    %167 = tpu.matmul %164, %166, %cst_187 {dimension_numbers = #tpu.dot_dimension_numbers<[1], [0], [0], [1], [0, 0, 1, 1], [], []>} : vector<1x128xf32>, vector<128x10xf32>, vector<1x10xf32> -> vector<1x10xf32>
    %168 = arith.addf %161, %167 : vector<1x10xf32>
    %c2_188 = arith.constant 2 : index
    %c0_189 = arith.constant 0 : index
    %169 = vector.load %arg19[%c2_188, %c0_189] : memref<14x128xf32, #tpu.memory_space<vmem>>, vector<1x128xf32>
    %c3_190 = arith.constant 3 : index
    %c0_191 = arith.constant 0 : index
    %170 = vector.load %arg19[%c3_190, %c0_191] : memref<14x128xf32, #tpu.memory_space<vmem>>, vector<1x128xf32>
    %171 = arith.maximumf %169, %170 : vector<1x128xf32>
    %c1_192 = arith.constant 1 : index
    %c0_193 = arith.constant 0 : index
    %c0_194 = arith.constant 0 : index
    %172 = vector.load %arg12[%c1_192, %c0_193, %c0_194] : memref<7x128x10xf32, #tpu.memory_space<vmem>>, vector<1x128x10xf32>
    %173 = vector.shape_cast %172 : vector<1x128x10xf32> to vector<128x10xf32>
    %cst_195 = arith.constant dense<0.000000e+00> : vector<1x10xf32>
    %174 = tpu.matmul %171, %173, %cst_195 {dimension_numbers = #tpu.dot_dimension_numbers<[1], [0], [0], [1], [0, 0, 1, 1], [], []>} : vector<1x128xf32>, vector<128x10xf32>, vector<1x10xf32> -> vector<1x10xf32>
    %175 = arith.addf %168, %174 : vector<1x10xf32>
    %c4_196 = arith.constant 4 : index
    %c0_197 = arith.constant 0 : index
    %176 = vector.load %arg19[%c4_196, %c0_197] : memref<14x128xf32, #tpu.memory_space<vmem>>, vector<1x128xf32>
    %c5_198 = arith.constant 5 : index
    %c0_199 = arith.constant 0 : index
    %177 = vector.load %arg19[%c5_198, %c0_199] : memref<14x128xf32, #tpu.memory_space<vmem>>, vector<1x128xf32>
    %178 = arith.maximumf %176, %177 : vector<1x128xf32>
    %c2_200 = arith.constant 2 : index
    %c0_201 = arith.constant 0 : index
    %c0_202 = arith.constant 0 : index
    %179 = vector.load %arg12[%c2_200, %c0_201, %c0_202] : memref<7x128x10xf32, #tpu.memory_space<vmem>>, vector<1x128x10xf32>
    %180 = vector.shape_cast %179 : vector<1x128x10xf32> to vector<128x10xf32>
    %cst_203 = arith.constant dense<0.000000e+00> : vector<1x10xf32>
    %181 = tpu.matmul %178, %180, %cst_203 {dimension_numbers = #tpu.dot_dimension_numbers<[1], [0], [0], [1], [0, 0, 1, 1], [], []>} : vector<1x128xf32>, vector<128x10xf32>, vector<1x10xf32> -> vector<1x10xf32>
    %182 = arith.addf %175, %181 : vector<1x10xf32>
    %c6_204 = arith.constant 6 : index
    %c0_205 = arith.constant 0 : index
    %183 = vector.load %arg19[%c6_204, %c0_205] : memref<14x128xf32, #tpu.memory_space<vmem>>, vector<1x128xf32>
    %c7_206 = arith.constant 7 : index
    %c0_207 = arith.constant 0 : index
    %184 = vector.load %arg19[%c7_206, %c0_207] : memref<14x128xf32, #tpu.memory_space<vmem>>, vector<1x128xf32>
    %185 = arith.maximumf %183, %184 : vector<1x128xf32>
    %c3_208 = arith.constant 3 : index
    %c0_209 = arith.constant 0 : index
    %c0_210 = arith.constant 0 : index
    %186 = vector.load %arg12[%c3_208, %c0_209, %c0_210] : memref<7x128x10xf32, #tpu.memory_space<vmem>>, vector<1x128x10xf32>
    %187 = vector.shape_cast %186 : vector<1x128x10xf32> to vector<128x10xf32>
    %cst_211 = arith.constant dense<0.000000e+00> : vector<1x10xf32>
    %188 = tpu.matmul %185, %187, %cst_211 {dimension_numbers = #tpu.dot_dimension_numbers<[1], [0], [0], [1], [0, 0, 1, 1], [], []>} : vector<1x128xf32>, vector<128x10xf32>, vector<1x10xf32> -> vector<1x10xf32>
    %189 = arith.addf %182, %188 : vector<1x10xf32>
    %c8_212 = arith.constant 8 : index
    %c0_213 = arith.constant 0 : index
    %190 = vector.load %arg19[%c8_212, %c0_213] : memref<14x128xf32, #tpu.memory_space<vmem>>, vector<1x128xf32>
    %c9_214 = arith.constant 9 : index
    %c0_215 = arith.constant 0 : index
    %191 = vector.load %arg19[%c9_214, %c0_215] : memref<14x128xf32, #tpu.memory_space<vmem>>, vector<1x128xf32>
    %192 = arith.maximumf %190, %191 : vector<1x128xf32>
    %c4_216 = arith.constant 4 : index
    %c0_217 = arith.constant 0 : index
    %c0_218 = arith.constant 0 : index
    %193 = vector.load %arg12[%c4_216, %c0_217, %c0_218] : memref<7x128x10xf32, #tpu.memory_space<vmem>>, vector<1x128x10xf32>
    %194 = vector.shape_cast %193 : vector<1x128x10xf32> to vector<128x10xf32>
    %cst_219 = arith.constant dense<0.000000e+00> : vector<1x10xf32>
    %195 = tpu.matmul %192, %194, %cst_219 {dimension_numbers = #tpu.dot_dimension_numbers<[1], [0], [0], [1], [0, 0, 1, 1], [], []>} : vector<1x128xf32>, vector<128x10xf32>, vector<1x10xf32> -> vector<1x10xf32>
    %196 = arith.addf %189, %195 : vector<1x10xf32>
    %c10_220 = arith.constant 10 : index
    %c0_221 = arith.constant 0 : index
    %197 = vector.load %arg19[%c10_220, %c0_221] : memref<14x128xf32, #tpu.memory_space<vmem>>, vector<1x128xf32>
    %c11_222 = arith.constant 11 : index
    %c0_223 = arith.constant 0 : index
    %198 = vector.load %arg19[%c11_222, %c0_223] : memref<14x128xf32, #tpu.memory_space<vmem>>, vector<1x128xf32>
    %199 = arith.maximumf %197, %198 : vector<1x128xf32>
    %c5_224 = arith.constant 5 : index
    %c0_225 = arith.constant 0 : index
    %c0_226 = arith.constant 0 : index
    %200 = vector.load %arg12[%c5_224, %c0_225, %c0_226] : memref<7x128x10xf32, #tpu.memory_space<vmem>>, vector<1x128x10xf32>
    %201 = vector.shape_cast %200 : vector<1x128x10xf32> to vector<128x10xf32>
    %cst_227 = arith.constant dense<0.000000e+00> : vector<1x10xf32>
    %202 = tpu.matmul %199, %201, %cst_227 {dimension_numbers = #tpu.dot_dimension_numbers<[1], [0], [0], [1], [0, 0, 1, 1], [], []>} : vector<1x128xf32>, vector<128x10xf32>, vector<1x10xf32> -> vector<1x10xf32>
    %203 = arith.addf %196, %202 : vector<1x10xf32>
    %c12_228 = arith.constant 12 : index
    %c0_229 = arith.constant 0 : index
    %204 = vector.load %arg19[%c12_228, %c0_229] : memref<14x128xf32, #tpu.memory_space<vmem>>, vector<1x128xf32>
    %c13_230 = arith.constant 13 : index
    %c0_231 = arith.constant 0 : index
    %205 = vector.load %arg19[%c13_230, %c0_231] : memref<14x128xf32, #tpu.memory_space<vmem>>, vector<1x128xf32>
    %206 = arith.maximumf %204, %205 : vector<1x128xf32>
    %c6_232 = arith.constant 6 : index
    %c0_233 = arith.constant 0 : index
    %c0_234 = arith.constant 0 : index
    %207 = vector.load %arg12[%c6_232, %c0_233, %c0_234] : memref<7x128x10xf32, #tpu.memory_space<vmem>>, vector<1x128x10xf32>
    %208 = vector.shape_cast %207 : vector<1x128x10xf32> to vector<128x10xf32>
    %cst_235 = arith.constant dense<0.000000e+00> : vector<1x10xf32>
    %209 = tpu.matmul %206, %208, %cst_235 {dimension_numbers = #tpu.dot_dimension_numbers<[1], [0], [0], [1], [0, 0, 1, 1], [], []>} : vector<1x128xf32>, vector<128x10xf32>, vector<1x10xf32> -> vector<1x10xf32>
    %210 = arith.addf %203, %209 : vector<1x10xf32>
    %c0_236 = arith.constant 0 : index
    %c0_237 = arith.constant 0 : index
    %211 = vector.load %arg13[%c0_236, %c0_237] : memref<1x10xf32, #tpu.memory_space<vmem>>, vector<1x10xf32>
    %212 = arith.addf %210, %211 : vector<1x10xf32>
    %c0_238 = arith.constant 0 : index
    %c0_239 = arith.constant 0 : index
    %c0_240 = arith.constant 0 : index
    %213 = vector.load %arg14[%c0_238, %c0_239, %c0_240] : memref<1x1x10xf32, #tpu.memory_space<vmem>>, vector<1x1x10xf32>
    %214 = vector.shape_cast %213 : vector<1x1x10xf32> to vector<1x10xf32>
    %215 = vector.shape_cast %212 : vector<1x10xf32> to vector<1x1x10xf32>
    tpu.vector_store %arg14[%c0_238, %c0_239, %c0_240], %215 {strides = array<i32>} : memref<1x1x10xf32, #tpu.memory_space<vmem>>, vector<1x1x10xf32>,
    return
  }
  func.func @transform_0(%arg0: i32) -> (i32, i32, i32) {
    %c0_i32 = arith.constant 0 : i32
    %c0_i32_0 = arith.constant 0 : i32
    %c0_i32_1 = arith.constant 0 : i32
    return %arg0, %c0_i32, %c0_i32_0 : i32, i32, i32
  }
  func.func @transform_1(%arg0: i32) -> (i32, i32, i32) {
    %c0_i32 = arith.constant 0 : i32
    %c0_i32_0 = arith.constant 0 : i32
    %c0_i32_1 = arith.constant 0 : i32
    %c0_i32_2 = arith.constant 0 : i32
    return %c0_i32, %c0_i32_0, %c0_i32_1 : i32, i32, i32
  }
  func.func @transform_2(%arg0: i32) -> (i32, i32) {
    %c0_i32 = arith.constant 0 : i32
    %c0_i32_0 = arith.constant 0 : i32
    %c0_i32_1 = arith.constant 0 : i32
    return %c0_i32, %c0_i32_0 : i32, i32
  }
  func.func @transform_3(%arg0: i32) -> (i32, i32, i32) {
    %c0_i32 = arith.constant 0 : i32
    %c0_i32_0 = arith.constant 0 : i32
    %c0_i32_1 = arith.constant 0 : i32
    %c0_i32_2 = arith.constant 0 : i32
    return %c0_i32, %c0_i32_0, %c0_i32_1 : i32, i32, i32
  }
  func.func @transform_4(%arg0: i32) -> (i32, i32) {
    %c0_i32 = arith.constant 0 : i32
    %c0_i32_0 = arith.constant 0 : i32
    %c0_i32_1 = arith.constant 0 : i32
    return %c0_i32, %c0_i32_0 : i32, i32
  }
  func.func @transform_5(%arg0: i32) -> (i32, i32, i32) {
    %c0_i32 = arith.constant 0 : i32
    %c0_i32_0 = arith.constant 0 : i32
    %c0_i32_1 = arith.constant 0 : i32
    %c0_i32_2 = arith.constant 0 : i32
    return %c0_i32, %c0_i32_0, %c0_i32_1 : i32, i32, i32
  }
  func.func @transform_6(%arg0: i32) -> (i32, i32, i32) {
    %c0_i32 = arith.constant 0 : i32
    %c0_i32_0 = arith.constant 0 : i32
    %c0_i32_1 = arith.constant 0 : i32
    %c0_i32_2 = arith.constant 0 : i32
    return %c0_i32, %c0_i32_0, %c0_i32_1 : i32, i32, i32
  }
  func.func @transform_7(%arg0: i32) -> (i32, i32) {
    %c0_i32 = arith.constant 0 : i32
    %c0_i32_0 = arith.constant 0 : i32
    %c0_i32_1 = arith.constant 0 : i32
    return %c0_i32, %c0_i32_0 : i32, i32
  }
  func.func @transform_8(%arg0: i32) -> (i32, i32, i32) {
    %c0_i32 = arith.constant 0 : i32
    %c0_i32_0 = arith.constant 0 : i32
    %c0_i32_1 = arith.constant 0 : i32
    %c0_i32_2 = arith.constant 0 : i32
    return %c0_i32, %c0_i32_0, %c0_i32_1 : i32, i32, i32
  }
  func.func @transform_9(%arg0: i32) -> (i32, i32) {
    %c0_i32 = arith.constant 0 : i32
    %c0_i32_0 = arith.constant 0 : i32
    %c0_i32_1 = arith.constant 0 : i32
    return %c0_i32, %c0_i32_0 : i32, i32
  }
  func.func @transform_10(%arg0: i32) -> (i32, i32, i32) {
    %c0_i32 = arith.constant 0 : i32
    %c0_i32_0 = arith.constant 0 : i32
    %c0_i32_1 = arith.constant 0 : i32
    %c0_i32_2 = arith.constant 0 : i32
    return %c0_i32, %c0_i32_0, %c0_i32_1 : i32, i32, i32
  }
  func.func @transform_11(%arg0: i32) -> (i32, i32, i32) {
    %c0_i32 = arith.constant 0 : i32
    %c0_i32_0 = arith.constant 0 : i32
    %c0_i32_1 = arith.constant 0 : i32
    %c0_i32_2 = arith.constant 0 : i32
    return %c0_i32, %c0_i32_0, %c0_i32_1 : i32, i32, i32
  }
  func.func @transform_12(%arg0: i32) -> (i32, i32) {
    %c0_i32 = arith.constant 0 : i32
    %c0_i32_0 = arith.constant 0 : i32
    %c0_i32_1 = arith.constant 0 : i32
    return %c0_i32, %c0_i32_0 : i32, i32
  }
  func.func @transform_13(%arg0: i32) -> (i32, i32, i32) {
    %c0_i32 = arith.constant 0 : i32
    %c0_i32_0 = arith.constant 0 : i32
    %c0_i32_1 = arith.constant 0 : i32
    return %arg0, %c0_i32, %c0_i32_0 : i32, i32, i32
  }
}

</mosaic_0001>

<bundles_post_ra>
// kernel: fashion_mnist_forward.1
= control target key start
LH: loop header
LB: loop body
LE: loop exit
PB: predicated region body
PF: predicated region fallthrough
CT: control target
= control target key end

     0   :  { %18 = vsyncpa [#allocation8], 0  ;;  %s7273_s0 = inlined_call_operand.vmem [shape: f32[2,30,32], index: 0, kind: input, shape index: {}]   ;;  %s7274_s1 = inlined_call_operand.vmem [shape: f32[3,32,256], index: 1, kind: input, shape index: {}]   ;;  %s7275_s2 = inlined_call_operand.vmem [shape: f32[1,256], index: 2, kind: input, shape index: {}]   ;;  %s7276_s3 = inlined_call_operand.vmem [shape: f32[3,256,256], index: 3, kind: input, shape index: {}]   ;;  %s7277_s4 = inlined_call_operand.vmem [shape: f32[1,256], index: 4, kind: input, shape index: {}]   ;;  %s7278_s5 = inlined_call_operand.vmem [shape: f32[2,256,128], index: 5, kind: input, shape index: {}]   ;;  %s7279_s6 = inlined_call_operand.vmem [shape: f32[3,128,128], index: 6, kind: input, shape index: {}]   ;;  %s7280_s7 = inlined_call_operand.vmem [shape: f32[1,128], index: 7, kind: input, shape index: {}]   ;;  %s7281_s8 = inlined_call_operand.vmem [shape: f32[3,128,128], index: 8, kind: input, shape index: {}]   ;;  %s7282_s9 = inlined_call_operand.vmem [shape: f32[1,128], index: 9, kind: input, shape index: {}]   ;;  %s7283_s10 = inlined_call_operand.vmem [shape: f32[2,128,128], index: 10, kind: input, shape index: {}]   ;;  %s7284_s11 = inlined_call_operand.vmem [shape: f32[7,128,10], index: 11, kind: input, shape index: {}]   ;;  %s7285_s12 = inlined_call_operand.vmem [shape: f32[1,10], index: 12, kind: input, shape index: {}]   ;;  %s7286_s13 = inlined_call_operand.hbm [shape: f32[2,1,10], index: 13, kind: output, shape index: {}]  }
   0x1   :  { %20 = vsyncpa [#allocation8 + $0x1], 0  ;;  %s5397_s25 = smov 0   ;;  %s5399_s26 = smov 0  }
   0x2   :  { %s5401_s27 = smov 0   ;;  %s5403_s28 = smov 0  }
   0x3 LB: > { %7291 = sst [smem:[#allocation10_spill]] %s5317_s27  ;;  %s5418_s29 = sadd.s32 4294967295, %s5321_s28   ;;  %s5321_s28 = sphi %s5403_s28, %s7298_s28   ;;  %s5317_s27 = sphi %s5401_s27, %s7300_s27   ;;  %s5313_s26 = sphi %s5399_s26, %s7302_s26   ;;  %s5309_s25 = sphi %s5397_s25, %s7301_s25  }
   0x4   : > { %s3221_s30 = sadd.s32 4294967294, %s5321_s28   ;;  %s5422_s14 = sadd.s32 1, %s5321_s28  }
   0x5   : > { %7292 = sst [smem:[#allocation11_spill]] %s5422_s14  ;;  %s311_s15 = sadd.s32 1, %s5317_s27 }
   0x6   : > { %s308_s16 = ssub.s32 %s5321_s28, %s5422_s14  ;;  %p321_p0 = scmp.ne.s32.totalorder %s5317_s27, %s5313_s26 }
   0x7   : > { %p309_p1 = scmp.eq.s32.totalorder %s308_s16, 0  ;;  %p322_p2 = scmp.eq.s32.totalorder %s5418_s29, 1 }
   0x8   : > { %p327_p3 = scmp.ne.s32.totalorder %s5313_s26, %s5309_s25  ;;  %p328_p4 = scmp.eq.s32.totalorder %s3221_s30, 1 }
   0x9   : > { %s5433_s17 = scalar_select %p309_p1, %s5317_s27, %s311_s15  }
   0xa   : > { %p5435_p5 = por %p322_p2, %p321_p0  ;;  %p5439_p6 = por %p328_p4, %p327_p3 }
   0xb   : > { %7293 = sst [smem:[#allocation12_spill]] %s5433_s17  ;;  %p3224_p7 = scmp.ge.s32.totalorder %s5321_s28, 1 }
   0xc   : > { %s7295_s19 = scalar_select %p5439_p6, 1, 0 }
   0xd   : > { %p390_p8 = scmp.lt.s32.totalorder %s5321_s28, 3 }
   0xe   : > { %7296 = sst [smem:[#allocation13_spill]] %s7295_s19 }
   0xf   : > { %p391_p9 = pnand %p3224_p7, %p390_p8 }
  0x10   : > { %v3228_v0 = vld [vmem:[%s7274_s1 + $0x48] sm:$0xff] (!%p391_p9)  ;;  %v3230_v1 = vld [vmem:[%s7274_s1 + $0x58] sm:$0xff] (!%p391_p9)  ;;  %v3227_v2 = vld [vmem:[%s7274_s1 + $0x40] sm:$0xff] (!%p391_p9)  ;;  %p433_p10 = scmp.lt.s32.totalorder (!%p391_p9), %s5418_s29, 1  ;;  %v5323_v7 = vmov (!%p391_p9), 0.0   ;;  %vm463_vm0 = vcmask (!%p391_p9), 261120  }
  0x11   : > { %394 = sbr.rel (%p391_p9) target bundleno = 2074 (0x81a), region = 72  ;;  %v4473_v3 = vpack.c.bf16 (!%p391_p9), %v3230_v1, %v3228_v0  ;;  %v3229_v4 = vld [vmem:[%s7274_s1 + $0x50] sm:$0xff] (!%p391_p9)  ;;  %v3232_v5 = vld [vmem:[%s7274_s1 + $0x68] sm:$0xff] (!%p391_p9)  ;;  %v3234_v6 = vld [vmem:[%s7274_s1 + $0x78] sm:$0xff] (!%p391_p9)  ;;  %540 = vmatprep.mubr.f32.mxu0 (!%p391_p9), %v5323_v7  ;;  %1678 = vst [vmem:[#allocation3] sm:$0x1] (!%p391_p9), %v5323_v7 }
  0x12   : > { %1679 = vst [vmem:[#allocation3 + $0xf] sm:$0x1] (!%p391_p9), %v5323_v7  ;;  %2030 = vst [vmem:[#allocation4] sm:$0x1] (!%p391_p9), %v5323_v7  ;;  %v4475_v8 = vpack.c.bf16 (!%p391_p9), %v3229_v4, %v3227_v2  ;;  %v4477_v9 = vpack.c.bf16 (!%p391_p9), %v3234_v6, %v3232_v5  ;;  %v3231_v10 = vld [vmem:[%s7274_s1 + $0x60] sm:$0xff] (!%p391_p9)  ;;  %v3233_v11 = vld [vmem:[%s7274_s1 + $0x70] sm:$0xff] (!%p391_p9) }
  0x13   : > { %2031 = vst [vmem:[#allocation4 + $0xf] sm:$0x1] (!%p391_p9), %v5323_v7  ;;  %v443_v12 = vld [vmem:[%s7274_s1 + $0x8] sm:$0xff] (!%p391_p9)  ;;  %4474 = vmatprep.subr.bf16.mxu0 (!%p391_p9), %v4473_v3  ;;  %v445_v13 = vld [vmem:[%s7274_s1 + $0x18] sm:$0xff] (!%p391_p9)  ;;  %v4479_v14 = vpack.c.bf16 (!%p391_p9), %v3233_v11, %v3231_v10  ;;  %v442_v16 = vld [vmem:[%s7274_s1] sm:$0xff] (!%p391_p9)  ;;  %vm833_vm2 = vcmask (!%p391_p9), 1040384  }
  0x14   : > { %4476 = vmatpush1.bf16.msra.mxu0 (!%p391_p9), %v4475_v8  ;;  %v4481_v15 = vpack.c.bf16 (!%p391_p9), %v445_v13, %v443_v12  ;;  %v444_v17 = vld [vmem:[%s7274_s1 + $0x10] sm:$0xff] (!%p391_p9)  ;;  %v447_v18 = vld [vmem:[%s7274_s1 + $0x28] sm:$0xff] (!%p391_p9)  ;;  %v449_v19 = vld [vmem:[%s7274_s1 + $0x38] sm:$0xff] (!%p391_p9)  ;;  %vm1013_vm3 = vcmask (!%p391_p9), 1046528   ;;  %vm1287_vm4 = vcmask (!%p391_p9), 1045504   ;;  %vm5325_vm5 = vmmov (!%p391_p9), 0  }
  0x15   : > { %4478 = vmatprep.subr.bf16.mxu0 (!%p391_p9), %v4477_v9  ;;  %v4483_v21 = vpack.c.bf16 (!%p391_p9), %v444_v17, %v442_v16  ;;  %v4485_v22 = vpack.c.bf16 (!%p391_p9), %v449_v19, %v447_v18  ;;  %v446_v23 = vld [vmem:[%s7274_s1 + $0x20] sm:$0xff] (!%p391_p9)  ;;  %v448_v24 = vld [vmem:[%s7274_s1 + $0x30] sm:$0xff] (!%p391_p9)  ;;  %v3244_v25 = vld [vmem:[%s7274_s1 + $0x88] sm:$0xff] (!%p391_p9)  ;;  %s3593_s14 = sshll.u32 (!%p391_p9), %s5418_s29, 4  ;;  %vm3151_vm6 = vcmask (!%p391_p9), 73728  }
  0x16   : > { %v3246_v26 = vld [vmem:[%s7274_s1 + $0x98] sm:$0xff] (!%p391_p9)  ;;  %v4487_v28 = vpack.c.bf16 (!%p391_p9), %v448_v24, %v446_v23  ;;  %v3256_v29 = vld [vmem:[%s7276_s3 + $0x208] sm:$0xff] (!%p391_p9)  ;;  %v3255_v31 = vld [vmem:[%s7276_s3 + $0x200] sm:$0xff] (!%p391_p9)  ;;  %s7231_s30 = scalar_lea.hbm (!%p391_p9), %s7286_s13, %s3593_s14 }
  0x17   : > { %v3258_v30 = vld [vmem:[%s7276_s3 + $0x218] sm:$0xff] (!%p391_p9)  ;;  %v4489_v32 = vpack.c.bf16 (!%p391_p9), %v3246_v26, %v3244_v25  ;;  %v3257_v34 = vld [vmem:[%s7276_s3 + $0x210] sm:$0xff] (!%p391_p9)  ;;  %v3260_v35 = vld [vmem:[%s7276_s3 + $0x228] sm:$0xff] (!%p391_p9) }
  0x18   : > { %s434_s24 = scalar_select %p433_p10, %s5418_s29, 1  ;;  %4480 = vmatpush1.bf16.msra.mxu0 %v4479_v14  ;;  %v4497_v33 = vpack.c.bf16 %v3258_v30, %v3256_v29  ;;  %v3262_v36 = vld [vmem:[%s7276_s3 + $0x238] sm:$0xff]  ;;  %v4499_v37 = vpack.c.bf16 %v3257_v34, %v3255_v31  ;;  %v3259_v39 = vld [vmem:[%s7276_s3 + $0x220] sm:$0xff]  ;;  %v3261_v40 = vld [vmem:[%s7276_s3 + $0x230] sm:$0xff] }
  0x19   : > { %4482 = vmatprep.subr.bf16.mxu0 %v4481_v15  ;;  %v4501_v38 = vpack.c.bf16 %v3262_v36, %v3260_v35  ;;  %v3264_v41 = vld [vmem:[%s7276_s3 + $0x248] sm:$0xff]  ;;  %v3266_v42 = vld [vmem:[%s7276_s3 + $0x258] sm:$0xff]  ;;  %v4503_v44 = vpack.c.bf16 %v3261_v40, %v3259_v39  ;;  %v3263_v46 = vld [vmem:[%s7276_s3 + $0x240] sm:$0xff]  ;;  %s5326_s29 = smov [#allocation7]  }
  0x1a   : > { %s3596_s21 = sshll.u32 %s434_s24, 5  ;;  %4498 = vmatprep.subr.bf16.mxu1 %v4497_v33  ;;  %v4505_v45 = vpack.c.bf16 %v3266_v42, %v3264_v41  ;;  %v3265_v47 = vld [vmem:[%s7276_s3 + $0x250] sm:$0xff]  ;;  %v3268_v48 = vld [vmem:[%s7276_s3 + $0x268] sm:$0xff]  ;;  %v3270_v49 = vld [vmem:[%s7276_s3 + $0x278] sm:$0xff]  ;;  %s5263_s16 = sshll.u32 %s5326_s29, 4  ;;  %s5264_s16 = int_to_ptr.vmem [resolvable:$false] %s5263_s16 }
  0x1b   : > { %s5487_s23 = scalar_lea.vmem %s7273_s0, %s3596_s21  ;;  %4500 = vmatpush1.bf16.msra.mxu1 %v4499_v37  ;;  %v3243_v51 = vld [vmem:[%s7274_s1 + $0x80] sm:$0xff]  ;;  %v3245_v52 = vld [vmem:[%s7274_s1 + $0x90] sm:$0xff]  ;;  %v3248_v53 = vld [vmem:[%s7274_s1 + $0xa8] sm:$0xff]  ;;  %v4507_v54 = vpack.c.bf16 %v3265_v47, %v3263_v46  ;;  %v4509_v56 = vpack.c.bf16 %v3270_v49, %v3268_v48  ;;  %s5265_s20 = scalar_lea.vmem %s5264_s16, 32 }
  0x1c   : > { %v450_v20 = vld [vmem:[%s5487_s23 + $0x1] sm:$0xff]  ;;  %v451_v27 = vld [vmem:[%s5487_s23 + $0x9] sm:$0xff]  ;;  %v452_v43 = vld [vmem:[%s5487_s23 + $0x11] sm:$0xff]  ;;  %4502 = vmatprep.subr.bf16.mxu1 %v4501_v38  ;;  %v4491_v62 = vpack.c.bf16 %v3245_v52, %v3243_v51 }
  0x1d   : > { %3235 = vmatmul.mubr.msk.f32.vlgmr.msra.gmra.mrb[0].mxu0 %vm463_vm0, %v450_v20  ;;  %v453_v50 = vld [vmem:[%s5487_s23 + $0x19] sm:$0xf]  ;;  %v3267_v57 = vld [vmem:[%s7276_s3 + $0x260] sm:$0xff]  ;;  %v3269_v58 = vld [vmem:[%s7276_s3 + $0x270] sm:$0xff] }
  0x1e   : > { %4484 = vmatpush1.bf16.msra.mxu0 %v4483_v21  ;;  %546 = vmatprep.mubr.f32.mxu0 %v5323_v7  ;;  %v3250_v55 = vld [vmem:[%s7274_s1 + $0xb8] sm:$0xff]  ;;  %v3272_v59 = vld [vmem:[%s7276_s3 + $0x288] sm:$0xff]  ;;  %v438_v61 = vld [vmem:[%s5487_s23] sm:$0xff]  ;;  %v4511_v2 = vpack.c.bf16 %v3269_v58, %v3267_v57 }
  0x1f   : > { %4486 = vmatprep.subr.bf16.mxu0 %v4485_v22  ;;  %4504 = vmatpush1.bf16.msra.mxu1 %v4503_v44  ;;  %v3274_v60 = vld [vmem:[%s7276_s3 + $0x298] sm:$0xff]  ;;  %v4493_v63 = vpack.c.bf16 %v3250_v55, %v3248_v53  ;;  %v3247_v0 = vld [vmem:[%s7274_s1 + $0xa0] sm:$0xff]  ;;  %v3249_v1 = vld [vmem:[%s7274_s1 + $0xb0] sm:$0xff] }
  0x20   : > { %4506 = vmatprep.subr.bf16.mxu1 %v4505_v45  ;;  %v4513_v3 = vpack.c.bf16 %v3274_v60, %v3272_v59  ;;  %v3271_v4 = vld [vmem:[%s7276_s3 + $0x280] sm:$0xff]  ;;  %v3273_v5 = vld [vmem:[%s7276_s3 + $0x290] sm:$0xff]  ;;  %v3276_v6 = vld [vmem:[%s7276_s3 + $0x2a8] sm:$0xff]  ;;  %v4495_v10 = vpack.c.bf16 %v3249_v1, %v3247_v0  ;;  %v790_v60 = vlaneseq }
  0x21   : > { %3236 = vmatmul.mubr.msk.f32.gmra.mrb[2].mxu0 %vm463_vm0, %v451_v27  ;;  %v3278_v8 = vld [vmem:[%s7276_s3 + $0x2b8] sm:$0xff]  ;;  %v439_v9 = vld [vmem:[%s5487_s23 + $0x8] sm:$0xff]  ;;  %v4515_v11 = vpack.c.bf16 %v3273_v5, %v3271_v4  ;;  %v3275_v13 = vld [vmem:[%s7276_s3 + $0x2a0] sm:$0xff] }
  0x22   : > { %552 = vmatprep.mubr.f32.mxu0 %v5323_v7  ;;  %4488 = vmatpush1.bf16.msra.mxu0 %v4487_v28  ;;  %v4517_v12 = vpack.c.bf16 %v3278_v8, %v3276_v6  ;;  %v3277_v14 = vld [vmem:[%s7276_s3 + $0x2b0] sm:$0xff]  ;;  %v3280_v15 = vld [vmem:[%s7276_s3 + $0x2c8] sm:$0xff]  ;;  %v3282_v16 = vld [vmem:[%s7276_s3 + $0x2d8] sm:$0xff]  ;;  %vm818_vm1 = vcmp.lt.s32.totalorder %v790_v60, 256 }
  0x23   : > { %4490 = vmatprep.subr.bf16.mxu0 %v4489_v32  ;;  %4508 = vmatpush1.bf16.msra.mxu1 %v4507_v54  ;;  %v440_v17 = vld [vmem:[%s5487_s23 + $0x10] sm:$0xff]  ;;  %v4519_v18 = vpack.c.bf16 %v3277_v14, %v3275_v13  ;;  %v4521_v19 = vpack.c.bf16 %v3282_v16, %v3280_v15  ;;  %v3279_v20 = vld [vmem:[%s7276_s3 + $0x2c0] sm:$0xff]  ;;  %v3284_v22 = vld [vmem:[%s7276_s3 + $0x2e8] sm:$0xff]  ;;  %820 = vst.msk [vmem:[#allocation2] ss:$8 sm:$0x3] %vm818_vm1, %v5323_v7 }
  0x24   : > { %4510 = vmatprep.subr.bf16.mxu1 %v4509_v56  ;;  %v3281_v21 = vld [vmem:[%s7276_s3 + $0x2d0] sm:$0xff]  ;;  %v3286_v23 = vld [vmem:[%s7276_s3 + $0x2f8] sm:$0xff]  ;;  %v3283_v27 = vld [vmem:[%s7276_s3 + $0x2e0] sm:$0xff]  ;;  %823 = vst.msk [vmem:[#allocation2 + $0x35] ss:$8 sm:$0x3] %vm818_vm1, %v5323_v7 }
  0x25   : > { %3237 = vmatmul.mubr.msk.f32.gmra.mrb[4].mxu0 %vm463_vm0, %v452_v43  ;;  %v441_v24 = vld [vmem:[%s5487_s23 + $0x18] sm:$0xf]  ;;  %v4523_v25 = vpack.c.bf16 %v3281_v21, %v3279_v20  ;;  %v4525_v26 = vpack.c.bf16 %v3286_v23, %v3284_v22  ;;  %v3285_v28 = vld [vmem:[%s7276_s3 + $0x2f0] sm:$0xff]  ;;  %v3288_v29 = vld [vmem:[%s7276_s3 + $0x308] sm:$0xff]  ;;  %v5766_v23 = vshrl.u32 %v790_v60, 7 }
  0x26   : > { %558 = vmatprep.mubr.f32.mxu0 %v5323_v7  ;;  %v3290_v30 = vld [vmem:[%s7276_s3 + $0x318] sm:$0xff]  ;;  %v666_v31 = vld [vmem:[%s5487_s23 + $0x2] sm:$0xff]  ;;  %v4527_v32 = vpack.c.bf16 %v3285_v28, %v3283_v27  ;;  %v3289_v35 = vld [vmem:[%s7276_s3 + $0x310] sm:$0xff] }
  0x27   : > { %4512 = vmatpush1.bf16.msra.mxu1 %v4511_v2  ;;  %v4529_v33 = vpack.c.bf16 %v3290_v30, %v3288_v29  ;;  %v3287_v34 = vld [vmem:[%s7276_s3 + $0x300] sm:$0xff]  ;;  %v3292_v36 = vld [vmem:[%s7276_s3 + $0x328] sm:$0xff]  ;;  %v3294_v37 = vld [vmem:[%s7276_s3 + $0x338] sm:$0xff] }
  0x28   : > { %4514 = vmatprep.subr.bf16.mxu1 %v4513_v3  ;;  %v667_v38 = vld [vmem:[%s5487_s23 + $0xa] sm:$0xff]  ;;  %v4531_v39 = vpack.c.bf16 %v3289_v35, %v3287_v34  ;;  %v4533_v40 = vpack.c.bf16 %v3294_v37, %v3292_v36  ;;  %v3291_v41 = vld [vmem:[%s7276_s3 + $0x320] sm:$0xff]  ;;  %v668_v43 = vld [vmem:[%s5487_s23 + $0x12] sm:$0xff] }
  0x29   : > { %3238 = vmatmul.mubr.msk.f32.gmra.mrb[6].mxu0 %vm463_vm0, %v453_v50  ;;  %v3293_v42 = vld [vmem:[%s7276_s3 + $0x330] sm:$0xff]  ;;  %v669_v45 = vld [vmem:[%s5487_s23 + $0x1a] sm:$0xf]  ;;  %v3296_v46 = vld [vmem:[%s7276_s3 + $0x348] sm:$0xff]  ;;  %s431_s23 = sand.u32 1, %s5313_s26  }
  0x2a   : > { %641 = vmatprep.mubr.f32.mxu0 %v5323_v7  ;;  %v4535_v44 = vpack.c.bf16 %v3293_v42, %v3291_v41  ;;  %v3298_v47 = vld [vmem:[%s7276_s3 + $0x358] sm:$0xff]  ;;  %v3295_v49 = vld [vmem:[%s7276_s3 + $0x340] sm:$0xff]  ;;  %v3297_v50 = vld [vmem:[%s7276_s3 + $0x350] sm:$0xff]  ;;  %s432_s21 = scalar_lea.vmem [#allocation7], %s431_s23  ;;  %s3154_s19 = scalar_lea.sflag [#allocation8], %s431_s23 }
  0x2b   : > { %4516 = vmatpush1.bf16.msra.mxu1 %v4515_v11  ;;  %v4537_v48 = vpack.c.bf16 %v3298_v47, %v3296_v46  ;;  %v4539_v51 = vpack.c.bf16 %v3297_v50, %v3295_v49  ;;  %v3300_v52 = vld [vmem:[%s7276_s3 + $0x368] sm:$0xff]  ;;  %v3302_v53 = vld [vmem:[%s7276_s3 + $0x378] sm:$0xff]  ;;  %v3299_v55 = vld [vmem:[%s7276_s3 + $0x360] sm:$0xff]  ;;  %s3166_s22 = sshll.u32 %s432_s21, 4  ;;  %s7233_s22 = int_to_ptr.vmem [resolvable:$true] %s3166_s22 }
  0x2c   : > { %4518 = vmatprep.subr.bf16.mxu1 %v4517_v12  ;;  %v4541_v54 = vpack.c.bf16 %v3302_v53, %v3300_v52  ;;  %v3301_v56 = vld [vmem:[%s7276_s3 + $0x370] sm:$0xff]  ;;  %v3304_v58 = vld [vmem:[%s7276_s3 + $0x388] sm:$0xff]  ;;  %v3306_v59 = vld [vmem:[%s7276_s3 + $0x398] sm:$0xff]  ;;  %s5259_s15 = scalar_lea.vmem %s7233_s22, 16  ;;  %p5266_p0 = scmp.lt.s32.totalorder %s7233_s22, %s5264_s16 }
  0x2d   : > { %3239 = vmatmul.mubr.msk.f32.vlgmr.msra.gmra.mrb[0].mxu0 %vm463_vm0, %v438_v61  ;;  %v4543_v57 = vpack.c.bf16 %v3301_v56, %v3299_v55  ;;  %v4545_v61 = vpack.c.bf16 %v3306_v59, %v3304_v58  ;;  %v3308_v1 = vld [vmem:[%s7276_s3 + $0x3a8] sm:$0xff]  ;;  %v3310_v2 = vld [vmem:[%s7276_s3 + $0x3b8] sm:$0xff]  ;;  %v3307_v4 = vld [vmem:[%s7276_s3 + $0x3a0] sm:$0xff]  ;;  %p5260_p11 = scmp.ne.s32.totalorder %s7233_s22, %s5259_s15  ;;  %p5267_p1 = scmp.lt.s32.totalorder %s5265_s20, %s5259_s15 }
  0x2e   : > { %4492 = vmatpush1.bf16.msra.mxu0 %v4491_v62  ;;  %647 = vmatprep.mubr.f32.mxu0 %v5323_v7  ;;  %v3303_v62 = vld [vmem:[%s7276_s3 + $0x380] sm:$0xff]  ;;  %v4549_v3 = vpack.c.bf16 %v3310_v2, %v3308_v1  ;;  %v3309_v5 = vld [vmem:[%s7276_s3 + $0x3b0] sm:$0xff]  ;;  %v3312_v8 = vld [vmem:[%s7276_s3 + $0x3c8] sm:$0xff] }
  0x2f   : > { %4494 = vmatprep.subr.bf16.mxu0 %v4493_v63  ;;  %4520 = vmatpush1.bf16.msra.mxu1 %v4519_v18  ;;  %v3305_v63 = vld [vmem:[%s7276_s3 + $0x390] sm:$0xff]  ;;  %v4551_v6 = vpack.c.bf16 %v3309_v5, %v3307_v4  ;;  %v3311_v11 = vld [vmem:[%s7276_s3 + $0x3c0] sm:$0xff]  ;;  %v3316_v14 = vld [vmem:[%s7276_s3 + $0x3e8] sm:$0xff]  ;;  %p5261_p12 = pnand %p5260_p11, %p5435_p5  ;;  %p5268_p2 = por %p5267_p1, %p5266_p0 }
  0x30   : > { %4522 = vmatprep.subr.bf16.mxu1 %v4521_v19  ;;  %v4547_v0 = vpack.c.bf16 %v3305_v63, %v3303_v62  ;;  %v3313_v12 = vld [vmem:[%s7276_s3 + $0x3d0] sm:$0xff]  ;;  %v3318_v15 = vld [vmem:[%s7276_s3 + $0x3f8] sm:$0xff]  ;;  %v873_v20 = vld [vmem:[%s7276_s3 + $0x8] sm:$0xff] }
  0x31   : > { %3240 = vmatmul.mubr.msk.f32.gmra.mrb[2].mxu0 %vm463_vm0, %v439_v9  ;;  %v3314_v9 = vld [vmem:[%s7276_s3 + $0x3d8] sm:$0xff]  ;;  %v4555_v13 = vpack.c.bf16 %v3313_v12, %v3311_v11  ;;  %v4557_v16 = vpack.c.bf16 %v3318_v15, %v3316_v14  ;;  %v3317_v18 = vld [vmem:[%s7276_s3 + $0x3f0] sm:$0xff]  ;;  %v872_v60 = vld [vmem:[%s7276_s3] sm:$0xff]  ;;  %p5262_p13 = pneg %p5261_p12 }
  0x32   : > { %653 = vmatprep.mubr.f32.mxu0 %v5323_v7  ;;  %4496 = vmatpush1.bf16.msra.mxu0 %v4495_v10  ;;  %v4553_v10 = vpack.c.bf16 %v3314_v9, %v3312_v8  ;;  %v875_v21 = vld [vmem:[%s7276_s3 + $0x18] sm:$0xff]  ;;  %v877_v2 = vld [vmem:[%s7276_s3 + $0x28] sm:$0xff] }
  0x33   : > { %4524 = vmatpush1.bf16.msra.mxu1 %v4523_v25  ;;  %v4561_v22 = vpack.c.bf16 %v875_v21, %v873_v20  ;;  %v788_v25 = vld [vmem:[%s7275_s2] sm:$0x3]  ;;  %p5269_p3 = pnand %p5268_p2, %p5262_p13 }
  0x34   : > { %4526 = vmatprep.subr.bf16.mxu1 %v4525_v26  ;;  %v796_v26 = vsub.s32 1, %v5766_v23 }
  0x35   : > { %3241 = vmatmul.mubr.msk.f32.gmra.mrb[4].mxu0 %vm463_vm0, %v440_v17  ;;  %v3315_v17 = vld [vmem:[%s7276_s3 + $0x3e0] sm:$0xff] }
  0x36   : > { %659 = vmatprep.mubr.f32.mxu0 %v5323_v7  ;;  %v4559_v19 = vpack.c.bf16 %v3317_v18, %v3315_v17  ;;  %v797_v28 = vrot.slane %v788_v25, %v796_v26  ;;  %v878_v17 = vld [vmem:[%s7276_s3 + $0x30] sm:$0xff] }
  0x37   : > { %4528 = vmatpush1.bf16.msra.mxu1 %v4527_v32 }
  0x38   : > { %4530 = vmatprep.subr.bf16.mxu1 %v4529_v33 }
  0x39   : > { %3242 = vmatmul.mubr.msk.f32.gmra.mrb[6].mxu0 %vm463_vm0, %v441_v24  ;;  %v792_v24 = vsub.s32 0, %v5766_v23  ;;  %v3402_v23 = vld [vmem:[%s7278_s5 + $0x198] sm:$0xff] }
  0x3a   : > { %755 = vmatprep.mubr.f32.mxu0 %v5323_v7 }
  0x3b   : > { %4532 = vmatpush1.bf16.msra.mxu1 %v4531_v39  ;;  %v793_v27 = vrot.slane %v788_v25, %v792_v24  ;;  %v883_v25 = vld [vmem:[%s7276_s3 + $0x58] sm:$0xff] }
  0x3c   : > { %4534 = vmatprep.subr.bf16.mxu1 %v4533_v40 }
  0x3d   : > { %3251 = vmatmul.mubr.msk.f32.vlgmr.msra.gmra.mrb[0].mxu0 %vm463_vm0, %v666_v31 }
  0x3e   : > { %761 = vmatprep.mubr.f32.mxu0 %v5323_v7 }
  0x3f   : > { %4536 = vmatpush1.bf16.msra.mxu1 %v4535_v44 }
  0x40   : > { %4538 = vmatprep.subr.bf16.mxu1 %v4537_v48 }
  0x41   : > { %3252 = vmatmul.mubr.msk.f32.gmra.mrb[2].mxu0 %vm463_vm0, %v667_v38 }
  0x42   : > { %767 = vmatprep.mubr.f32.mxu0 %v5323_v7 }
  0x43   : > { %4540 = vmatpush1.bf16.msra.mxu1 %v4539_v51 }
  0x44   : > { %4542 = vmatprep.subr.bf16.mxu1 %v4541_v54 }
  0x45   : > { %3253 = vmatmul.mubr.msk.f32.gmra.mrb[4].mxu0 %vm463_vm0, %v668_v43 }
  0x46   : > { %773 = vmatprep.mubr.f32.mxu0 %v5323_v7 }
  0x47   : > { %4544 = vmatpush1.bf16.msra.mxu1 %v4543_v57 }
  0x48   : > { %4546 = vmatprep.subr.bf16.mxu1 %v4545_v61  ;;  %v874_v61 = vld [vmem:[%s7276_s3 + $0x10] sm:$0xff] }
  0x49   : > { %3254 = vmatmul.mubr.msk.f32.gmra.mrb[6].mxu0 %vm463_vm0, %v669_v45  ;;  %v4563_v11 = vpack.c.bf16 %v874_v61, %v872_v60 }
  0x4b   : > { %4548 = vmatpush1.bf16.msra.mxu1 %v4547_v0 }
  0x4c   : > { %4550 = vmatprep.subr.bf16.mxu1 %v4549_v3  ;;  %v879_v3 = vld [vmem:[%s7276_s3 + $0x38] sm:$0xff] }
  0x4d   : > { %v4565_v15 = vpack.c.bf16 %v879_v3, %v877_v2 }
  0x4f   : > { %4552 = vmatpush1.bf16.msra.mxu1 %v4551_v6 }
  0x50   : > { %4554 = vmatprep.subr.bf16.mxu1 %v4553_v10 }
  0x53   : > { %4556 = vmatpush1.bf16.msra.mxu1 %v4555_v13 }
  0x54   : > { %4558 = vmatprep.subr.bf16.mxu1 %v4557_v16  ;;  %v876_v16 = vld [vmem:[%s7276_s3 + $0x20] sm:$0xff] }
  0x57   : > { %4560 = vmatpush1.bf16.msra.mxu1 %v4559_v19 }
  0x58   : > { %4562 = vmatprep.subr.bf16.mxu1 %v4561_v22  ;;  %v881_v22 = vld [vmem:[%s7276_s3 + $0x48] sm:$0xff] }
 0x110   : > { %v757_v29 = vpop.f32.mrb[0].mxu0 }
 0x111   : > { %v800_v30 = vadd.f32 %v793_v27, %v757_v29  ;;  %v759_v31 = vpop.f32.mrb[1].mxu0  ;;  %v4569_v29 = vpack.c.bf16 %v883_v25, %v881_v22  ;;  %v1457_v22 = vld [vmem:[%s7278_s5 + $0xb0] sm:$0xff]  ;;  %v1458_v25 = vld [vmem:[%s7278_s5 + $0xb8] sm:$0xff] }
 0x112   : > { %v801_v32 = vadd.f32 %v797_v28, %v759_v31  ;;  %v882_v31 = vld [vmem:[%s7276_s3 + $0x50] sm:$0xff] }
 0x113   : > { %v808_v33 = vmax.f32 %v800_v30, 0.0  ;;  %v880_v30 = vld [vmem:[%s7276_s3 + $0x40] sm:$0xff] }
 0x114   : > { %v809_v34 = vmax.f32 %v801_v32, 0.0  ;;  %v763_v35 = vpop.f32.mrb[2].mxu0 }
 0x115   : > { %v834_v36 = vrot.slane %v808_v33, 7  ;;  %v802_v37 = vadd.f32 %v793_v27, %v763_v35  ;;  %v765_v38 = vpop.f32.mrb[3].mxu0  ;;  %v885_v33 = vld [vmem:[%s7276_s3 + $0x68] sm:$0xff]  ;;  %v4571_v35 = vpack.c.bf16 %v882_v31, %v880_v30  ;;  %v900_v31 = vld [vmem:[%s7276_s3 + $0xe0] sm:$0xff] }
 0x116   : > { %v835_v39 = vrot.slane %v809_v34, 7  ;;  %v803_v40 = vadd.f32 %v797_v28, %v765_v38  ;;  %v887_v34 = vld [vmem:[%s7276_s3 + $0x78] sm:$0xff]  ;;  %v884_v38 = vld [vmem:[%s7276_s3 + $0x60] sm:$0xff] }
 0x117   : > { %856 = vst [vmem:[#allocation2] sm:$0xfe] %v834_v36  ;;  %v810_v41 = vmax.f32 %v802_v37, 0.0 }
 0x118   : > { %857 = vst [vmem:[#allocation2 + $0x8] sm:$0xfe] %v835_v39  ;;  %v811_v42 = vmax.f32 %v803_v40, 0.0  ;;  %v769_v43 = vpop.f32.mrb[4].mxu0 }
 0x119   : > { %v836_v44 = vrot.slane %v810_v41, 7  ;;  %v804_v45 = vadd.f32 %v793_v27, %v769_v43  ;;  %v771_v46 = vpop.f32.mrb[5].mxu0  ;;  %v891_v43 = vld [vmem:[%s7276_s3 + $0x98] sm:$0xff] }
 0x11a   : > { %v838_v47 = vrot.slane %v811_v42, 7  ;;  %v805_v48 = vadd.f32 %v797_v28, %v771_v46  ;;  %v889_v42 = vld [vmem:[%s7276_s3 + $0x88] sm:$0xff] }
 0x11b   : > { %v5778_v49 = vsel %vm833_vm2, %v834_v36, %v836_v44  ;;  %v812_v50 = vmax.f32 %v804_v45, 0.0  ;;  %v4573_v36 = vpack.c.bf16 %v887_v34, %v885_v33  ;;  %v1441_v33 = vld [vmem:[%s7278_s5 + $0x30] sm:$0xff]  ;;  %v1442_v34 = vld [vmem:[%s7278_s5 + $0x38] sm:$0xff] }
 0x11c   : > { %v5781_v51 = vsel %vm833_vm2, %v835_v39, %v838_v47  ;;  %v813_v52 = vmax.f32 %v805_v48, 0.0  ;;  %v775_v53 = vpop.f32.mrb[6].mxu0  ;;  %v1015_v10 = vrot.slane %v5778_v49, 1  ;;  %v886_v39 = vld [vmem:[%s7276_s3 + $0x70] sm:$0xff]  ;;  %v888_v48 = vld [vmem:[%s7276_s3 + $0x80] sm:$0xff] }
 0x11d   : > { %v840_v54 = vrot.slane %v812_v50, 7  ;;  %v806_v55 = vadd.f32 %v793_v27, %v775_v53  ;;  %v777_v56 = vpop.f32.mrb[7].mxu0  ;;  %v1018_v8 = vrot.slane %v5781_v51, 1  ;;  %v4575_v45 = vpack.c.bf16 %v886_v39, %v884_v38  ;;  %v890_v50 = vld [vmem:[%s7276_s3 + $0x90] sm:$0xff]  ;;  %v893_v53 = vld [vmem:[%s7276_s3 + $0xa8] sm:$0xff] }
 0x11e   : > { %v842_v57 = vrot.slane %v813_v52, 7  ;;  %v807_v58 = vadd.f32 %v797_v28, %v777_v56  ;;  %v936_v59 = vld [vmem:[#allocation2] sm:$0xfe]  ;;  %v4567_v28 = vpack.c.bf16 %v878_v17, %v876_v16  ;;  %v894_v56 = vld [vmem:[%s7276_s3 + $0xb0] sm:$0xff]  ;;  %v4579_v60 = vpack.c.bf16 %v890_v50, %v888_v48  ;;  %v1460_v38 = vld [vmem:[%s7278_s5 + $0xc8] sm:$0xff] }
 0x11f   : > { %v5790_v62 = vsel %vm833_vm2, %v836_v44, %v840_v54  ;;  %v814_v63 = vmax.f32 %v806_v55, 0.0  ;;  %v937_v0 = vld [vmem:[#allocation2 + $0x8] sm:$0xfe]  ;;  %v1014_v1 = vrot.slane %v936_v59, 1  ;;  %v892_v55 = vld [vmem:[%s7276_s3 + $0xa0] sm:$0xff]  ;;  %v906_v48 = vld [vmem:[%s7276_s3 + $0x110] sm:$0xff] }
 0x120   : > { %v5799_v4 = vsel %vm833_vm2, %v838_v47, %v842_v57  ;;  %v815_v5 = vmax.f32 %v807_v58, 0.0  ;;  %v1017_v6 = vrot.slane %v937_v0, 1  ;;  %v1020_v21 = vrot.slane %v5790_v62, 1  ;;  %v1452_v58 = vld [vmem:[%s7278_s5 + $0x88] sm:$0xff]  ;;  %v1435_v59 = vld [vmem:[%s7278_s5] sm:$0xff]  ;;  %v1453_v0 = vld [vmem:[%s7278_s5 + $0x90] sm:$0xff] }
 0x121   : > { %v844_v9 = vrot.slane %v814_v63, 7  ;;  %v1022_v12 = vrot.slane %v5799_v4, 1  ;;  %v1016_v19 = vsel %vm1013_vm3, %v1014_v1, %v1015_v10  ;;  %v4577_v47 = vpack.c.bf16 %v891_v43, %v889_v42  ;;  %v1436_v63 = vld [vmem:[%s7278_s5 + $0x8] sm:$0xff]  ;;  %v1454_v1 = vld [vmem:[%s7278_s5 + $0x98] sm:$0xff]  ;;  %v896_v16 = vld [vmem:[%s7276_s3 + $0xc0] sm:$0xff] }
 0x122   : > { %v846_v13 = vrot.slane %v815_v5, 7  ;;  %v1019_v14 = vsel %vm1013_vm3, %v1017_v6, %v1018_v8  ;;  %v1021_v32 = vsel %vm1013_vm3, %v1015_v10, %v1020_v21  ;;  %v4691_v3 = vpack.c.bf16 %v1436_v63, %v1435_v59  ;;  %v1437_v6 = vld [vmem:[%s7278_s5 + $0x10] sm:$0xff]  ;;  %v897_v10 = vld [vmem:[%s7276_s3 + $0xc8] sm:$0xff]  ;;  %v904_v43 = vld [vmem:[%s7276_s3 + $0x100] sm:$0xff] }
 0x123   : > { %v845_v18 = vsel %vm833_vm2, %v840_v54, %v844_v9  ;;  %1100 = vmatprep.mubr.f32.mxu1 %v1019_v14  ;;  %v1023_v20 = vsel %vm1013_vm3, %v1018_v8, %v1022_v12  ;;  %v895_v54 = vld [vmem:[%s7276_s3 + $0xb8] sm:$0xff]  ;;  %v4693_v5 = vpack.c.bf16 %v1454_v1, %v1453_v0  ;;  %v1455_v9 = vld [vmem:[%s7278_s5 + $0xa0] sm:$0xff]  ;;  %v905_v39 = vld [vmem:[%s7276_s3 + $0x108] sm:$0xff] }
 0x124   : > { %862 = vst [vmem:[#allocation2 + $0x30] sm:$0x1f] %v845_v18  ;;  %v847_v27 = vsel %vm833_vm2, %v842_v57, %v846_v13  ;;  %1101 = vmatmul.mubr.f32.vlgmr.msra.gmra.mrb[0].mxu1 %v1016_v19  ;;  %v1451_v57 = vld [vmem:[%s7278_s5 + $0x80] sm:$0xff]  ;;  %v4581_v2 = vpack.c.bf16 %v895_v54, %v893_v53  ;;  %v1438_v8 = vld [vmem:[%s7278_s5 + $0x18] sm:$0xff]  ;;  %v865_v13 = vld [vmem:[#allocation2 + $0x8] sm:$0xff] }
 0x125   : > { %863 = vst [vmem:[#allocation2 + $0x38] sm:$0x1f] %v847_v27  ;;  %4564 = vmatpush1.bf16.msra.mxu1 %v4563_v11  ;;  %1106 = vmatprep.mubr.f32.mxu1 %v1023_v20  ;;  %v4689_v61 = vpack.c.bf16 %v1452_v58, %v1451_v57  ;;  %v899_v11 = vld [vmem:[%s7276_s3 + $0xd8] sm:$0xff]  ;;  %v4695_v14 = vpack.c.bf16 %v1438_v8, %v1437_v6  ;;  %v1439_v18 = vld [vmem:[%s7278_s5 + $0x20] sm:$0xff]  ;;  %v1440_v19 = vld [vmem:[%s7278_s5 + $0x28] sm:$0xff] }
 0x126   : > { %4566 = vmatprep.subr.bf16.mxu1 %v4565_v15  ;;  %v4583_v15 = vpack.c.bf16 %v894_v56, %v892_v55  ;;  %v4585_v20 = vpack.c.bf16 %v899_v11, %v897_v10  ;;  %v901_v27 = vld [vmem:[%s7276_s3 + $0xe8] sm:$0xff]  ;;  %v1461_v50 = vld [vmem:[%s7278_s5 + $0xd0] sm:$0xff]  ;;  %v911_v54 = vld [vmem:[%s7276_s3 + $0x138] sm:$0xff]  ;;  %v4595_v56 = vpack.c.bf16 %v906_v48, %v904_v43 }
 0x127   : > { %4690 = vmatprep.subr.bf16.mxu0 %v4689_v61  ;;  %v909_v53 = vld [vmem:[%s7276_s3 + $0x128] sm:$0xff]  ;;  %v908_v57 = vld [vmem:[%s7276_s3 + $0x120] sm:$0xff]  ;;  %v1445_v59 = vld [vmem:[%s7278_s5 + $0x50] sm:$0xff] }
 0x128   : > { %1107 = vmatmul.mubr.f32.gmra.mrb[2].mxu1 %v1021_v32  ;;  %4692 = vmatpush3.bf16.msra.mxu0 %v4691_v3  ;;  %v4701_v32 = vpack.c.bf16 %v1458_v25, %v1457_v22  ;;  %v4597_v61 = vpack.c.bf16 %v911_v54, %v909_v53  ;;  %v910_v63 = vld [vmem:[%s7276_s3 + $0x130] sm:$0xff]  ;;  %v1463_v0 = vld [vmem:[%s7278_s5 + $0xe0] sm:$0xff]  ;;  %v1464_v1 = vld [vmem:[%s7278_s5 + $0xe8] sm:$0xff] }
 0x129   : > { %4568 = vmatpush1.bf16.msra.mxu1 %v4567_v28  ;;  %4694 = vmatprep.subr.bf16.mxu0 %v4693_v5  ;;  %v903_v28 = vld [vmem:[%s7276_s3 + $0xf8] sm:$0xff]  ;;  %v4599_v6 = vpack.c.bf16 %v910_v63, %v908_v57  ;;  %v4713_v8 = vpack.c.bf16 %v1464_v1, %v1463_v0  ;;  %v1448_v10 = vld [vmem:[%s7278_s5 + $0x68] sm:$0xff]  ;;  %v3319_v54 = vld [vmem:[%s7276_s3 + $0x400] sm:$0xff] }
 0x12a   : > { %4570 = vmatprep.subr.bf16.mxu1 %v4569_v29  ;;  %v4699_v29 = vpack.c.bf16 %v1440_v19, %v1439_v18  ;;  %v915_v3 = vld [vmem:[%s7276_s3 + $0x158] sm:$0xff]  ;;  %v916_v19 = vld [vmem:[%s7276_s3 + $0x160] sm:$0xff]  ;;  %v3320_v48 = vld [vmem:[%s7276_s3 + $0x408] sm:$0xff] }
 0x12b   : > { %v938_v37 = vld [vmem:[#allocation2 + $0x30] sm:$0x1f]  ;;  %v923_v22 = vld [vmem:[%s7276_s3 + $0x198] sm:$0xff]  ;;  %v864_v63 = vld [vmem:[#allocation2] sm:$0xff] }
 0x12c   : > { %v939_v40 = vld [vmem:[#allocation2 + $0x38] sm:$0x1f]  ;;  %v1024_v41 = vrot.slane %v938_v37, 1  ;;  %4696 = vmatpush3.bf16.msra.mxu0 %v4695_v14  ;;  %v1459_v37 = vld [vmem:[%s7278_s5 + $0xc0] sm:$0xff]  ;;  %v917_v14 = vld [vmem:[%s7276_s3 + $0x168] sm:$0xff] }
 0x12d   : > { %v1026_v44 = vrot.slane %v939_v40, 1  ;;  %4572 = vmatpush1.bf16.msra.mxu1 %v4571_v35  ;;  %v4589_v35 = vpack.c.bf16 %v903_v28, %v901_v27  ;;  %v907_v40 = vld [vmem:[%s7276_s3 + $0x118] sm:$0xff]  ;;  %v920_v28 = vld [vmem:[%s7276_s3 + $0x180] sm:$0xff]  ;;  %v3328_v0 = vld [vmem:[%s7276_s3 + $0x448] sm:$0xff] }
 0x12e   : > { %4574 = vmatprep.subr.bf16.mxu1 %v4573_v36  ;;  %v1025_v52 = vsel %vm1013_vm3, %v1020_v21, %v1024_v41  ;;  %v898_v21 = vld [vmem:[%s7276_s3 + $0xd0] sm:$0xff]  ;;  %v935_v43 = vld [vmem:[%s7276_s3 + $0x1f8] sm:$0xff] }
 0x12f   : > { %v1027_v46 = vsel %vm1013_vm3, %v1022_v12, %v1026_v44  ;;  %v1456_v12 = vld [vmem:[%s7278_s5 + $0xa8] sm:$0xff]  ;;  %v4587_v30 = vpack.c.bf16 %v898_v21, %v896_v16  ;;  %v902_v36 = vld [vmem:[%s7276_s3 + $0xf0] sm:$0xff]  ;;  %v3326_v57 = vld [vmem:[%s7276_s3 + $0x438] sm:$0xff] }
 0x130   : > { %1112 = vmatprep.mubr.f32.mxu1 %v1027_v46  ;;  %v4697_v17 = vpack.c.bf16 %v1456_v12, %v1455_v9  ;;  %v4591_v42 = vpack.c.bf16 %v902_v36, %v900_v31  ;;  %v1444_v46 = vld [vmem:[%s7278_s5 + $0x48] sm:$0xff]  ;;  %v1447_v9 = vld [vmem:[%s7278_s5 + $0x60] sm:$0xff]  ;;  %v927_v31 = vld [vmem:[%s7276_s3 + $0x1b8] sm:$0xff] }
 0x131   : > { %1113 = vmatmul.mubr.f32.gmra.mrb[4].mxu1 %v1025_v52  ;;  %v1462_v52 = vld [vmem:[%s7278_s5 + $0xd8] sm:$0xff]  ;;  %v912_v12 = vld [vmem:[%s7276_s3 + $0x140] sm:$0xff]  ;;  %v4715_v16 = vpack.c.bf16 %v1448_v10, %v1447_v9  ;;  %v921_v21 = vld [vmem:[%s7276_s3 + $0x188] sm:$0xff] }
 0x132   : > { %1118 = vmatprep.mubr.f32.mxu1 %v1026_v44  ;;  %4576 = vmatpush1.bf16.msra.mxu1 %v4575_v45  ;;  %v4705_v44 = vpack.c.bf16 %v1460_v38, %v1459_v37  ;;  %v1443_v45 = vld [vmem:[%s7278_s5 + $0x40] sm:$0xff]  ;;  %v4709_v58 = vpack.c.bf16 %v1462_v52, %v1461_v50  ;;  %v4609_v27 = vpack.c.bf16 %v923_v22, %v921_v21  ;;  %v929_v36 = vld [vmem:[%s7276_s3 + $0x1c8] sm:$0xff]  ;;  %v931_v37 = vld [vmem:[%s7276_s3 + $0x1d8] sm:$0xff] }
 0x133   : > { %4578 = vmatprep.subr.bf16.mxu1 %v4577_v47  ;;  %4698 = vmatprep.subr.bf16.mxu0 %v4697_v17  ;;  %v4593_v47 = vpack.c.bf16 %v907_v40, %v905_v39  ;;  %v4707_v55 = vpack.c.bf16 %v1444_v46, %v1443_v45  ;;  %v4617_v39 = vpack.c.bf16 %v931_v37, %v929_v36  ;;  %v928_v40 = vld [vmem:[%s7276_s3 + $0x1c0] sm:$0xff]  ;;  %v3322_v50 = vld [vmem:[%s7276_s3 + $0x418] sm:$0xff] }
 0x134   : > { %4700 = vmatpush3.bf16.msra.mxu0 %v4699_v29  ;;  %v922_v29 = vld [vmem:[%s7276_s3 + $0x190] sm:$0xff]  ;;  %v932_v46 = vld [vmem:[%s7276_s3 + $0x1e0] sm:$0xff]  ;;  %v4625_v53 = vpack.c.bf16 %v3322_v50, %v3320_v48  ;;  %v3330_v1 = vld [vmem:[%s7276_s3 + $0x458] sm:$0xff] }
 0x135   : > { %1119 = vmatmul.mubr.f32.gmra.mrb[6].mxu1 %v1024_v41  ;;  %v4703_v41 = vpack.c.bf16 %v1442_v34, %v1441_v33  ;;  %4702 = vmatprep.subr.bf16.mxu0 %v4701_v32  ;;  %v4611_v32 = vpack.c.bf16 %v922_v29, %v920_v28  ;;  %v924_v34 = vld [vmem:[%s7276_s3 + $0x1a0] sm:$0xff]  ;;  %v3334_v9 = vld [vmem:[%s7276_s3 + $0x478] sm:$0xff]  ;;  %v3340_v28 = vld [vmem:[%s7276_s3 + $0x4a8] sm:$0xff] }
 0x136   : > { %1189 = vmatprep.mubr.f32.mxu1 %v865_v13  ;;  %4580 = vmatpush1.bf16.msra.mxu1 %v4579_v60  ;;  %v1446_v60 = vld [vmem:[%s7278_s5 + $0x58] sm:$0xff]  ;;  %v914_v13 = vld [vmem:[%s7276_s3 + $0x150] sm:$0xff]  ;;  %v3335_v22 = vld [vmem:[%s7276_s3 + $0x480] sm:$0xff] }
 0x137   : > { %4582 = vmatprep.subr.bf16.mxu1 %v4581_v2  ;;  %v913_v2 = vld [vmem:[%s7276_s3 + $0x148] sm:$0xff]  ;;  %v4711_v5 = vpack.c.bf16 %v1446_v60, %v1445_v59  ;;  %v4603_v17 = vpack.c.bf16 %v914_v13, %v912_v12  ;;  %v3323_v60 = vld [vmem:[%s7276_s3 + $0x420] sm:$0xff]  ;;  %v3342_v29 = vld [vmem:[%s7276_s3 + $0x4b8] sm:$0xff] }
 0x138   : > { %4704 = vmatpush3.bf16.msra.mxu0 %v4703_v41  ;;  %v4601_v11 = vpack.c.bf16 %v915_v3, %v913_v2  ;;  %v930_v41 = vld [vmem:[%s7276_s3 + $0x1d0] sm:$0xff]  ;;  %v4633_v3 = vpack.c.bf16 %v3330_v1, %v3328_v0  ;;  %v3331_v13 = vld [vmem:[%s7276_s3 + $0x460] sm:$0xff]  ;;  %v3346_v36 = vld [vmem:[%s7276_s3 + $0x4d8] sm:$0xff] }
 0x139   : > { %4706 = vmatprep.subr.bf16.mxu0 %v4705_v44  ;;  %v4619_v44 = vpack.c.bf16 %v930_v41, %v928_v40  ;;  %v3345_v40 = vld [vmem:[%s7276_s3 + $0x4d0] sm:$0xff]  ;;  %v3348_v41 = vld [vmem:[%s7276_s3 + $0x4e8] sm:$0xff]  ;;  %v3354_v48 = vld [vmem:[%s7276_s3 + $0x518] sm:$0xff] }
 0x13a   : > { %4584 = vmatpush1.bf16.msra.mxu1 %v4583_v15  ;;  %v919_v15 = vld [vmem:[%s7276_s3 + $0x178] sm:$0xff] }
 0x13b   : > { %4586 = vmatprep.subr.bf16.mxu1 %v4585_v20  ;;  %v4605_v18 = vpack.c.bf16 %v919_v15, %v917_v14  ;;  %v918_v20 = vld [vmem:[%s7276_s3 + $0x170] sm:$0xff]  ;;  %v3336_v15 = vld [vmem:[%s7276_s3 + $0x488] sm:$0xff] }
 0x13c   : > { %4708 = vmatpush3.bf16.msra.mxu0 %v4707_v55  ;;  %v4607_v25 = vpack.c.bf16 %v918_v20, %v916_v19  ;;  %v3321_v55 = vld [vmem:[%s7276_s3 + $0x410] sm:$0xff]  ;;  %v1292_v20 = vrot.slane %v5781_v51, 2 }
 0x13d   : > { %4710 = vmatprep.subr.bf16.mxu0 %v4709_v58  ;;  %v4627_v58 = vpack.c.bf16 %v3321_v55, %v3319_v54  ;;  %v3333_v14 = vld [vmem:[%s7276_s3 + $0x470] sm:$0xff]  ;;  %v3356_v55 = vld [vmem:[%s7276_s3 + $0x528] sm:$0xff] }
 0x13e   : > { %4588 = vmatpush1.bf16.msra.mxu1 %v4587_v30  ;;  %v925_v30 = vld [vmem:[%s7276_s3 + $0x1a8] sm:$0xff]  ;;  %v4639_v19 = vpack.c.bf16 %v3333_v14, %v3331_v13  ;;  %v3353_v54 = vld [vmem:[%s7276_s3 + $0x510] sm:$0xff]  ;;  %v3370_v13 = vld [vmem:[%s7276_s3 + $0x598] sm:$0xff] }
 0x13f   : > { %4590 = vmatprep.subr.bf16.mxu1 %v4589_v35  ;;  %v4613_v33 = vpack.c.bf16 %v927_v31, %v925_v30  ;;  %v926_v35 = vld [vmem:[%s7276_s3 + $0x1b0] sm:$0xff] }
 0x140   : > { %4712 = vmatpush3.bf16.msra.mxu0 %v4711_v5  ;;  %v4615_v38 = vpack.c.bf16 %v926_v35, %v924_v34  ;;  %v3327_v5 = vld [vmem:[%s7276_s3 + $0x440] sm:$0xff]  ;;  %v3341_v34 = vld [vmem:[%s7276_s3 + $0x4b0] sm:$0xff]  ;;  %v3344_v35 = vld [vmem:[%s7276_s3 + $0x4c8] sm:$0xff] }
 0x141   : > { %4714 = vmatprep.subr.bf16.mxu0 %v4713_v8  ;;  %v3332_v8 = vld [vmem:[%s7276_s3 + $0x468] sm:$0xff] }
 0x142   : > { %4592 = vmatpush1.bf16.msra.mxu1 %v4591_v42  ;;  %v933_v42 = vld [vmem:[%s7276_s3 + $0x1e8] sm:$0xff]  ;;  %v4637_v12 = vpack.c.bf16 %v3334_v9, %v3332_v8 }
 0x143   : > { %4594 = vmatprep.subr.bf16.mxu1 %v4593_v47  ;;  %v4621_v45 = vpack.c.bf16 %v935_v43, %v933_v42  ;;  %v934_v47 = vld [vmem:[%s7276_s3 + $0x1f0] sm:$0xff]  ;;  %v3350_v42 = vld [vmem:[%s7276_s3 + $0x4f8] sm:$0xff] }
 0x144   : > { %4716 = vmatpush3.bf16.msra.mxu0 %v4715_v16  ;;  %v4623_v52 = vpack.c.bf16 %v934_v47, %v932_v46  ;;  %v3338_v16 = vld [vmem:[%s7276_s3 + $0x498] sm:$0xff]  ;;  %v3349_v46 = vld [vmem:[%s7276_s3 + $0x4f0] sm:$0xff]  ;;  %v3352_v47 = vld [vmem:[%s7276_s3 + $0x508] sm:$0xff] }
 0x145   : > { %v4641_v21 = vpack.c.bf16 %v3338_v16, %v3336_v15  ;;  %v3367_v16 = vld [vmem:[%s7276_s3 + $0x580] sm:$0xff] }
 0x146   : > { %4596 = vmatpush1.bf16.msra.mxu1 %v4595_v56  ;;  %v3324_v56 = vld [vmem:[%s7276_s3 + $0x428] sm:$0xff] }
 0x147   : > { %4598 = vmatprep.subr.bf16.mxu1 %v4597_v61  ;;  %v4629_v59 = vpack.c.bf16 %v3326_v57, %v3324_v56  ;;  %v3325_v61 = vld [vmem:[%s7276_s3 + $0x430] sm:$0xff]  ;;  %v3358_v56 = vld [vmem:[%s7276_s3 + $0x538] sm:$0xff] }
 0x148   : > { %v4631_v2 = vpack.c.bf16 %v3325_v61, %v3323_v60  ;;  %v3357_v60 = vld [vmem:[%s7276_s3 + $0x530] sm:$0xff]  ;;  %v3360_v61 = vld [vmem:[%s7276_s3 + $0x548] sm:$0xff] }
 0x14a   : > { %4600 = vmatpush1.bf16.msra.mxu1 %v4599_v6  ;;  %v3329_v6 = vld [vmem:[%s7276_s3 + $0x450] sm:$0xff] }
 0x14b   : > { %4602 = vmatprep.subr.bf16.mxu1 %v4601_v11  ;;  %v4635_v10 = vpack.c.bf16 %v3329_v6, %v3327_v5  ;;  %v1215_v11 = vld [vmem:[#allocation2 + $0x8] sm:$0xfc]  ;;  %v3366_v6 = vld [vmem:[%s7276_s3 + $0x578] sm:$0xff] }
 0x14c   : > { %v3364_v5 = vld [vmem:[%s7276_s3 + $0x568] sm:$0xff] }
 0x14d   : > { %v4669_v9 = vpack.c.bf16 %v3366_v6, %v3364_v5  ;;  %v3383_v5 = vld [vmem:[%s7278_s5 + $0x100] sm:$0xff]  ;;  %v3384_v6 = vld [vmem:[%s7278_s5 + $0x108] sm:$0xff] }
 0x14e   : > { %4604 = vmatpush1.bf16.msra.mxu1 %v4603_v17  ;;  %v871_v17 = vld [vmem:[#allocation2 + $0x38] sm:$0xf] }
 0x14f   : > { %4606 = vmatprep.subr.bf16.mxu1 %v4605_v18  ;;  %v1291_v18 = vrot.slane %v1215_v11, 2  ;;  %v3365_v11 = vld [vmem:[%s7276_s3 + $0x570] sm:$0xff] }
 0x151   : > { %v1293_v30 = vsel %vm1287_vm4, %v1291_v18, %v1292_v20  ;;  %v3372_v18 = vld [vmem:[%s7276_s3 + $0x5a8] sm:$0xff] }
 0x152   : > { %4608 = vmatpush1.bf16.msra.mxu1 %v4607_v25  ;;  %v3337_v25 = vld [vmem:[%s7276_s3 + $0x490] sm:$0xff] }
 0x153   : > { %4610 = vmatprep.subr.bf16.mxu1 %v4609_v27  ;;  %v870_v27 = vld [vmem:[#allocation2 + $0x30] sm:$0xf]  ;;  %v4643_v31 = vpack.c.bf16 %v3337_v25, %v3335_v22  ;;  %v3371_v25 = vld [vmem:[%s7276_s3 + $0x5a0] sm:$0xff] }
 0x156   : > { %4612 = vmatpush1.bf16.msra.mxu1 %v4611_v32  ;;  %v4645_v32 = vpack.c.bf16 %v3342_v29, %v3340_v28  ;;  %v3376_v28 = vld [vmem:[%s7276_s3 + $0x5c8] sm:$0xff]  ;;  %v3378_v29 = vld [vmem:[%s7276_s3 + $0x5d8] sm:$0xff] }
 0x157   : > { %4614 = vmatprep.subr.bf16.mxu1 %v4613_v33  ;;  %v3339_v33 = vld [vmem:[%s7276_s3 + $0x4a0] sm:$0xff] }
 0x158   : > { %v4647_v37 = vpack.c.bf16 %v3341_v34, %v3339_v33  ;;  %v3377_v33 = vld [vmem:[%s7276_s3 + $0x5d0] sm:$0xff]  ;;  %v3380_v34 = vld [vmem:[%s7276_s3 + $0x5e8] sm:$0xff] }
 0x15a   : > { %4616 = vmatpush1.bf16.msra.mxu1 %v4615_v38  ;;  %v4649_v38 = vpack.c.bf16 %v3346_v36, %v3344_v35  ;;  %v3382_v35 = vld [vmem:[%s7276_s3 + $0x5f8] sm:$0xff] }
 0x15b   : > { %4618 = vmatprep.subr.bf16.mxu1 %v4617_v39  ;;  %v3343_v39 = vld [vmem:[%s7276_s3 + $0x4c0] sm:$0xff] }
 0x15c   : > { %v4651_v43 = vpack.c.bf16 %v3345_v40, %v3343_v39  ;;  %v3381_v39 = vld [vmem:[%s7276_s3 + $0x5f0] sm:$0xff]  ;;  %v1214_v40 = vld [vmem:[#allocation2] sm:$0xfc] }
 0x15e   : > { %4620 = vmatpush1.bf16.msra.mxu1 %v4619_v44  ;;  %v4653_v44 = vpack.c.bf16 %v3350_v42, %v3348_v41  ;;  %v1288_v42 = vrot.slane %v1214_v40, 2 }
 0x15f   : > { %4622 = vmatprep.subr.bf16.mxu1 %v4621_v45  ;;  %v3347_v45 = vld [vmem:[%s7276_s3 + $0x4e0] sm:$0xff] }
 0x160   : > { %v4655_v50 = vpack.c.bf16 %v3349_v46, %v3347_v45  ;;  %v1217_v45 = vld [vmem:[#allocation2 + $0x38] sm:$0x3f] }
 0x162   : > { %4624 = vmatpush1.bf16.msra.mxu1 %v4623_v52  ;;  %v4657_v52 = vpack.c.bf16 %v3354_v48, %v3352_v47  ;;  %v1294_v47 = vrot.slane %v5790_v62, 2 }
 0x163   : > { %4626 = vmatprep.subr.bf16.mxu1 %v4625_v53  ;;  %v3351_v53 = vld [vmem:[%s7276_s3 + $0x500] sm:$0xff] }
 0x164   : > { %v4659_v57 = vpack.c.bf16 %v3353_v54, %v3351_v53 }
 0x165   : > { %1190 = vmatmul.mubr.f32.vlgmr.msra.gmra.mrb[0].mxu1 %v864_v63  ;;  %v3362_v63 = vld [vmem:[%s7276_s3 + $0x558] sm:$0xff] }
 0x166   : > { %1195 = vmatprep.mubr.f32.mxu1 %v5781_v51  ;;  %4628 = vmatpush1.bf16.msra.mxu1 %v4627_v58  ;;  %v4661_v58 = vpack.c.bf16 %v3358_v56, %v3356_v55  ;;  %v4665_v1 = vpack.c.bf16 %v3362_v63, %v3360_v61  ;;  %v1465_v51 = vld [vmem:[%s7278_s5 + $0xf0] sm:$0xff]  ;;  %v1450_v56 = vld [vmem:[%s7278_s5 + $0x78] sm:$0xff]  ;;  %v1407_v61 = vld [vmem:[%s7277_s4] sm:$0x3] }
 0x167   : > { %4630 = vmatprep.subr.bf16.mxu1 %v4629_v59  ;;  %v3355_v59 = vld [vmem:[%s7276_s3 + $0x520] sm:$0xff]  ;;  %v1449_v55 = vld [vmem:[%s7278_s5 + $0x70] sm:$0xff]  ;;  %v1412_v63 = vrot.slane %v1407_v61, %v792_v24 }
 0x168   : > { %v4663_v0 = vpack.c.bf16 %v3357_v60, %v3355_v59  ;;  %v3400_v59 = vld [vmem:[%s7278_s5 + $0x188] sm:$0xff]  ;;  %v3401_v24 = vld [vmem:[%s7278_s5 + $0x190] sm:$0xff] }
 0x169   : > { %1196 = vmatmul.mubr.f32.gmra.mrb[2].mxu1 %v5778_v49 }
 0x16a   : > { %1201 = vmatprep.mubr.f32.mxu1 %v5799_v4  ;;  %4632 = vmatpush1.bf16.msra.mxu1 %v4631_v2  ;;  %v3359_v2 = vld [vmem:[%s7276_s3 + $0x540] sm:$0xff] }
 0x16b   : > { %4634 = vmatprep.subr.bf16.mxu1 %v4633_v3  ;;  %v3361_v3 = vld [vmem:[%s7276_s3 + $0x550] sm:$0xff] }
 0x16c   : > { %v4667_v8 = vpack.c.bf16 %v3361_v3, %v3359_v2 }
 0x16d   : > { %1202 = vmatmul.mubr.f32.gmra.mrb[4].mxu1 %v5790_v62  ;;  %v1466_v62 = vld [vmem:[%s7278_s5 + $0xf8] sm:$0xff] }
 0x16e   : > { %1207 = vmatprep.mubr.f32.mxu1 %v871_v17  ;;  %4636 = vmatpush1.bf16.msra.mxu1 %v4635_v10  ;;  %v3363_v10 = vld [vmem:[%s7276_s3 + $0x560] sm:$0xff]  ;;  %v3369_v17 = vld [vmem:[%s7276_s3 + $0x590] sm:$0xff] }
 0x16f   : > { %4638 = vmatprep.subr.bf16.mxu1 %v4637_v12  ;;  %v3368_v12 = vld [vmem:[%s7276_s3 + $0x588] sm:$0xff]  ;;  %v4671_v14 = vpack.c.bf16 %v3365_v11, %v3363_v10  ;;  %v4723_v10 = vpack.c.bf16 %v3384_v6, %v3383_v5  ;;  %v3397_v6 = vld [vmem:[%s7278_s5 + $0x170] sm:$0xff] }
 0x170   : > { %v4673_v15 = vpack.c.bf16 %v3370_v13, %v3368_v12 }
 0x171   : > { %1208 = vmatmul.mubr.f32.gmra.mrb[6].mxu1 %v870_v27  ;;  %v3373_v27 = vld [vmem:[%s7276_s3 + $0x5b0] sm:$0xff] }
 0x172   : > { %4640 = vmatpush1.bf16.msra.mxu1 %v4639_v19  ;;  %1374 = vmatprep.mubr.f32.mxu1 %v1293_v30  ;;  %v3374_v19 = vld [vmem:[%s7276_s3 + $0x5b8] sm:$0xff]  ;;  %v4679_v30 = vpack.c.bf16 %v3373_v27, %v3371_v25 }
 0x173   : > { %4642 = vmatprep.subr.bf16.mxu1 %v4641_v21  ;;  %v4675_v21 = vpack.c.bf16 %v3369_v17, %v3367_v16  ;;  %v4677_v22 = vpack.c.bf16 %v3374_v19, %v3372_v18  ;;  %v3386_v16 = vld [vmem:[%s7278_s5 + $0x118] sm:$0xff]  ;;  %v3403_v18 = vld [vmem:[%s7278_s5 + $0x1a0] sm:$0xff]  ;;  %v3404_v19 = vld [vmem:[%s7278_s5 + $0x1a8] sm:$0xff] }
 0x176   : > { %4644 = vmatpush1.bf16.msra.mxu1 %v4643_v31  ;;  %v4681_v31 = vpack.c.bf16 %v3378_v29, %v3376_v28 }
 0x177   : > { %4646 = vmatprep.subr.bf16.mxu1 %v4645_v32  ;;  %v3375_v32 = vld [vmem:[%s7276_s3 + $0x5c0] sm:$0xff] }
 0x178   : > { %v4683_v36 = vpack.c.bf16 %v3377_v33, %v3375_v32  ;;  %v3388_v32 = vld [vmem:[%s7278_s5 + $0x128] sm:$0xff] }
 0x17a   : > { %4648 = vmatpush1.bf16.msra.mxu1 %v4647_v37  ;;  %v4685_v37 = vpack.c.bf16 %v3382_v35, %v3380_v34  ;;  %v3405_v34 = vld [vmem:[%s7278_s5 + $0x1b0] sm:$0xff]  ;;  %v3406_v35 = vld [vmem:[%s7278_s5 + $0x1b8] sm:$0xff] }
 0x17b   : > { %4650 = vmatprep.subr.bf16.mxu1 %v4649_v38  ;;  %v3379_v38 = vld [vmem:[%s7276_s3 + $0x5e0] sm:$0xff] }
 0x17c   : > { %v4687_v41 = vpack.c.bf16 %v3381_v39, %v3379_v38 }
 0x17e   : > { %4652 = vmatpush1.bf16.msra.mxu1 %v4651_v43  ;;  %v1296_v43 = vrot.slane %v5799_v4, 2 }
 0x17f   : > { %4654 = vmatprep.subr.bf16.mxu1 %v4653_v44  ;;  %v1289_v44 = vrot.slane %v5778_v49, 2 }
 0x180   : > { %v1297_v48 = vsel %vm1287_vm4, %v1292_v20, %v1296_v43  ;;  %v4717_v20 = vpack.c.bf16 %v1466_v62, %v1465_v51  ;;  %v3410_v51 = vld [vmem:[%s7278_s5 + $0x1d8] sm:$0xff] }
 0x181   : > { %v1290_v46 = vsel %vm1287_vm4, %v1288_v42, %v1289_v44  ;;  %v1295_v53 = vsel %vm1287_vm4, %v1289_v44, %v1294_v47  ;;  %v4733_v42 = vpack.c.bf16 %v3406_v35, %v3405_v34  ;;  %v3390_v44 = vld [vmem:[%s7278_s5 + $0x138] sm:$0xff]  ;;  %v1739_v35 = vld [vmem:[%s7279_s6 + $0x8] sm:$0xff] }
 0x182   : > { %4656 = vmatpush1.bf16.msra.mxu1 %v4655_v50  ;;  %v1300_v50 = vrot.slane %v1217_v45, 2  ;;  %4718 = vmatprep.subr.bf16.mxu0 %v4717_v20 }
 0x183   : > { %4658 = vmatprep.subr.bf16.mxu1 %v4657_v52  ;;  %v1216_v52 = vld [vmem:[#allocation2 + $0x30] sm:$0x3f] }
 0x184   : > { %v1298_v54 = vrot.slane %v1216_v52, 2  ;;  %v1301_v4 = vsel %vm1287_vm4, %v1296_v43, %v1300_v50  ;;  %v3389_v43 = vld [vmem:[%s7278_s5 + $0x130] sm:$0xff] }
 0x186   : > { %4660 = vmatpush1.bf16.msra.mxu1 %v4659_v57  ;;  %v1299_v49 = vsel %vm1287_vm4, %v1294_v47, %v1298_v54  ;;  %v4719_v57 = vpack.c.bf16 %v1450_v56, %v1449_v55  ;;  %v3408_v47 = vld [vmem:[%s7278_s5 + $0x1c8] sm:$0xff]  ;;  %v3393_v55 = vld [vmem:[%s7278_s5 + $0x150] sm:$0xff]  ;;  %v3394_v56 = vld [vmem:[%s7278_s5 + $0x158] sm:$0xff] }
 0x187   : > { %4662 = vmatprep.subr.bf16.mxu1 %v4661_v58  ;;  %v3399_v58 = vld [vmem:[%s7278_s5 + $0x180] sm:$0xff] }
 0x188   : > { %4720 = vmatpush3.bf16.msra.mxu0 %v4719_v57  ;;  %v4721_v60 = vpack.c.bf16 %v3400_v59, %v3399_v58  ;;  %v3411_v57 = vld [vmem:[%s7278_s5 + $0x1e0] sm:$0xff]  ;;  %v3412_v58 = vld [vmem:[%s7278_s5 + $0x1e8] sm:$0xff]  ;;  %v4743_v59 = vpack.c.bf16 %v3394_v56, %v3393_v55  ;;  %v3455_v55 = vld [vmem:[%s7281_s8 + $0xb8] sm:$0xff] }
 0x18a   : > { %4664 = vmatpush1.bf16.msra.mxu1 %v4663_v0  ;;  %4722 = vmatprep.subr.bf16.mxu0 %v4721_v60  ;;  %v1416_v0 = vrot.slane %v1407_v61, %v796_v26  ;;  %v4745_v60 = vpack.c.bf16 %v3412_v58, %v3411_v57  ;;  %v3395_v61 = vld [vmem:[%s7278_s5 + $0x160] sm:$0xff] }
 0x18b   : > { %4666 = vmatprep.subr.bf16.mxu1 %v4665_v1  ;;  %v3456_v58 = vld [vmem:[%s7281_s8 + $0xc0] sm:$0xff] }
 0x18e   : > { %4668 = vmatpush1.bf16.msra.mxu1 %v4667_v8 }
 0x18f   : > { %4670 = vmatprep.subr.bf16.mxu1 %v4669_v9 }
 0x192   : > { %4672 = vmatpush1.bf16.msra.mxu1 %v4671_v14  ;;  %v4725_v14 = vpack.c.bf16 %v3402_v23, %v3401_v24  ;;  %v3415_v23 = vld [vmem:[%s7279_s6 + $0x80] sm:$0xff] }
 0x193   : > { %4674 = vmatprep.subr.bf16.mxu1 %v4673_v15  ;;  %v3385_v15 = vld [vmem:[%s7278_s5 + $0x110] sm:$0xff] }
 0x194   : > { %v4727_v25 = vpack.c.bf16 %v3386_v16, %v3385_v15  ;;  %v3421_v15 = vld [vmem:[%s7279_s6 + $0xb0] sm:$0xff]  ;;  %v3422_v16 = vld [vmem:[%s7279_s6 + $0xb8] sm:$0xff] }
 0x196   : > { %4676 = vmatpush1.bf16.msra.mxu1 %v4675_v21 }
 0x197   : > { %4678 = vmatprep.subr.bf16.mxu1 %v4677_v22 }
 0x19a   : > { %4680 = vmatpush1.bf16.msra.mxu1 %v4679_v30  ;;  %v4729_v30 = vpack.c.bf16 %v3404_v19, %v3403_v18  ;;  %v3423_v18 = vld [vmem:[%s7279_s6 + $0xc0] sm:$0xff]  ;;  %v3424_v19 = vld [vmem:[%s7279_s6 + $0xc8] sm:$0xff] }
 0x19b   : > { %4682 = vmatprep.subr.bf16.mxu1 %v4681_v31  ;;  %v3387_v31 = vld [vmem:[%s7278_s5 + $0x120] sm:$0xff] }
 0x19c   : > { %v4731_v38 = vpack.c.bf16 %v3388_v32, %v3387_v31  ;;  %v3429_v31 = vld [vmem:[%s7279_s6 + $0xf0] sm:$0xff]  ;;  %v3430_v32 = vld [vmem:[%s7279_s6 + $0xf8] sm:$0xff] }
 0x19d   : > { %v4781_v34 = vpack.c.bf16 %v3430_v32, %v3429_v31 }
 0x19e   : > { %4684 = vmatpush1.bf16.msra.mxu1 %v4683_v36 }
 0x19f   : > { %4686 = vmatprep.subr.bf16.mxu1 %v4685_v37 }
 0x1a2   : > { %4688 = vmatpush1.bf16.msra.mxu1 %v4687_v41 }
 0x1a5   : > { %1375 = vmatmul.mubr.f32.vlgmr.msra.gmra.mrb[0].mxu1 %v1290_v46  ;;  %v3407_v46 = vld [vmem:[%s7278_s5 + $0x1c0] sm:$0xff] }
 0x1a6   : > { %1380 = vmatprep.mubr.f32.mxu1 %v1297_v48 }
 0x1a9   : > { %1381 = vmatmul.mubr.f32.gmra.mrb[2].mxu1 %v1295_v53  ;;  %v4737_v53 = vpack.c.bf16 %v3408_v47, %v3407_v46 }
 0x1aa   : > { %1386 = vmatprep.mubr.f32.mxu1 %v1301_v4  ;;  %v3392_v4 = vld [vmem:[%s7278_s5 + $0x148] sm:$0xff] }
 0x1ad   : > { %1387 = vmatmul.mubr.f32.gmra.mrb[4].mxu1 %v1299_v49  ;;  %v3409_v49 = vld [vmem:[%s7278_s5 + $0x1d0] sm:$0xff] }
 0x1ae   : > { %1392 = vmatprep.mubr.f32.mxu1 %v1300_v50  ;;  %v4735_v50 = vpack.c.bf16 %v3390_v44, %v3389_v43  ;;  %v4741_v20 = vpack.c.bf16 %v3410_v51, %v3409_v49  ;;  %v3448_v43 = vld [vmem:[%s7281_s8 + $0x80] sm:$0xff]  ;;  %v3449_v44 = vld [vmem:[%s7281_s8 + $0x88] sm:$0xff] }
 0x1af   : > { %v4849_v47 = vpack.c.bf16 %v3449_v44, %v3448_v43 }
 0x1b1   : > { %1393 = vmatmul.mubr.f32.gmra.mrb[6].mxu1 %v1298_v54  ;;  %v3391_v54 = vld [vmem:[%s7278_s5 + $0x140] sm:$0xff]  ;;  %4850 = vmatprep.subr.bf16.mxu1 %v4849_v47 }
 0x1b2   : > { %v4739_v62 = vpack.c.bf16 %v3392_v4, %v3391_v54  ;;  %v3453_v54 = vld [vmem:[%s7281_s8 + $0xa8] sm:$0xff]  ;;  %4852 = vmatpush3.bf16.msra.mxu1 %v4849_v47 }
 0x278   : > { %v1376_v1 = vpop.f32.mrb[0].mxu1 }
 0x279   : > { %v6306_v2 = vadd.f32 %v1412_v63, %v1376_v1  ;;  %v1378_v3 = vpop.f32.mrb[1].mxu1  ;;  %v3414_v1 = vld [vmem:[%s7278_s5 + $0x1f8] sm:$0xff] }
 0x27a   : > { %v1420_v8 = vadd.f32 %v1416_v0, %v1378_v3 }
 0x27b   : > { %v1427_v11 = vmax.f32 %v6306_v2, 0.0 }
 0x27c   : > { %v1428_v26 = vmax.f32 %v1420_v8, 0.0  ;;  %v1382_v9 = vpop.f32.mrb[2].mxu1  ;;  %v3398_v8 = vld [vmem:[%s7278_s5 + $0x178] sm:$0xff] }
 0x27d   : > { %v6321_v12 = vadd.f32 %v1412_v63, %v1382_v9  ;;  %v1384_v13 = vpop.f32.mrb[3].mxu1  ;;  %v4751_v24 = vpack.c.bf16 %v3398_v8, %v3397_v6  ;;  %v3417_v9 = vld [vmem:[%s7279_s6 + $0x90] sm:$0xff] }
 0x27e   : > { %v6329_v17 = vadd.f32 %v1416_v0, %v1384_v13  ;;  %1531 = vmatprep.mubr.f32.mxu0 %v1428_v26  ;;  %v3420_v13 = vld [vmem:[%s7279_s6 + $0xa8] sm:$0xff] }
 0x27f   : > { %1532 = vmatmul.mubr.f32.vlgmr.msra.gmra.mrb[8].mxu0 %v1427_v11  ;;  %v1429_v27 = vmax.f32 %v6321_v12, 0.0  ;;  %v3419_v12 = vld [vmem:[%s7279_s6 + $0xa0] sm:$0xff] }
 0x280   : > { %v1430_v21 = vmax.f32 %v6329_v17, 0.0  ;;  %4724 = vmatpush3.bf16.msra.mxu0 %v4723_v10  ;;  %v1388_v22 = vpop.f32.mrb[4].mxu1  ;;  %v3418_v10 = vld [vmem:[%s7279_s6 + $0x98] sm:$0xff]  ;;  %v4765_v17 = vpack.c.bf16 %v3422_v16, %v3421_v15 }
 0x281   : > { %v6341_v28 = vadd.f32 %v1412_v63, %v1388_v22  ;;  %v1390_v29 = vpop.f32.mrb[5].mxu1  ;;  %4726 = vmatprep.subr.bf16.mxu0 %v4725_v14  ;;  %v4761_v14 = vpack.c.bf16 %v3420_v13, %v3419_v12  ;;  %v3425_v22 = vld [vmem:[%s7279_s6 + $0xd0] sm:$0xff] }
 0x282   : > { %v6349_v33 = vadd.f32 %v1416_v0, %v1390_v29  ;;  %1536 = vmatprep.mubr.f32.mxu0 %v1430_v21  ;;  %v3428_v29 = vld [vmem:[%s7279_s6 + $0xe8] sm:$0xff] }
 0x283   : > { %1537 = vmatmul.mubr.f32.gmra.mrb[10].mxu0 %v1429_v27  ;;  %v1431_v39 = vmax.f32 %v6341_v28, 0.0  ;;  %v3427_v28 = vld [vmem:[%s7279_s6 + $0xe0] sm:$0xff] }
 0x284   : > { %v1432_v36 = vmax.f32 %v6349_v33, 0.0  ;;  %4728 = vmatpush3.bf16.msra.mxu0 %v4727_v25  ;;  %v1394_v37 = vpop.f32.mrb[6].mxu1  ;;  %v3426_v25 = vld [vmem:[%s7279_s6 + $0xd8] sm:$0xff]  ;;  %v1738_v33 = vld [vmem:[%s7279_s6] sm:$0xff] }
 0x285   : > { %v1425_v40 = vadd.f32 %v1412_v63, %v1394_v37  ;;  %v1396_v41 = vpop.f32.mrb[7].mxu1  ;;  %4730 = vmatprep.subr.bf16.mxu0 %v4729_v30  ;;  %v3396_v63 = vld [vmem:[%s7278_s5 + $0x168] sm:$0xff]  ;;  %v4777_v30 = vpack.c.bf16 %v3428_v29, %v3427_v28 }
 0x286   : > { %v1426_v45 = vadd.f32 %v1416_v0, %v1396_v41  ;;  %1541 = vmatprep.mubr.f32.mxu0 %v1432_v36  ;;  %v3413_v0 = vld [vmem:[%s7278_s5 + $0x1f0] sm:$0xff]  ;;  %v4747_v3 = vpack.c.bf16 %v3396_v63, %v3395_v61 }
 0x287   : > { %1542 = vmatmul.mubr.f32.gmra.mrb[12].mxu0 %v1431_v39  ;;  %v1433_v52 = vmax.f32 %v1425_v40, 0.0  ;;  %v4749_v5 = vpack.c.bf16 %v3414_v1, %v3413_v0 }
 0x288   : > { %v1434_v48 = vmax.f32 %v1426_v45, 0.0  ;;  %4732 = vmatpush3.bf16.msra.mxu0 %v4731_v38  ;;  %v3450_v45 = vld [vmem:[%s7281_s8 + $0x90] sm:$0xff] }
 0x289   : > { %4734 = vmatprep.subr.bf16.mxu0 %v4733_v42 }
 0x28a   : > { %1546 = vmatprep.mubr.f32.mxu0 %v1434_v48 }
 0x28b   : > { %1547 = vmatmul.mubr.f32.gmra.mrb[14].mxu0 %v1433_v52 }
 0x28c   : > { %4736 = vmatpush3.bf16.msra.mxu0 %v4735_v50  ;;  %1649 = vmatprep.mubr.f32.mxu0 %v1428_v26  ;;  %v3416_v26 = vld [vmem:[%s7279_s6 + $0x88] sm:$0xff] }
 0x28d   : > { %4738 = vmatprep.subr.bf16.mxu0 %v4737_v53  ;;  %v4753_v2 = vpack.c.bf16 %v3416_v26, %v3415_v23  ;;  %v3452_v53 = vld [vmem:[%s7281_s8 + $0xa0] sm:$0xff] }
 0x28e   : > { %v4857_v51 = vpack.c.bf16 %v3453_v54, %v3452_v53 }
 0x290   : > { %4740 = vmatpush3.bf16.msra.mxu0 %v4739_v62 }
 0x291   : > { %4742 = vmatprep.subr.bf16.mxu0 %v4741_v20  ;;  %v3454_v20 = vld [vmem:[%s7281_s8 + $0xb0] sm:$0xff] }
 0x292   : > { %v4861_v57 = vpack.c.bf16 %v3455_v55, %v3454_v20 }
 0x294   : > { %4744 = vmatpush3.bf16.msra.mxu0 %v4743_v59  ;;  %v3457_v59 = vld [vmem:[%s7281_s8 + $0xc8] sm:$0xff] }
 0x295   : > { %4746 = vmatprep.subr.bf16.mxu0 %v4745_v60  ;;  %v4865_v60 = vpack.c.bf16 %v3457_v59, %v3456_v58  ;;  %v1740_v58 = vld [vmem:[%s7279_s6 + $0x10] sm:$0xff]  ;;  %v1741_v59 = vld [vmem:[%s7279_s6 + $0x18] sm:$0xff] }
 0x298   : > { %4748 = vmatpush3.bf16.msra.mxu0 %v4747_v3 }
 0x299   : > { %4750 = vmatprep.subr.bf16.mxu0 %v4749_v5 }
 0x29c   : > { %4752 = vmatpush3.bf16.msra.mxu0 %v4751_v24 }
 0x29d   : > { %4754 = vmatprep.subr.bf16.mxu0 %v4753_v2 }
 0x29f   : > { %1650 = vmatmul.mubr.f32.vlgmr.msra.gmra.mrb[16].mxu0 %v1427_v11  ;;  %v4757_v11 = vpack.c.bf16 %v3418_v10, %v3417_v9 }
 0x2a0   : > { %1654 = vmatprep.mubr.f32.mxu0 %v1430_v21  ;;  %4756 = vmatpush3.bf16.msra.mxu0 %v4753_v2  ;;  %v4769_v21 = vpack.c.bf16 %v3424_v19, %v3423_v18 }
 0x2a1   : > { %4758 = vmatprep.subr.bf16.mxu0 %v4757_v11 }
 0x2a3   : > { %1655 = vmatmul.mubr.f32.gmra.mrb[18].mxu0 %v1429_v27  ;;  %v4773_v27 = vpack.c.bf16 %v3426_v25, %v3425_v22 }
 0x2a4   : > { %1659 = vmatprep.mubr.f32.mxu0 %v1432_v36  ;;  %4760 = vmatpush3.bf16.msra.mxu0 %v4757_v11  ;;  %v6477_v36 = vpack.c.bf16 %v1739_v35, %v1738_v33 }
 0x2a5   : > { %4762 = vmatprep.subr.bf16.mxu0 %v4761_v14 }
 0x2a7   : > { %1660 = vmatmul.mubr.f32.gmra.mrb[20].mxu0 %v1431_v39 }
 0x2a8   : > { %1664 = vmatprep.mubr.f32.mxu0 %v1434_v48  ;;  %4764 = vmatpush3.bf16.msra.mxu0 %v4761_v14  ;;  %v3451_v48 = vld [vmem:[%s7281_s8 + $0x98] sm:$0xff] }
 0x2a9   : > { %4766 = vmatprep.subr.bf16.mxu0 %v4765_v17 }
 0x2ab   : > { %1665 = vmatmul.mubr.f32.gmra.mrb[22].mxu0 %v1433_v52  ;;  %v4853_v52 = vpack.c.bf16 %v3451_v48, %v3450_v45 }
 0x2ac   : > { %4768 = vmatpush3.bf16.msra.mxu0 %v4765_v17 }
 0x2ad   : > { %4770 = vmatprep.subr.bf16.mxu0 %v4769_v21  ;;  %4854 = vmatprep.subr.bf16.mxu1 %v4853_v52 }
 0x2ae   : > { %4856 = vmatpush3.bf16.msra.mxu1 %v4853_v52 }
 0x2af   : > { %4858 = vmatprep.subr.bf16.mxu1 %v4857_v51 }
 0x2b0   : > { %4772 = vmatpush3.bf16.msra.mxu0 %v4769_v21 }
 0x2b1   : > { %4774 = vmatprep.subr.bf16.mxu0 %v4773_v27 }
 0x2b2   : > { %4860 = vmatpush3.bf16.msra.mxu1 %v4857_v51 }
 0x2b3   : > { %4862 = vmatprep.subr.bf16.mxu1 %v4861_v57 }
 0x2b4   : > { %4776 = vmatpush3.bf16.msra.mxu0 %v4773_v27 }
 0x2b5   : > { %4778 = vmatprep.subr.bf16.mxu0 %v4777_v30 }
 0x2b6   : > { %4864 = vmatpush3.bf16.msra.mxu1 %v4861_v57 }
 0x2b7   : > { %4866 = vmatprep.subr.bf16.mxu1 %v4865_v60 }
 0x2b8   : > { %4780 = vmatpush3.bf16.msra.mxu0 %v4777_v30 }
 0x2b9   : > { %4782 = vmatprep.subr.bf16.mxu0 %v4781_v34 }
 0x2ba   : > { %4868 = vmatpush3.bf16.msra.mxu1 %v4865_v60  ;;  %v4789_v60 = vpack.c.bf16 %v1741_v59, %v1740_v58  ;;  %v2329_v58 = vld [vmem:[%s7283_s10 + $0x8] sm:$0xff]  ;;  %v2330_v59 = vld [vmem:[%s7283_s10 + $0x10] sm:$0xff] }
 0x2bc   : > { %4784 = vmatpush3.bf16.msra.mxu0 %v4781_v34 }
 0x2bd   : > { %4786 = vmatprep.subr.bf16.mxu0 %v6477_v36 }
 0x352   : > { %v3629_v37 = vpop.f32.mrb[8].mxu0 }
 0x353   : > { %v3630_v38 = vpop.f32.mrb[9].mxu0 }
 0x354   : > { %v3631_v39 = vadd.f32 %v3630_v38, %v3629_v37 }
 0x356   : > { %v3632_v40 = vpop.f32.mrb[10].mxu0 }
 0x357   : > { %v3633_v41 = vpop.f32.mrb[11].mxu0 }
 0x358   : > { %v3634_v42 = vadd.f32 %v3633_v41, %v3632_v40 }
 0x35a   : > { %v3635_v46 = vpop.f32.mrb[12].mxu0 }
 0x35b   : > { %v3636_v50 = vpop.f32.mrb[13].mxu0 }
 0x35c   : > { %v3637_v4 = vadd.f32 %v3636_v50, %v3635_v46 }
 0x35e   : > { %v3638_v49 = vpop.f32.mrb[14].mxu0 }
 0x35f   : > { %v3639_v62 = vpop.f32.mrb[15].mxu0 }
 0x360   : > { %v3640_v56 = vadd.f32 %v3639_v62, %v3638_v49 }
 0x372   : > { %v3673_v61 = vpop.f32.mrb[16].mxu0 }
 0x373   : > { %v3674_v63 = vpop.f32.mrb[17].mxu0 }
 0x374   : > { %v3675_v0 = vadd.f32 %v3674_v63, %v3673_v61  ;;  %v1742_v63 = vld [vmem:[%s7279_s6 + $0x20] sm:$0xff] }
 0x376   : > { %v1670_v1 = vmax.f32 %v3631_v39, %v3675_v0  ;;  %v3676_v3 = vpop.f32.mrb[18].mxu0  ;;  %v1743_v0 = vld [vmem:[%s7279_s6 + $0x28] sm:$0xff] }
 0x377   : > { %v3677_v5 = vpop.f32.mrb[19].mxu0 }
 0x378   : > { %1674 = vst [vmem:[#allocation5] sm:$0xff] %v1670_v1  ;;  %v3678_v6 = vadd.f32 %v3677_v5, %v3676_v3  ;;  %v4793_v3 = vpack.c.bf16 %v1743_v0, %v1742_v63  ;;  %v1744_v5 = vld [vmem:[%s7279_s6 + $0x30] sm:$0xff]  ;;  %v2332_v0 = vld [vmem:[%s7283_s10 + $0x20] sm:$0xff] }
 0x37a   : > { %v1671_v8 = vmax.f32 %v3634_v42, %v3678_v6  ;;  %v3679_v24 = vpop.f32.mrb[20].mxu0  ;;  %v1745_v6 = vld [vmem:[%s7279_s6 + $0x38] sm:$0xff] }
 0x37b   : > { %v3680_v23 = vpop.f32.mrb[21].mxu0 }
 0x37c   : > { %1675 = vst [vmem:[#allocation5 + $0x8] sm:$0xff] %v1671_v8  ;;  %v3681_v26 = vadd.f32 %v3680_v23, %v3679_v24  ;;  %v4797_v8 = vpack.c.bf16 %v1745_v6, %v1744_v5  ;;  %v1746_v24 = vld [vmem:[%s7279_s6 + $0x40] sm:$0xff]  ;;  %v2334_v5 = vld [vmem:[%s7283_s10 + $0x30] sm:$0xff]  ;;  %v2335_v6 = vld [vmem:[%s7283_s10 + $0x38] sm:$0xff] }
 0x37e   : > { %v1672_v2 = vmax.f32 %v3637_v4, %v3681_v26  ;;  %v3682_v9 = vpop.f32.mrb[22].mxu0  ;;  %v1748_v26 = vld [vmem:[%s7279_s6 + $0x50] sm:$0xff] }
 0x37f   : > { %v1680_v10 = vld [vmem:[#allocation5] sm:$0x1]  ;;  %v1681_v11 = vld [vmem:[#allocation5 + $0x1] sm:$0x1]  ;;  %v1684_v12 = vld [vmem:[#allocation5 + $0x2] sm:$0x1] }
 0x380   : > { %v1685_v13 = vld [vmem:[#allocation5 + $0x3] sm:$0x1]  ;;  %v1688_v14 = vld [vmem:[#allocation5 + $0x4] sm:$0x1]  ;;  %v1689_v15 = vld [vmem:[#allocation5 + $0x5] sm:$0x1]  ;;  %v1682_v16 = vmax.f32 %v1680_v10, %v1681_v11 }
 0x381   : > { %1676 = vst [vmem:[#allocation5 + $0x10] sm:$0xff] %v1672_v2  ;;  %v1692_v17 = vld [vmem:[#allocation5 + $0x6] sm:$0x1]  ;;  %v1693_v18 = vld [vmem:[#allocation5 + $0x7] sm:$0x1]  ;;  %v3683_v19 = vpop.f32.mrb[23].mxu0  ;;  %v1686_v21 = vmax.f32 %v1684_v12, %v1685_v13  ;;  %v1690_v22 = vmax.f32 %v1688_v14, %v1689_v15 }
 0x382   : > { %v3684_v25 = vadd.f32 %v3683_v19, %v3682_v9  ;;  %1683 = vst [vmem:[#allocation3 + $0x1] sm:$0x1] %v1682_v16  ;;  %v1694_v27 = vmax.f32 %v1692_v17, %v1693_v18  ;;  %v1749_v2 = vld [vmem:[%s7279_s6 + $0x58] sm:$0xff]  ;;  %v1750_v10 = vld [vmem:[%s7279_s6 + $0x60] sm:$0xff]  ;;  %v1751_v11 = vld [vmem:[%s7279_s6 + $0x68] sm:$0xff] }
 0x383   : > { %v1696_v28 = vld [vmem:[#allocation5 + $0x8] sm:$0x1]  ;;  %v1697_v29 = vld [vmem:[#allocation5 + $0x9] sm:$0x1]  ;;  %v1700_v30 = vld [vmem:[#allocation5 + $0xa] sm:$0x1]  ;;  %v4805_v9 = vpack.c.bf16 %v1749_v2, %v1748_v26  ;;  %v4809_v12 = vpack.c.bf16 %v1751_v11, %v1750_v10 }
 0x384   : > { %1687 = vst [vmem:[#allocation3 + $0x2] sm:$0x1] %v1686_v21  ;;  %1691 = vst [vmem:[#allocation3 + $0x3] sm:$0x1] %v1690_v22  ;;  %v1701_v31 = vld [vmem:[#allocation5 + $0xb] sm:$0x1]  ;;  %v1673_v34 = vmax.f32 %v3640_v56, %v3684_v25  ;;  %v1698_v35 = vmax.f32 %v1696_v28, %v1697_v29 }
 0x385   : > { %v1704_v32 = vld [vmem:[#allocation5 + $0xc] sm:$0x1]  ;;  %v1705_v33 = vld [vmem:[#allocation5 + $0xd] sm:$0x1]  ;;  %1695 = vst [vmem:[#allocation3 + $0x4] sm:$0x1] %v1694_v27  ;;  %v1702_v39 = vmax.f32 %v1700_v30, %v1701_v31 }
 0x386   : > { %v1708_v37 = vld [vmem:[#allocation5 + $0xe] sm:$0x1]  ;;  %v1709_v38 = vld [vmem:[#allocation5 + $0xf] sm:$0x1]  ;;  %v1706_v40 = vmax.f32 %v1704_v32, %v1705_v33  ;;  %1677 = vst [vmem:[#allocation5 + $0x18] sm:$0xf] %v1673_v34 }
 0x387   : > { %1699 = vst [vmem:[#allocation3 + $0x5] sm:$0x1] %v1698_v35  ;;  %v1710_v41 = vmax.f32 %v1708_v37, %v1709_v38  ;;  %1703 = vst [vmem:[#allocation3 + $0x6] sm:$0x1] %v1702_v39  ;;  %v1752_v13 = vld [vmem:[%s7279_s6 + $0x70] sm:$0xff]  ;;  %v1753_v14 = vld [vmem:[%s7279_s6 + $0x78] sm:$0xff] }
 0x388   : > { %v1712_v42 = vld [vmem:[#allocation5 + $0x10] sm:$0x1]  ;;  %v1713_v43 = vld [vmem:[#allocation5 + $0x11] sm:$0x1]  ;;  %v1716_v44 = vld [vmem:[#allocation5 + $0x12] sm:$0x1]  ;;  %v4813_v15 = vpack.c.bf16 %v1753_v14, %v1752_v13 }
 0x389   : > { %1707 = vst [vmem:[#allocation3 + $0x7] sm:$0x1] %v1706_v40  ;;  %v1714_v45 = vmax.f32 %v1712_v42, %v1713_v43  ;;  %v1717_v46 = vld [vmem:[#allocation5 + $0x13] sm:$0x1]  ;;  %v1720_v47 = vld [vmem:[#allocation5 + $0x14] sm:$0x1] }
 0x38a   : > { %v1721_v48 = vld [vmem:[#allocation5 + $0x15] sm:$0x1]  ;;  %1711 = vst [vmem:[#allocation3 + $0x8] sm:$0x1] %v1710_v41  ;;  %v1718_v50 = vmax.f32 %v1716_v44, %v1717_v46  ;;  %v1724_v53 = vld [vmem:[#allocation5 + $0x16] sm:$0x1] }
 0x38b   : > { %v1722_v52 = vmax.f32 %v1720_v47, %v1721_v48  ;;  %v1725_v54 = vld [vmem:[#allocation5 + $0x17] sm:$0x1]  ;;  %1715 = vst [vmem:[#allocation3 + $0x9] sm:$0x1] %v1714_v45  ;;  %v3431_v16 = vld [vmem:[%s7279_s6 + $0x100] sm:$0xff]  ;;  %v3432_v17 = vld [vmem:[%s7279_s6 + $0x108] sm:$0xff] }
 0x38c   : > { %v1726_v4 = vmax.f32 %v1724_v53, %v1725_v54  ;;  %1719 = vst [vmem:[#allocation3 + $0xa] sm:$0x1] %v1718_v50  ;;  %v4817_v18 = vpack.c.bf16 %v3432_v17, %v3431_v16  ;;  %v3433_v19 = vld [vmem:[%s7279_s6 + $0x110] sm:$0xff]  ;;  %v3434_v21 = vld [vmem:[%s7279_s6 + $0x118] sm:$0xff]  ;;  %v3435_v27 = vld [vmem:[%s7279_s6 + $0x120] sm:$0xff] }
 0x38d   : > { %1723 = vst [vmem:[#allocation3 + $0xb] sm:$0x1] %v1722_v52  ;;  %v1728_v49 = vld [vmem:[#allocation5 + $0x18] sm:$0x1]  ;;  %v1729_v51 = vld [vmem:[#allocation5 + $0x19] sm:$0x1]  ;;  %v4821_v22 = vpack.c.bf16 %v3434_v21, %v3433_v19 }
 0x38e   : > { %1727 = vst [vmem:[#allocation3 + $0xc] sm:$0x1] %v1726_v4  ;;  %v1732_v62 = vld [vmem:[#allocation5 + $0x1a] sm:$0x1]  ;;  %v1730_v20 = vmax.f32 %v1728_v49, %v1729_v51  ;;  %v1733_v55 = vld [vmem:[#allocation5 + $0x1b] sm:$0x1] }
 0x38f   : > { %v1734_v56 = vmax.f32 %v1732_v62, %v1733_v55  ;;  %v3436_v28 = vld [vmem:[%s7279_s6 + $0x128] sm:$0xff]  ;;  %v3437_v31 = vld [vmem:[%s7279_s6 + $0x130] sm:$0xff]  ;;  %v3438_v32 = vld [vmem:[%s7279_s6 + $0x138] sm:$0xff] }
 0x390   : > { %1731 = vst [vmem:[#allocation3 + $0xd] sm:$0x1] %v1730_v20  ;;  %v1736_v1 = vld [vmem:[#allocation3] sm:$0xff]  ;;  %v4825_v30 = vpack.c.bf16 %v3436_v28, %v3435_v27  ;;  %v4829_v33 = vpack.c.bf16 %v3438_v32, %v3437_v31  ;;  %v3440_v35 = vld [vmem:[%s7279_s6 + $0x148] sm:$0xff]  ;;  %v3441_v38 = vld [vmem:[%s7279_s6 + $0x150] sm:$0xff] }
 0x391   : > { %v1754_v57 = vld [vmem:[#allocation3 + $0x1] sm:$0xff]  ;;  %1735 = vst [vmem:[#allocation3 + $0xe] sm:$0x1] %v1734_v56  ;;  %v3442_v39 = vld [vmem:[%s7279_s6 + $0x158] sm:$0xff]  ;;  %v3445_v44 = vld [vmem:[%s7279_s6 + $0x170] sm:$0xff] }
 0x392   : > { %3980 = vmatprep.mubr.f32.mxu0 %v1754_v57  ;;  %v1923_v29 = vld [vmem:[#allocation3 + $0x2] sm:$0xff]  ;;  %v4837_v40 = vpack.c.bf16 %v3442_v39, %v3441_v38  ;;  %v3446_v45 = vld [vmem:[%s7279_s6 + $0x178] sm:$0xff]  ;;  %v3458_v48 = vld [vmem:[%s7281_s8 + $0xd0] sm:$0xff] }
 0x393   : > { %v3439_v34 = vld [vmem:[%s7279_s6 + $0x140] sm:$0xff]  ;;  %v3444_v42 = vld [vmem:[%s7279_s6 + $0x168] sm:$0xff]  ;;  %v4845_v46 = vpack.c.bf16 %v3446_v45, %v3445_v44  ;;  %v3459_v50 = vld [vmem:[%s7281_s8 + $0xd8] sm:$0xff] }
 0x394   : > { %v4833_v37 = vpack.c.bf16 %v3440_v35, %v3439_v34  ;;  %v3443_v41 = vld [vmem:[%s7279_s6 + $0x160] sm:$0xff]  ;;  %v4869_v52 = vpack.c.bf16 %v3459_v50, %v3458_v48  ;;  %v3461_v54 = vld [vmem:[%s7281_s8 + $0xe8] sm:$0xff]  ;;  %v3462_v49 = vld [vmem:[%s7281_s8 + $0xf0] sm:$0xff] }
 0x395   : > { %v4841_v43 = vpack.c.bf16 %v3444_v42, %v3443_v41  ;;  %v3460_v53 = vld [vmem:[%s7281_s8 + $0xe0] sm:$0xff]  ;;  %v3463_v51 = vld [vmem:[%s7281_s8 + $0xf8] sm:$0xff]  ;;  %v2037_v55 = vld [vmem:[%s7281_s8 + $0x8] sm:$0xff] }
 0x396   : > { %4870 = vmatprep.subr.bf16.mxu1 %v4869_v52  ;;  %v4873_v4 = vpack.c.bf16 %v3461_v54, %v3460_v53  ;;  %v4877_v62 = vpack.c.bf16 %v3463_v51, %v3462_v49  ;;  %v2036_v20 = vld [vmem:[%s7281_s8] sm:$0xff]  ;;  %v2338_v26 = vld [vmem:[%s7283_s10 + $0x50] sm:$0xff]  ;;  %v2339_v2 = vld [vmem:[%s7283_s10 + $0x58] sm:$0xff] }
 0x397   : > { %v1737_v25 = vld [vmem:[#allocation3 + $0x8] sm:$0x3f]  ;;  %4872 = vmatpush3.bf16.msra.mxu1 %v4869_v52  ;;  %v4881_v56 = vpack.c.bf16 %v2037_v55, %v2036_v20  ;;  %v2328_v57 = vld [vmem:[%s7283_s10] sm:$0xff]  ;;  %v2038_v21 = vld [vmem:[%s7281_s8 + $0x10] sm:$0xff] }
 0x398   : > { %v1755_v61 = vld [vmem:[#allocation3 + $0x9] sm:$0x3f]  ;;  %4874 = vmatprep.subr.bf16.mxu1 %v4873_v4  ;;  %v2340_v10 = vld [vmem:[%s7283_s10 + $0x60] sm:$0xff]  ;;  %v2042_v32 = vld [vmem:[%s7281_s8 + $0x30] sm:$0xff] }
 0x399   : > { %3981 = vmatmul.mubr.f32.vlgmr.msra.gmra.mrb[24].mxu0 %v1755_v61  ;;  %v1924_v47 = vld [vmem:[#allocation3 + $0xa] sm:$0x3f]  ;;  %v2331_v61 = vld [vmem:[%s7283_s10 + $0x18] sm:$0xff]  ;;  %v3447_v13 = vld [vmem:[%s7280_s7] ss:$0 sm:$0xff] }
 0x39a   : > { %4788 = vmatpush3.bf16.msra.mxu0 %v6477_v36  ;;  %4015 = vmatprep.mubr.f32.mxu0 %v1736_v1  ;;  %v1747_v36 = vld [vmem:[%s7279_s6 + $0x48] sm:$0xff]  ;;  %v4949_v63 = vpack.c.bf16 %v2331_v61, %v2330_v59  ;;  %v2040_v28 = vld [vmem:[%s7281_s8 + $0x20] sm:$0xff]  ;;  %v2046_v39 = vld [vmem:[%s7281_s8 + $0x50] sm:$0xff] }
 0x39b   : > { %4790 = vmatprep.subr.bf16.mxu0 %v4789_v60  ;;  %v4801_v23 = vpack.c.bf16 %v1747_v36, %v1746_v24  ;;  %4876 = vmatpush3.bf16.msra.mxu1 %v4873_v4  ;;  %v2333_v1 = vld [vmem:[%s7283_s10 + $0x28] sm:$0xff]  ;;  %v2336_v24 = vld [vmem:[%s7283_s10 + $0x40] sm:$0xff]  ;;  %v2050_v45 = vld [vmem:[%s7281_s8 + $0x70] sm:$0xff] }
 0x39c   : > { %4878 = vmatprep.subr.bf16.mxu1 %v4877_v62  ;;  %v2337_v36 = vld [vmem:[%s7283_s10 + $0x48] sm:$0xff]  ;;  %v2044_v35 = vld [vmem:[%s7281_s8 + $0x40] sm:$0xff]  ;;  %v3466_v53 = vld [vmem:[%s7281_s8 + $0x110] sm:$0xff] }
 0x39d   : > { %v2341_v11 = vld [vmem:[%s7283_s10 + $0x68] sm:$0xff]  ;;  %v2048_v42 = vld [vmem:[%s7281_s8 + $0x60] sm:$0xff]  ;;  %v3467_v54 = vld [vmem:[%s7281_s8 + $0x118] sm:$0xff] }
 0x39e   : > { %4792 = vmatpush3.bf16.msra.mxu0 %v4789_v60  ;;  %v4945_v60 = vpack.c.bf16 %v2329_v58, %v2328_v57  ;;  %v3464_v48 = vld [vmem:[%s7281_s8 + $0x100] sm:$0xff]  ;;  %v3465_v50 = vld [vmem:[%s7281_s8 + $0x108] sm:$0xff]  ;;  %v4917_v4 = vpack.c.bf16 %v3467_v54, %v3466_v53  ;;  %v3471_v57 = vld [vmem:[%s7281_s8 + $0x138] sm:$0xff] }
 0x39f   : > { %4794 = vmatprep.subr.bf16.mxu0 %v4793_v3  ;;  %4880 = vmatpush3.bf16.msra.mxu1 %v4877_v62  ;;  %v4913_v52 = vpack.c.bf16 %v3465_v50, %v3464_v48  ;;  %v3468_v51 = vld [vmem:[%s7281_s8 + $0x120] sm:$0xff]  ;;  %v3469_v62 = vld [vmem:[%s7281_s8 + $0x128] sm:$0xff]  ;;  %v5324_v50 = vmov 0.0|0.0   ;;  %v3499_v54 = vld [vmem:[%s7284_s11 + $0x90] sm:$0xff] }
 0x3a0   : > { %4882 = vmatprep.subr.bf16.mxu1 %v4881_v56  ;;  %v4921_v55 = vpack.c.bf16 %v3469_v62, %v3468_v51  ;;  %v3472_v59 = vld [vmem:[%s7281_s8 + $0x140] sm:$0xff]  ;;  %v2519_v53 = vld [vmem:[%s7284_s11 + $0x8] sm:$0xff]  ;;  %v2520_v51 = vld [vmem:[%s7284_s11 + $0x10] sm:$0xff] }
 0x3a1   : > { %v2518_v48 = vld [vmem:[%s7284_s11] sm:$0xff]  ;;  %v2521_v62 = vld [vmem:[%s7284_s11 + $0x18] sm:$0xff] }
 0x3a2   : > { %4796 = vmatpush3.bf16.msra.mxu0 %v4793_v3  ;;  %v4953_v3 = vpack.c.bf16 %v2333_v1, %v2332_v0  ;;  %v3475_v0 = vld [vmem:[%s7281_s8 + $0x158] sm:$0xff] }
 0x3a3   : > { %4798 = vmatprep.subr.bf16.mxu0 %v4797_v8 }
 0x3a6   : > { %4800 = vmatpush3.bf16.msra.mxu0 %v4797_v8  ;;  %v4957_v8 = vpack.c.bf16 %v2335_v6, %v2334_v5  ;;  %v3477_v5 = vld [vmem:[%s7281_s8 + $0x168] sm:$0xff] }
 0x3a7   : > { %4802 = vmatprep.subr.bf16.mxu0 %v4801_v23 }
 0x3aa   : > { %4804 = vmatpush3.bf16.msra.mxu0 %v4801_v23  ;;  %v4961_v23 = vpack.c.bf16 %v2337_v36, %v2336_v24  ;;  %v3479_v24 = vld [vmem:[%s7281_s8 + $0x178] sm:$0xff] }
 0x3ab   : > { %4806 = vmatprep.subr.bf16.mxu0 %v4805_v9 }
 0x3ae   : > { %4808 = vmatpush3.bf16.msra.mxu0 %v4805_v9  ;;  %v4965_v9 = vpack.c.bf16 %v2339_v2, %v2338_v26  ;;  %v2342_v26 = vld [vmem:[%s7283_s10 + $0x70] sm:$0xff]  ;;  %v2343_v2 = vld [vmem:[%s7283_s10 + $0x78] sm:$0xff] }
 0x3af   : > { %4810 = vmatprep.subr.bf16.mxu0 %v4809_v12 }
 0x3b2   : > { %4812 = vmatpush3.bf16.msra.mxu0 %v4809_v12  ;;  %v4969_v12 = vpack.c.bf16 %v2341_v11, %v2340_v10  ;;  %v3481_v10 = vld [vmem:[%s7283_s10 + $0x80] sm:$0xff]  ;;  %v3482_v11 = vld [vmem:[%s7283_s10 + $0x88] sm:$0xff] }
 0x3b3   : > { %4814 = vmatprep.subr.bf16.mxu0 %v4813_v15 }
 0x3b6   : > { %4816 = vmatpush3.bf16.msra.mxu0 %v4813_v15 }
 0x3b7   : > { %4818 = vmatprep.subr.bf16.mxu0 %v4817_v18 }
 0x3b9   : > { %4016 = vmatmul.mubr.f32.vlgmr.msra.gmra.mrb[24].mxu0 %v1737_v25 }
 0x3ba   : > { %4820 = vmatpush3.bf16.msra.mxu0 %v4817_v18  ;;  %4050 = vmatprep.mubr.f32.mxu0 %v1923_v29  ;;  %v2041_v29 = vld [vmem:[%s7281_s8 + $0x28] sm:$0xff] }
 0x3bb   : > { %4822 = vmatprep.subr.bf16.mxu0 %v4821_v22  ;;  %v4889_v31 = vpack.c.bf16 %v2041_v29, %v2040_v28  ;;  %v3486_v28 = vld [vmem:[%s7283_s10 + $0xa8] sm:$0xff] }
 0x3be   : > { %4824 = vmatpush3.bf16.msra.mxu0 %v4821_v22  ;;  %v2039_v22 = vld [vmem:[%s7281_s8 + $0x18] sm:$0xff] }
 0x3bf   : > { %4826 = vmatprep.subr.bf16.mxu0 %v4825_v30  ;;  %v4885_v25 = vpack.c.bf16 %v2039_v22, %v2038_v21 }
 0x3c2   : > { %4828 = vmatpush3.bf16.msra.mxu0 %v4825_v30 }
 0x3c3   : > { %4830 = vmatprep.subr.bf16.mxu0 %v4829_v33 }
 0x3c6   : > { %4832 = vmatpush3.bf16.msra.mxu0 %v4829_v33  ;;  %v2043_v33 = vld [vmem:[%s7281_s8 + $0x38] sm:$0xff] }
 0x3c7   : > { %4834 = vmatprep.subr.bf16.mxu0 %v4833_v37  ;;  %v4893_v34 = vpack.c.bf16 %v2043_v33, %v2042_v32  ;;  %v3489_v33 = vld [vmem:[%s7283_s10 + $0xc0] sm:$0xff] }
 0x3ca   : > { %4836 = vmatpush3.bf16.msra.mxu0 %v4833_v37  ;;  %v2045_v37 = vld [vmem:[%s7281_s8 + $0x48] sm:$0xff] }
 0x3cb   : > { %4838 = vmatprep.subr.bf16.mxu0 %v4837_v40  ;;  %v4897_v38 = vpack.c.bf16 %v2045_v37, %v2044_v35  ;;  %v3491_v37 = vld [vmem:[%s7283_s10 + $0xd0] sm:$0xff] }
 0x3ce   : > { %4840 = vmatpush3.bf16.msra.mxu0 %v4837_v40  ;;  %v2047_v40 = vld [vmem:[%s7281_s8 + $0x58] sm:$0xff] }
 0x3cf   : > { %4842 = vmatprep.subr.bf16.mxu0 %v4841_v43  ;;  %v4901_v41 = vpack.c.bf16 %v2047_v40, %v2046_v39  ;;  %v3493_v40 = vld [vmem:[%s7283_s10 + $0xe0] sm:$0xff] }
 0x3d2   : > { %4844 = vmatpush3.bf16.msra.mxu0 %v4841_v43  ;;  %v2049_v43 = vld [vmem:[%s7281_s8 + $0x68] sm:$0xff] }
 0x3d3   : > { %4846 = vmatprep.subr.bf16.mxu0 %v4845_v46  ;;  %v4905_v44 = vpack.c.bf16 %v2049_v43, %v2048_v42  ;;  %v3495_v43 = vld [vmem:[%s7283_s10 + $0xf0] sm:$0xff] }
 0x3d6   : > { %4848 = vmatpush3.bf16.msra.mxu0 %v4845_v46  ;;  %v2051_v46 = vld [vmem:[%s7281_s8 + $0x78] sm:$0xff] }
 0x3d7   : > { %4946 = vmatprep.subr.bf16.mxu0 %v4945_v60 }
 0x3d9   : > { %4051 = vmatmul.mubr.f32.vlgmr.msra.gmra.mrb[24].mxu0 %v1924_v47  ;;  %v4909_v47 = vpack.c.bf16 %v2051_v46, %v2050_v45  ;;  %v3497_v46 = vld [vmem:[%s7284_s11 + $0x80] sm:$0xff] }
 0x3da   : > { %4948 = vmatpush3.bf16.msra.mxu0 %v4945_v60  ;;  %v3473_v60 = vld [vmem:[%s7281_s8 + $0x148] sm:$0xff] }
 0x3db   : > { %4950 = vmatprep.subr.bf16.mxu0 %v4949_v63  ;;  %v4929_v61 = vpack.c.bf16 %v3473_v60, %v3472_v59  ;;  %v2523_v59 = vld [vmem:[%s7284_s11 + $0x28] sm:$0xff] }
 0x3de   : > { %4952 = vmatpush3.bf16.msra.mxu0 %v4949_v63  ;;  %v3474_v63 = vld [vmem:[%s7281_s8 + $0x150] sm:$0xff] }
 0x3df   : > { %4954 = vmatprep.subr.bf16.mxu0 %v4953_v3  ;;  %v4933_v1 = vpack.c.bf16 %v3475_v0, %v3474_v63  ;;  %v3503_v63 = vld [vmem:[%s7284_s11 + $0xb0] sm:$0xff]  ;;  %v3504_v0 = vld [vmem:[%s7284_s11 + $0xb8] sm:$0xff] }
 0x3e2   : > { %4956 = vmatpush3.bf16.msra.mxu0 %v4953_v3  ;;  %v3476_v3 = vld [vmem:[%s7281_s8 + $0x160] sm:$0xff] }
 0x3e3   : > { %4958 = vmatprep.subr.bf16.mxu0 %v4957_v8  ;;  %v4937_v6 = vpack.c.bf16 %v3477_v5, %v3476_v3  ;;  %v2525_v3 = vld [vmem:[%s7284_s11 + $0x38] sm:$0xff]  ;;  %v5019_v5 = vpack.c.bf16 %v3504_v0, %v3503_v63  ;;  %v3535_v63 = vld [vmem:[%s7284_s11 + $0x1b0] sm:$0xff] }
 0x3e4   : > { %v3536_v0 = vld [vmem:[%s7284_s11 + $0x1b8] sm:$0xff] }
 0x3e6   : > { %4960 = vmatpush3.bf16.msra.mxu0 %v4957_v8  ;;  %v3478_v8 = vld [vmem:[%s7281_s8 + $0x170] sm:$0xff] }
 0x3e7   : > { %4962 = vmatprep.subr.bf16.mxu0 %v4961_v23  ;;  %v4941_v36 = vpack.c.bf16 %v3479_v24, %v3478_v8  ;;  %v3505_v8 = vld [vmem:[%s7284_s11 + $0xc0] sm:$0xff]  ;;  %v3506_v24 = vld [vmem:[%s7284_s11 + $0xc8] sm:$0xff] }
 0x3ea   : > { %4964 = vmatpush3.bf16.msra.mxu0 %v4961_v23 }
 0x3eb   : > { %4966 = vmatprep.subr.bf16.mxu0 %v4965_v9 }
 0x3ee   : > { %4968 = vmatpush3.bf16.msra.mxu0 %v4965_v9  ;;  %v4973_v9 = vpack.c.bf16 %v2343_v2, %v2342_v26  ;;  %v5022_v26 = vpack.c.bf16 %v3506_v24, %v3505_v8  ;;  %v3537_v8 = vld [vmem:[%s7284_s11 + $0x1c0] sm:$0xff]  ;;  %v3538_v24 = vld [vmem:[%s7284_s11 + $0x1c8] sm:$0xff] }
 0x3ef   : > { %4970 = vmatprep.subr.bf16.mxu0 %v4969_v12 }
 0x3f2   : > { %4972 = vmatpush3.bf16.msra.mxu0 %v4969_v12  ;;  %v4977_v12 = vpack.c.bf16 %v3482_v11, %v3481_v10  ;;  %v3508_v10 = vld [vmem:[%s7284_s11 + $0xd8] sm:$0xff]  ;;  %v2528_v11 = vld [vmem:[%s7284_s11 + $0x50] sm:$0xff] }
 0x3f3   : > { %4974 = vmatprep.subr.bf16.mxu0 %v4973_v9 }
 0x3f6   : > { %4976 = vmatpush3.bf16.msra.mxu0 %v4973_v9  ;;  %v3507_v9 = vld [vmem:[%s7284_s11 + $0xd0] sm:$0xff] }
 0x3f7   : > { %4978 = vmatprep.subr.bf16.mxu0 %v4977_v12 }
 0x4ac   : > { %v4052_v14 = vpop.f32.mrb[24].mxu0 }
 0x4ad   : > { %v2027_v15 = vadd.f32 %v4052_v14, %v3447_v13  ;;  %v2008_v16 = vpop.f32.mrb[25].mxu0 }
 0x4ae   : > { %v2026_v17 = vadd.f32 %v3447_v13, %v2008_v16  ;;  %v3480_v13 = vld [vmem:[%s7282_s9] ss:$0 sm:$0xff] }
 0x4af   : > { %v2029_v18 = vmax.f32 %v2027_v15, 0.0 }
 0x4b0   : > { %v2028_v19 = vmax.f32 %v2026_v17, 0.0 }
 0x4b1   : > { %2033 = vst [vmem:[#allocation4 + $0x9] sm:$0x3f] %v2029_v18  ;;  %v3483_v18 = vld [vmem:[%s7283_s10 + $0x90] sm:$0xff] }
 0x4b2   : > { %2032 = vst [vmem:[#allocation4 + $0x1] sm:$0xff] %v2028_v19  ;;  %4085 = vmatprep.mubr.f32.mxu1 %v2028_v19  ;;  %v3484_v19 = vld [vmem:[%s7283_s10 + $0x98] sm:$0xff] }
 0x4b8   : > { %v2053_v27 = vld [vmem:[#allocation4 + $0x9] sm:$0x3f] }
 0x4b9   : > { %4086 = vmatmul.mubr.f32.vlgmr.msra.gmra.mrb[8].mxu1 %v2053_v27  ;;  %v2034_v30 = vld [vmem:[#allocation4] sm:$0xff]  ;;  %v2035_v49 = vld [vmem:[#allocation4 + $0x8] sm:$0x3f]  ;;  %v3485_v27 = vld [vmem:[%s7283_s10 + $0xa0] sm:$0xff] }
 0x4ba   : > { %4884 = vmatpush3.bf16.msra.mxu1 %v4881_v56  ;;  %4120 = vmatprep.mubr.f32.mxu1 %v2034_v30  ;;  %v2221_v20 = vld [vmem:[#allocation4 + $0x2] sm:$0xff]  ;;  %v2222_v23 = vld [vmem:[#allocation4 + $0xa] sm:$0x3f]  ;;  %v4985_v29 = vpack.c.bf16 %v3486_v28, %v3485_v27 }
 0x4bb   : > { %4886 = vmatprep.subr.bf16.mxu1 %v4885_v25  ;;  %v3470_v56 = vld [vmem:[%s7281_s8 + $0x130] sm:$0xff]  ;;  %v2533_v28 = vld [vmem:[%s7284_s11 + $0x78] sm:$0xff] }
 0x4bc   : > { %v4925_v58 = vpack.c.bf16 %v3471_v57, %v3470_v56  ;;  %v3487_v30 = vld [vmem:[%s7283_s10 + $0xb0] sm:$0xff]  ;;  %v3501_v56 = vld [vmem:[%s7284_s11 + $0xa0] sm:$0xff]  ;;  %v3502_v57 = vld [vmem:[%s7284_s11 + $0xa8] sm:$0xff] }
 0x4bd   : > { %v5016_v60 = vpack.c.bf16 %v3502_v57, %v3501_v56  ;;  %v2532_v27 = vld [vmem:[%s7284_s11 + $0x70] sm:$0xff]  ;;  %v3533_v56 = vld [vmem:[%s7284_s11 + $0x1a0] sm:$0xff]  ;;  %v3534_v57 = vld [vmem:[%s7284_s11 + $0x1a8] sm:$0xff] }
 0x4be   : > { %4888 = vmatpush3.bf16.msra.mxu1 %v4885_v25  ;;  %v4981_v25 = vpack.c.bf16 %v3484_v19, %v3483_v18  ;;  %v2531_v19 = vld [vmem:[%s7284_s11 + $0x68] sm:$0xff] }
 0x4bf   : > { %4890 = vmatprep.subr.bf16.mxu1 %v4889_v31 }
 0x4c2   : > { %4892 = vmatpush3.bf16.msra.mxu1 %v4889_v31  ;;  %v3488_v31 = vld [vmem:[%s7283_s10 + $0xb8] sm:$0xff] }
 0x4c3   : > { %4894 = vmatprep.subr.bf16.mxu1 %v4893_v34  ;;  %v4989_v32 = vpack.c.bf16 %v3488_v31, %v3487_v30  ;;  %v5055_v30 = vpack.c.bf16 %v2533_v28, %v2532_v27 }
 0x4c6   : > { %4896 = vmatpush3.bf16.msra.mxu1 %v4893_v34  ;;  %v3490_v34 = vld [vmem:[%s7283_s10 + $0xc8] sm:$0xff] }
 0x4c7   : > { %4898 = vmatprep.subr.bf16.mxu1 %v4897_v38  ;;  %v4993_v35 = vpack.c.bf16 %v3490_v34, %v3489_v33 }
 0x4ca   : > { %4900 = vmatpush3.bf16.msra.mxu1 %v4897_v38  ;;  %v3492_v38 = vld [vmem:[%s7283_s10 + $0xd8] sm:$0xff] }
 0x4cb   : > { %4902 = vmatprep.subr.bf16.mxu1 %v4901_v41  ;;  %v4997_v39 = vpack.c.bf16 %v3492_v38, %v3491_v37  ;;  %v3513_v38 = vld [vmem:[%s7284_s11 + $0x100] sm:$0xff] }
 0x4ce   : > { %4904 = vmatpush3.bf16.msra.mxu1 %v4901_v41  ;;  %v3494_v41 = vld [vmem:[%s7283_s10 + $0xe8] sm:$0xff] }
 0x4cf   : > { %4906 = vmatprep.subr.bf16.mxu1 %v4905_v44  ;;  %v5001_v42 = vpack.c.bf16 %v3494_v41, %v3493_v40  ;;  %v3529_v40 = vld [vmem:[%s7284_s11 + $0x180] sm:$0xff]  ;;  %v3530_v41 = vld [vmem:[%s7284_s11 + $0x188] sm:$0xff] }
 0x4d2   : > { %4908 = vmatpush3.bf16.msra.mxu1 %v4905_v44  ;;  %v3496_v44 = vld [vmem:[%s7283_s10 + $0xf8] sm:$0xff] }
 0x4d3   : > { %4910 = vmatprep.subr.bf16.mxu1 %v4909_v47  ;;  %v5005_v45 = vpack.c.bf16 %v3496_v44, %v3495_v43 }
 0x4d6   : > { %4912 = vmatpush3.bf16.msra.mxu1 %v4909_v47  ;;  %v3498_v47 = vld [vmem:[%s7284_s11 + $0x88] sm:$0xff] }
 0x4d7   : > { %4914 = vmatprep.subr.bf16.mxu1 %v4913_v52 }
 0x4d9   : > { %4121 = vmatmul.mubr.f32.vlgmr.msra.gmra.mrb[8].mxu1 %v2035_v49  ;;  %v5034_v49 = vpack.c.bf16 %v2519_v53, %v2518_v48  ;;  %v5082_v48 = vpack.c.bf16 %v3530_v41, %v3529_v40  ;;  %v3516_v53 = vld [vmem:[%s7284_s11 + $0x118] sm:$0xff]  ;;  %v3547_v41 = vld [vmem:[%s7284_s11 + $0x210] sm:$0xff] }
 0x4da   : > { %4916 = vmatpush3.bf16.msra.mxu1 %v4913_v52  ;;  %4155 = vmatprep.mubr.f32.mxu1 %v2221_v20  ;;  %v5010_v52 = vpack.c.bf16 %v3498_v47, %v3497_v46 }
 0x4db   : > { %4918 = vmatprep.subr.bf16.mxu1 %v4917_v4 }
 0x4de   : > { %4920 = vmatpush3.bf16.msra.mxu1 %v4917_v4  ;;  %v3500_v4 = vld [vmem:[%s7284_s11 + $0x98] sm:$0xff] }
 0x4df   : > { %4922 = vmatprep.subr.bf16.mxu1 %v4921_v55  ;;  %v5013_v20 = vpack.c.bf16 %v3500_v4, %v3499_v54  ;;  %v3531_v4 = vld [vmem:[%s7284_s11 + $0x190] sm:$0xff] }
 0x4e2   : > { %4924 = vmatpush3.bf16.msra.mxu1 %v4921_v55  ;;  %v5037_v55 = vpack.c.bf16 %v2521_v62, %v2520_v51 }
 0x4e3   : > { %4926 = vmatprep.subr.bf16.mxu1 %v4925_v58 }
 0x4e6   : > { %4928 = vmatpush3.bf16.msra.mxu1 %v4925_v58  ;;  %v2522_v58 = vld [vmem:[%s7284_s11 + $0x20] sm:$0xff] }
 0x4e7   : > { %4930 = vmatprep.subr.bf16.mxu1 %v4929_v61 }
 0x4ea   : > { %4932 = vmatpush3.bf16.msra.mxu1 %v4929_v61  ;;  %v5040_v61 = vpack.c.bf16 %v2523_v59, %v2522_v58  ;;  %v5088_v59 = vpack.c.bf16 %v3534_v57, %v3533_v56 }
 0x4eb   : > { %4934 = vmatprep.subr.bf16.mxu1 %v4933_v1 }
 0x4ee   : > { %4936 = vmatpush3.bf16.msra.mxu1 %v4933_v1  ;;  %v2524_v1 = vld [vmem:[%s7284_s11 + $0x30] sm:$0xff] }
 0x4ef   : > { %4938 = vmatprep.subr.bf16.mxu1 %v4937_v6 }
 0x4f2   : > { %4940 = vmatpush3.bf16.msra.mxu1 %v4937_v6  ;;  %v5043_v6 = vpack.c.bf16 %v2525_v3, %v2524_v1  ;;  %v5091_v3 = vpack.c.bf16 %v3536_v0, %v3535_v63 }
 0x4f3   : > { %4942 = vmatprep.subr.bf16.mxu1 %v4941_v36 }
 0x4f6   : > { %4944 = vmatpush3.bf16.msra.mxu1 %v4941_v36  ;;  %v2526_v36 = vld [vmem:[%s7284_s11 + $0x40] sm:$0xff] }
 0x4f7   : > { %5033 = vmatprep.subr.bf16.mxu1 %v5324_v50 }
 0x4f9   : > { %4156 = vmatmul.mubr.f32.vlgmr.msra.gmra.mrb[8].mxu1 %v2222_v23  ;;  %v2527_v23 = vld [vmem:[%s7284_s11 + $0x48] sm:$0xff] }
 0x4fa   : > { %5035 = vmatpush3.bf16.msra.mxu1 %v5034_v49  ;;  %v5046_v2 = vpack.c.bf16 %v2527_v23, %v2526_v36  ;;  %4295 = vmatprep.mubr.msk.f32.mxu1 %vm5325_vm5, %v5323_v7  ;;  %v3532_v49 = vld [vmem:[%s7284_s11 + $0x198] sm:$0xff]  ;;  %v5094_v23 = vpack.c.bf16 %v3538_v24, %v3537_v8 }
 0x4fb   : > { %5036 = vmatprep.subr.bf16.mxu1 %v5324_v50  ;;  %v5085_v62 = vpack.c.bf16 %v3532_v49, %v3531_v4 }
 0x4fe   : > { %5038 = vmatpush3.bf16.msra.mxu1 %v5037_v55  ;;  %v3518_v55 = vld [vmem:[%s7284_s11 + $0x128] sm:$0xff] }
 0x4ff   : > { %5039 = vmatprep.subr.bf16.mxu1 %v5324_v50 }
 0x502   : > { %5041 = vmatpush3.bf16.msra.mxu1 %v5040_v61  ;;  %v3520_v61 = vld [vmem:[%s7284_s11 + $0x138] sm:$0xff] }
 0x503   : > { %5042 = vmatprep.subr.bf16.mxu1 %v5324_v50 }
 0x506   : > { %5044 = vmatpush3.bf16.msra.mxu1 %v5043_v6  ;;  %v3522_v6 = vld [vmem:[%s7284_s11 + $0x148] sm:$0xff] }
 0x507   : > { %5045 = vmatprep.subr.bf16.mxu1 %v5324_v50 }
 0x50a   : > { %5047 = vmatpush3.bf16.msra.mxu1 %v5046_v2  ;;  %v3524_v2 = vld [vmem:[%s7284_s11 + $0x158] sm:$0xff] }
 0x50b   : > { %5048 = vmatprep.subr.bf16.mxu1 %v5324_v50 }
 0x5cc   : > { %v4157_v14 = vpop.f32.mrb[8].mxu1 }
 0x5cd   : > { %v2325_v15 = vadd.f32 %v4157_v14, %v3480_v13  ;;  %v2306_v16 = vpop.f32.mrb[9].mxu1 }
 0x5ce   : > { %v2324_v17 = vadd.f32 %v3480_v13, %v2306_v16  ;;  %v2529_v13 = vld [vmem:[%s7284_s11 + $0x58] sm:$0xff]  ;;  %v3510_v16 = vld [vmem:[%s7284_s11 + $0xe8] sm:$0xff] }
 0x5cf   : > { %v2327_v22 = vmax.f32 %v2325_v15, 0.0  ;;  %v5049_v14 = vpack.c.bf16 %v2529_v13, %v2528_v11  ;;  %v3509_v15 = vld [vmem:[%s7284_s11 + $0xe0] sm:$0xff] }
 0x5d0   : > { %v2326_v21 = vmax.f32 %v2324_v17, 0.0  ;;  %v2530_v17 = vld [vmem:[%s7284_s11 + $0x60] sm:$0xff]  ;;  %v5028_v18 = vpack.c.bf16 %v3510_v16, %v3509_v15  ;;  %v3542_v16 = vld [vmem:[%s7284_s11 + $0x1e8] sm:$0xff] }
 0x5d1   : > { %5050 = vmatpush3.bf16.msra.mxu1 %v5049_v14  ;;  %v3525_v13 = vld [vmem:[%s7284_s11 + $0x160] sm:$0xff]  ;;  %v3526_v14 = vld [vmem:[%s7284_s11 + $0x168] sm:$0xff] }
 0x5d2   : > { %4190 = vmatprep.mubr.f32.mxu0 %v2326_v21  ;;  %5051 = vmatprep.subr.bf16.mxu1 %v5324_v50  ;;  %v3541_v15 = vld [vmem:[%s7284_s11 + $0x1e0] sm:$0xff] }
 0x5d3   : > { %4191 = vmatmul.mubr.f32.vlgmr.msra.gmra.mrb[26].mxu0 %v2327_v22 }
 0x5d4   : > { %4980 = vmatpush3.bf16.msra.mxu0 %v4977_v12  ;;  %4225 = vmatprep.mubr.f32.mxu0 %v2326_v21  ;;  %v5025_v12 = vpack.c.bf16 %v3508_v10, %v3507_v9  ;;  %v3511_v21 = vld [vmem:[%s7284_s11 + $0xf0] sm:$0xff]  ;;  %v3540_v10 = vld [vmem:[%s7284_s11 + $0x1d8] sm:$0xff] }
 0x5d5   : > { %4982 = vmatprep.subr.bf16.mxu0 %v4981_v25  ;;  %v3539_v9 = vld [vmem:[%s7284_s11 + $0x1d0] sm:$0xff] }
 0x5d8   : > { %4984 = vmatpush3.bf16.msra.mxu0 %v4981_v25  ;;  %v5052_v25 = vpack.c.bf16 %v2531_v19, %v2530_v17  ;;  %v5076_v17 = vpack.c.bf16 %v3526_v14, %v3525_v13  ;;  %v3527_v19 = vld [vmem:[%s7284_s11 + $0x170] sm:$0xff]  ;;  %v3576_v14 = vld [vmem:[%s7284_s11 + $0x2f8] sm:$0xff] }
 0x5d9   : > { %4986 = vmatprep.subr.bf16.mxu0 %v4985_v29  ;;  %v3575_v13 = vld [vmem:[%s7284_s11 + $0x2f0] sm:$0xff] }
 0x5da   : > { %5053 = vmatpush3.bf16.msra.mxu1 %v5052_v25  ;;  %v3544_v25 = vld [vmem:[%s7284_s11 + $0x1f8] sm:$0xff] }
 0x5db   : > { %5054 = vmatprep.subr.bf16.mxu1 %v5324_v50 }
 0x5dc   : > { %4988 = vmatpush3.bf16.msra.mxu0 %v4985_v29 }
 0x5dd   : > { %4990 = vmatprep.subr.bf16.mxu0 %v4989_v32 }
 0x5de   : > { %5056 = vmatpush3.bf16.msra.mxu1 %v5055_v30  ;;  %v3546_v30 = vld [vmem:[%s7284_s11 + $0x208] sm:$0xff] }
 0x5df   : > { %5081 = vmatprep.subr.bf16.mxu1 %v5324_v50 }
 0x5e0   : > { %4992 = vmatpush3.bf16.msra.mxu0 %v4989_v32 }
 0x5e1   : > { %4994 = vmatprep.subr.bf16.mxu0 %v4993_v35 }
 0x5e4   : > { %4996 = vmatpush3.bf16.msra.mxu0 %v4993_v35 }
 0x5e5   : > { %4998 = vmatprep.subr.bf16.mxu0 %v4997_v39 }
 0x5e8   : > { %5000 = vmatpush3.bf16.msra.mxu0 %v4997_v39  ;;  %v3514_v39 = vld [vmem:[%s7284_s11 + $0x108] sm:$0xff] }
 0x5e9   : > { %5002 = vmatprep.subr.bf16.mxu0 %v5001_v42 }
 0x5ec   : > { %5004 = vmatpush3.bf16.msra.mxu0 %v5001_v42 }
 0x5ed   : > { %5006 = vmatprep.subr.bf16.mxu0 %v5005_v45 }
 0x5f0   : > { %5008 = vmatpush3.bf16.msra.mxu0 %v5005_v45  ;;  %v5058_v45 = vpack.c.bf16 %v3514_v39, %v3513_v38 }
 0x5f1   : > { %5009 = vmatprep.subr.bf16.mxu0 %v5324_v50 }
 0x5f3   : > { %4226 = vmatmul.mubr.f32.vlgmr.msra.gmra.mrb[28].mxu0 %v2327_v22  ;;  %v3512_v22 = vld [vmem:[%s7284_s11 + $0xf8] sm:$0xff] }
 0x5f4   : > { %5011 = vmatpush3.bf16.msra.mxu0 %v5010_v52  ;;  %4260 = vmatprep.mubr.msk.f32.mxu0 %vm5325_vm5, %v5323_v7  ;;  %v5031_v29 = vpack.c.bf16 %v3512_v22, %v3511_v21  ;;  %v3515_v52 = vld [vmem:[%s7284_s11 + $0x110] sm:$0xff]  ;;  %v3528_v21 = vld [vmem:[%s7284_s11 + $0x178] sm:$0xff] }
 0x5f5   : > { %5012 = vmatprep.subr.bf16.mxu0 %v5324_v50  ;;  %v5061_v51 = vpack.c.bf16 %v3516_v53, %v3515_v52  ;;  %v3543_v22 = vld [vmem:[%s7284_s11 + $0x1f0] sm:$0xff]  ;;  %v5079_v27 = vpack.c.bf16 %v3528_v21, %v3527_v19  ;;  %v3550_v52 = vld [vmem:[%s7284_s11 + $0x228] sm:$0xff]  ;;  %v3565_v53 = vld [vmem:[%s7284_s11 + $0x2a0] sm:$0xff] }
 0x5f6   : > { %v5103_v28 = vpack.c.bf16 %v3544_v25, %v3543_v22 }
 0x5f8   : > { %5014 = vmatpush3.bf16.msra.mxu0 %v5013_v20  ;;  %v3517_v20 = vld [vmem:[%s7284_s11 + $0x120] sm:$0xff] }
 0x5f9   : > { %5015 = vmatprep.subr.bf16.mxu0 %v5324_v50  ;;  %v5064_v58 = vpack.c.bf16 %v3518_v55, %v3517_v20  ;;  %v3567_v20 = vld [vmem:[%s7284_s11 + $0x2b0] sm:$0xff]  ;;  %v3568_v55 = vld [vmem:[%s7284_s11 + $0x2b8] sm:$0xff] }
 0x5fa   : > { %v5139_v57 = vpack.c.bf16 %v3568_v55, %v3567_v20 }
 0x5fc   : > { %5017 = vmatpush3.bf16.msra.mxu0 %v5016_v60  ;;  %v3519_v60 = vld [vmem:[%s7284_s11 + $0x130] sm:$0xff] }
 0x5fd   : > { %5018 = vmatprep.subr.bf16.mxu0 %v5324_v50  ;;  %v5067_v1 = vpack.c.bf16 %v3520_v61, %v3519_v60  ;;  %v3569_v60 = vld [vmem:[%s7284_s11 + $0x2c0] sm:$0xff]  ;;  %v3570_v61 = vld [vmem:[%s7284_s11 + $0x2c8] sm:$0xff] }
 0x5fe   : > { %v5142_v0 = vpack.c.bf16 %v3570_v61, %v3569_v60 }
 0x600   : > { %5020 = vmatpush3.bf16.msra.mxu0 %v5019_v5  ;;  %v3521_v5 = vld [vmem:[%s7284_s11 + $0x140] sm:$0xff] }
 0x601   : > { %5021 = vmatprep.subr.bf16.mxu0 %v5324_v50  ;;  %v5070_v36 = vpack.c.bf16 %v3522_v6, %v3521_v5  ;;  %v3571_v5 = vld [vmem:[%s7284_s11 + $0x2d0] sm:$0xff]  ;;  %v3572_v6 = vld [vmem:[%s7284_s11 + $0x2d8] sm:$0xff] }
 0x602   : > { %v5145_v24 = vpack.c.bf16 %v3572_v6, %v3571_v5 }
 0x604   : > { %5023 = vmatpush3.bf16.msra.mxu0 %v5022_v26  ;;  %v3523_v26 = vld [vmem:[%s7284_s11 + $0x150] sm:$0xff] }
 0x605   : > { %5024 = vmatprep.subr.bf16.mxu0 %v5324_v50  ;;  %v5073_v11 = vpack.c.bf16 %v3524_v2, %v3523_v26  ;;  %v3573_v26 = vld [vmem:[%s7284_s11 + $0x2e0] sm:$0xff]  ;;  %v3574_v2 = vld [vmem:[%s7284_s11 + $0x2e8] sm:$0xff] }
 0x608   : > { %5026 = vmatpush3.bf16.msra.mxu0 %v5025_v12  ;;  %v5097_v12 = vpack.c.bf16 %v3540_v10, %v3539_v9  ;;  %v5148_v10 = vpack.c.bf16 %v3574_v2, %v3573_v26 }
 0x609   : > { %5027 = vmatprep.subr.bf16.mxu0 %v5324_v50 }
 0x60c   : > { %5029 = vmatpush3.bf16.msra.mxu0 %v5028_v18  ;;  %v5100_v18 = vpack.c.bf16 %v3542_v16, %v3541_v15  ;;  %v5151_v16 = vpack.c.bf16 %v3576_v14, %v3575_v13 }
 0x60d   : > { %5030 = vmatprep.subr.bf16.mxu0 %v5324_v50 }
 0x610   : > { %5032 = vmatpush3.bf16.msra.mxu0 %v5031_v29  ;;  %v3545_v29 = vld [vmem:[%s7284_s11 + $0x200] sm:$0xff] }
 0x611   : > { %5057 = vmatprep.subr.bf16.mxu0 %v5324_v50  ;;  %v5106_v38 = vpack.c.bf16 %v3546_v30, %v3545_v29  ;;  %v3579_v29 = vld [vmem:[%s7284_s11 + $0x310] sm:$0xff]  ;;  %v3580_v30 = vld [vmem:[%s7284_s11 + $0x318] sm:$0xff] }
 0x6a6   : > { %v4192_v31 = vpop.f32.mrb[26].mxu0 }
 0x6a7   : > { %v2410_v32 = vpop.f32.mrb[27].mxu0 }
 0x6c6   : > { %v4227_v33 = vpop.f32.mrb[28].mxu0 }
 0x6c7   : > { %v2512_v34 = vmax.f32 %v4192_v31, %v4227_v33  ;;  %v2502_v35 = vpop.f32.mrb[29].mxu0  ;;  %v3561_v31 = vld [vmem:[%s7284_s11 + $0x280] sm:$0xff] }
 0x6c8   : > { %v2511_v37 = vmax.f32 %v2410_v32, %v2502_v35 }
 0x6c9   : > { %2514 = vst [vmem:[#allocation6 + $0x8] sm:$0x3f] %v2512_v34  ;;  %v3562_v34 = vld [vmem:[%s7284_s11 + $0x288] sm:$0xff] }
 0x6ca   : > { %2513 = vst [vmem:[#allocation6] sm:$0xff] %v2511_v37  ;;  %v5130_v40 = vpack.c.bf16 %v3562_v34, %v3561_v31  ;;  %v3582_v34 = vld [vmem:[%s7284_s11 + $0x328] sm:$0xff] }
 0x6d0   : > { %v2876_v19 = vld [vmem:[#allocation6 + $0x8] sm:$0x1]  ;;  %v2877_v21 = vld [vmem:[#allocation6 + $0x9] sm:$0x1]  ;;  %v2967_v22 = vld [vmem:[#allocation6 + $0xa] sm:$0x1] }
 0x6d1   : > { %v2534_v42 = vld [vmem:[#allocation6 + $0x2] sm:$0x1]  ;;  %v2535_v43 = vld [vmem:[#allocation6 + $0x3] sm:$0x1]  ;;  %v2515_v44 = vld [vmem:[#allocation6] sm:$0x1] }
 0x6d2   : > { %v2536_v46 = vmax.f32 %v2534_v42, %v2535_v43  ;;  %v2516_v47 = vld [vmem:[#allocation6 + $0x1] sm:$0x1]  ;;  %v2694_v32 = vld [vmem:[#allocation6 + $0x4] sm:$0x1]  ;;  %v2695_v33 = vld [vmem:[#allocation6 + $0x5] sm:$0x1] }
 0x6d3   : > { %v2517_v54 = vmax.f32 %v2515_v44, %v2516_v47  ;;  %v2785_v35 = vld [vmem:[#allocation6 + $0x6] sm:$0x1]  ;;  %v2786_v37 = vld [vmem:[#allocation6 + $0x7] sm:$0x1]  ;;  %v2696_v39 = vmax.f32 %v2694_v32, %v2695_v33  ;;  %v3548_v42 = vld [vmem:[%s7284_s11 + $0x218] sm:$0xff]  ;;  %v5157_v32 = vpack.c.bf16 %v3580_v30, %v3579_v29 }
 0x6d4   : > { %4261 = vmatmul.mubr.f32.vlgmr.msra.gmra.mrb[30].mxu0 %v2536_v46  ;;  %v2787_v43 = vmax.f32 %v2785_v35, %v2786_v37  ;;  %v3563_v44 = vld [vmem:[%s7284_s11 + $0x290] sm:$0xff]  ;;  %v5109_v46 = vpack.c.bf16 %v3548_v42, %v3547_v41  ;;  %v2968_v25 = vld [vmem:[#allocation6 + $0xb] sm:$0x1]  ;;  %v3581_v33 = vld [vmem:[%s7284_s11 + $0x320] sm:$0xff] }
 0x6d5   : > { %4296 = vmatmul.mubr.f32.vlgmr.msra.gmra.mrb[10].mxu1 %v2517_v54  ;;  %5059 = vmatpush3.bf16.msra.mxu0 %v5058_v45  ;;  %v3564_v45 = vld [vmem:[%s7284_s11 + $0x298] sm:$0xff]  ;;  %v3566_v54 = vld [vmem:[%s7284_s11 + $0x2a8] sm:$0xff]  ;;  %v2969_v31 = vmax.f32 %v2967_v22, %v2968_v25  ;;  %v5160_v35 = vpack.c.bf16 %v3582_v34, %v3581_v33  ;;  %v3583_v37 = vld [vmem:[%s7284_s11 + $0x330] sm:$0xff] }
 0x6d6   : > { %5083 = vmatpush3.bf16.msra.mxu1 %v5082_v48  ;;  %5060 = vmatprep.subr.bf16.mxu0 %v5324_v50  ;;  %v5133_v47 = vpack.c.bf16 %v3564_v45, %v3563_v44  ;;  %v3549_v48 = vld [vmem:[%s7284_s11 + $0x220] sm:$0xff]  ;;  %v5136_v49 = vpack.c.bf16 %v3566_v54, %v3565_v53  ;;  %v3587_v42 = vld [vmem:[%s7284_s11 + $0x350] sm:$0xff]  ;;  %v3058_v54 = vld [vmem:[#allocation6 + $0xc] sm:$0x1] }
 0x6d7   : > { %5084 = vmatprep.subr.bf16.mxu1 %v5324_v50  ;;  %4330 = vmatprep.mubr.msk.f32.mxu0 %vm5325_vm5, %v5323_v7  ;;  %v5112_v4 = vpack.c.bf16 %v3550_v52, %v3549_v48  ;;  %v3589_v45 = vld [vmem:[%s7284_s11 + $0x360] sm:$0xff]  ;;  %v3591_v48 = vld [vmem:[%s7284_s11 + $0x370] sm:$0xff]  ;;  %v3592_v52 = vld [vmem:[%s7284_s11 + $0x378] sm:$0xff] }
 0x6d8   : > { %4365 = vmatprep.mubr.msk.f32.mxu1 %vm5325_vm5, %v5323_v7  ;;  %v5175_v53 = vpack.c.bf16 %v3592_v52, %v3591_v48 }
 0x6d9   : > { %5062 = vmatpush3.bf16.msra.mxu0 %v5061_v51  ;;  %v3551_v51 = vld [vmem:[%s7284_s11 + $0x230] sm:$0xff] }
 0x6da   : > { %5086 = vmatpush3.bf16.msra.mxu1 %v5085_v62  ;;  %5063 = vmatprep.subr.bf16.mxu0 %v5324_v50  ;;  %v3552_v62 = vld [vmem:[%s7284_s11 + $0x238] sm:$0xff] }
 0x6db   : > { %5087 = vmatprep.subr.bf16.mxu1 %v5324_v50  ;;  %v5115_v56 = vpack.c.bf16 %v3552_v62, %v3551_v51 }
 0x6dd   : > { %5065 = vmatpush3.bf16.msra.mxu0 %v5064_v58  ;;  %v3553_v58 = vld [vmem:[%s7284_s11 + $0x240] sm:$0xff] }
 0x6de   : > { %5089 = vmatpush3.bf16.msra.mxu1 %v5088_v59  ;;  %5066 = vmatprep.subr.bf16.mxu0 %v5324_v50  ;;  %v3554_v59 = vld [vmem:[%s7284_s11 + $0x248] sm:$0xff] }
 0x6df   : > { %5090 = vmatprep.subr.bf16.mxu1 %v5324_v50  ;;  %v5118_v63 = vpack.c.bf16 %v3554_v59, %v3553_v58 }
 0x6e1   : > { %5068 = vmatpush3.bf16.msra.mxu0 %v5067_v1  ;;  %v3555_v1 = vld [vmem:[%s7284_s11 + $0x250] sm:$0xff] }
 0x6e2   : > { %5092 = vmatpush3.bf16.msra.mxu1 %v5091_v3  ;;  %5069 = vmatprep.subr.bf16.mxu0 %v5324_v50  ;;  %v3556_v3 = vld [vmem:[%s7284_s11 + $0x258] sm:$0xff] }
 0x6e3   : > { %5093 = vmatprep.subr.bf16.mxu1 %v5324_v50  ;;  %v5121_v8 = vpack.c.bf16 %v3556_v3, %v3555_v1 }
 0x6e5   : > { %5071 = vmatpush3.bf16.msra.mxu0 %v5070_v36  ;;  %v3557_v36 = vld [vmem:[%s7284_s11 + $0x260] sm:$0xff] }
 0x6e6   : > { %5095 = vmatpush3.bf16.msra.mxu1 %v5094_v23  ;;  %5072 = vmatprep.subr.bf16.mxu0 %v5324_v50  ;;  %v3558_v23 = vld [vmem:[%s7284_s11 + $0x268] sm:$0xff] }
 0x6e7   : > { %5096 = vmatprep.subr.bf16.mxu1 %v5324_v50  ;;  %v5124_v9 = vpack.c.bf16 %v3558_v23, %v3557_v36 }
 0x6e9   : > { %5074 = vmatpush3.bf16.msra.mxu0 %v5073_v11  ;;  %v3559_v11 = vld [vmem:[%s7284_s11 + $0x270] sm:$0xff] }
 0x6ea   : > { %5098 = vmatpush3.bf16.msra.mxu1 %v5097_v12  ;;  %5075 = vmatprep.subr.bf16.mxu0 %v5324_v50  ;;  %v3560_v12 = vld [vmem:[%s7284_s11 + $0x278] sm:$0xff] }
 0x6eb   : > { %5099 = vmatprep.subr.bf16.mxu1 %v5324_v50  ;;  %v5127_v15 = vpack.c.bf16 %v3560_v12, %v3559_v11 }
 0x6ed   : > { %5077 = vmatpush3.bf16.msra.mxu0 %v5076_v17  ;;  %v3577_v17 = vld [vmem:[%s7284_s11 + $0x300] sm:$0xff] }
 0x6ee   : > { %5101 = vmatpush3.bf16.msra.mxu1 %v5100_v18  ;;  %5078 = vmatprep.subr.bf16.mxu0 %v5324_v50  ;;  %v3578_v18 = vld [vmem:[%s7284_s11 + $0x308] sm:$0xff] }
 0x6ef   : > { %5102 = vmatprep.subr.bf16.mxu1 %v5324_v50 }
 0x6f1   : > { %5080 = vmatpush3.bf16.msra.mxu0 %v5079_v27  ;;  %v5154_v27 = vpack.c.bf16 %v3578_v18, %v3577_v17 }
 0x6f2   : > { %5104 = vmatpush3.bf16.msra.mxu1 %v5103_v28  ;;  %5105 = vmatprep.subr.bf16.mxu0 %v5324_v50  ;;  %v2878_v28 = vmax.f32 %v2876_v19, %v2877_v21 }
 0x6f3   : > { %5129 = vmatprep.subr.bf16.mxu1 %v5324_v50 }
 0x6f4   : > { %4331 = vmatmul.mubr.f32.vlgmr.msra.gmra.mrb[32].mxu0 %v2696_v39 }
 0x6f5   : > { %4366 = vmatmul.mubr.f32.vlgmr.msra.gmra.mrb[12].mxu1 %v2787_v43  ;;  %5107 = vmatpush3.bf16.msra.mxu0 %v5106_v38  ;;  %v3584_v38 = vld [vmem:[%s7284_s11 + $0x338] sm:$0xff] }
 0x6f6   : > { %5131 = vmatpush3.bf16.msra.mxu1 %v5130_v40  ;;  %5108 = vmatprep.subr.bf16.mxu0 %v5324_v50  ;;  %v5163_v39 = vpack.c.bf16 %v3584_v38, %v3583_v37  ;;  %v3586_v40 = vld [vmem:[%s7284_s11 + $0x348] sm:$0xff]  ;;  %v3588_v43 = vld [vmem:[%s7284_s11 + $0x358] sm:$0xff] }
 0x6f7   : > { %5132 = vmatprep.subr.bf16.mxu1 %v5324_v50  ;;  %4400 = vmatprep.mubr.msk.f32.mxu0 %vm5325_vm5, %v5323_v7  ;;  %v5169_v44 = vpack.c.bf16 %v3588_v43, %v3587_v42 }
 0x6f8   : > { %4435 = vmatprep.mubr.msk.f32.mxu1 %vm5325_vm5, %v5323_v7 }
 0x6f9   : > { %5110 = vmatpush3.bf16.msra.mxu0 %v5109_v46  ;;  %v3590_v46 = vld [vmem:[%s7284_s11 + $0x368] sm:$0xff] }
 0x6fa   : > { %5134 = vmatpush3.bf16.msra.mxu1 %v5133_v47  ;;  %5111 = vmatprep.subr.bf16.mxu0 %v5324_v50  ;;  %v5172_v47 = vpack.c.bf16 %v3590_v46, %v3589_v45 }
 0x6fb   : > { %5135 = vmatprep.subr.bf16.mxu1 %v5324_v50 }
 0x6fd   : > { %5113 = vmatpush3.bf16.msra.mxu0 %v5112_v4  ;;  %v3059_v4 = vld [vmem:[#allocation6 + $0xd] sm:$0x1] }
 0x6fe   : > { %5137 = vmatpush3.bf16.msra.mxu1 %v5136_v49  ;;  %5114 = vmatprep.subr.bf16.mxu0 %v5324_v50  ;;  %v3060_v49 = vmax.f32 %v3058_v54, %v3059_v4 }
 0x6ff   : > { %5138 = vmatprep.subr.bf16.mxu1 %v5324_v50 }
 0x701   : > { %5116 = vmatpush3.bf16.msra.mxu0 %v5115_v56 }
 0x702   : > { %5140 = vmatpush3.bf16.msra.mxu1 %v5139_v57  ;;  %5117 = vmatprep.subr.bf16.mxu0 %v5324_v50 }
 0x703   : > { %5141 = vmatprep.subr.bf16.mxu1 %v5324_v50 }
 0x705   : > { %5119 = vmatpush3.bf16.msra.mxu0 %v5118_v63 }
 0x706   : > { %5143 = vmatpush3.bf16.msra.mxu1 %v5142_v0  ;;  %5120 = vmatprep.subr.bf16.mxu0 %v5324_v50 }
 0x707   : > { %5144 = vmatprep.subr.bf16.mxu1 %v5324_v50 }
 0x709   : > { %5122 = vmatpush3.bf16.msra.mxu0 %v5121_v8 }
 0x70a   : > { %5146 = vmatpush3.bf16.msra.mxu1 %v5145_v24  ;;  %5123 = vmatprep.subr.bf16.mxu0 %v5324_v50  ;;  %v3149_v24 = vld [vmem:[%s7285_s12] sm:$0x1] }
 0x70b   : > { %5147 = vmatprep.subr.bf16.mxu1 %v5324_v50 }
 0x70d   : > { %5125 = vmatpush3.bf16.msra.mxu0 %v5124_v9 }
 0x70e   : > { %5149 = vmatpush3.bf16.msra.mxu1 %v5148_v10  ;;  %5126 = vmatprep.subr.bf16.mxu0 %v5324_v50 }
 0x70f   : > { %5150 = vmatprep.subr.bf16.mxu1 %v5324_v50 }
 0x711   : > { %5128 = vmatpush3.bf16.msra.mxu0 %v5127_v15 }
 0x712   : > { %5152 = vmatpush3.bf16.msra.mxu1 %v5151_v16  ;;  %5153 = vmatprep.subr.bf16.mxu0 %v5324_v50 }
 0x714   : > { %4401 = vmatmul.mubr.f32.vlgmr.msra.gmra.mrb[34].mxu0 %v2878_v28 }
 0x715   : > { %4436 = vmatmul.mubr.f32.vlgmr.msra.gmra.mrb[14].mxu1 %v2969_v31  ;;  %5155 = vmatpush3.bf16.msra.mxu0 %v5154_v27 }
 0x716   : > { %5156 = vmatprep.subr.bf16.mxu0 %v5324_v50  ;;  %4470 = vmatprep.mubr.msk.f32.mxu0 %vm5325_vm5, %v5323_v7  ;;  %v3585_v7 = vld [vmem:[%s7284_s11 + $0x340] sm:$0xff] }
 0x717   : > { %v5166_v41 = vpack.c.bf16 %v3586_v40, %v3585_v7 }
 0x719   : > { %5158 = vmatpush3.bf16.msra.mxu0 %v5157_v32 }
 0x71a   : > { %5159 = vmatprep.subr.bf16.mxu0 %v5324_v50 }
 0x71d   : > { %5161 = vmatpush3.bf16.msra.mxu0 %v5160_v35 }
 0x71e   : > { %5162 = vmatprep.subr.bf16.mxu0 %v5324_v50 }
 0x721   : > { %5164 = vmatpush3.bf16.msra.mxu0 %v5163_v39 }
 0x722   : > { %5165 = vmatprep.subr.bf16.mxu0 %v5324_v50 }
 0x725   : > { %5167 = vmatpush3.bf16.msra.mxu0 %v5166_v41 }
 0x726   : > { %5168 = vmatprep.subr.bf16.mxu0 %v5324_v50 }
 0x729   : > { %5170 = vmatpush3.bf16.msra.mxu0 %v5169_v44 }
 0x72a   : > { %5171 = vmatprep.subr.bf16.mxu0 %v5324_v50 }
 0x72d   : > { %5173 = vmatpush3.bf16.msra.mxu0 %v5172_v47 }
 0x72e   : > { %5174 = vmatprep.subr.bf16.mxu0 %v5324_v50 }
 0x731   : > { %5176 = vmatpush3.bf16.msra.mxu0 %v5175_v53 }
 0x734   : > { %4471 = vmatmul.mubr.f32.vlgmr.msra.gmra.mrb[36].mxu0 %v3060_v49 }
 0x7a7   : > { %v2620_v51 = vpop.f32.mrb[30].mxu0 }
 0x7a8   : > { %v2690_v62 = vpop.f32.mrb[10].mxu1  ;;  %v4262_v20 = vpop.f32.mrb[31].mxu0 }
 0x7a9   : > { %v2691_v55 = vadd.f32 %v2690_v62, %v2620_v51  ;;  %v4297_v56 = vpop.f32.mrb[11].mxu1 }
 0x7c7   : > { %v2780_v57 = vpop.f32.mrb[32].mxu0 }
 0x7c8   : > { %v2784_v58 = vadd.f32 %v2780_v57, %v2691_v55  ;;  %v2871_v59 = vpop.f32.mrb[12].mxu1  ;;  %v4332_v60 = vpop.f32.mrb[33].mxu0 }
 0x7c9   : > { %v4367_v61 = vpop.f32.mrb[13].mxu1 }
 0x7ca   : > { %v2875_v63 = vadd.f32 %v2871_v59, %v2784_v58 }
 0x7e7   : > { %v2962_v0 = vpop.f32.mrb[34].mxu0 }
 0x7e8   : > { %v2966_v50 = vadd.f32 %v2962_v0, %v2875_v63  ;;  %v3053_v1 = vpop.f32.mrb[14].mxu1  ;;  %v4402_v3 = vpop.f32.mrb[35].mxu0 }
 0x7e9   : > { %v4437_v5 = vpop.f32.mrb[15].mxu1 }
 0x7ea   : > { %v3057_v6 = vadd.f32 %v3053_v1, %v2966_v50 }
 0x807   : > { %v3144_v8 = vpop.f32.mrb[36].mxu0 }
 0x808   : > { %v3148_v36 = vadd.f32 %v3144_v8, %v3057_v6  ;;  %v4472_v23 = vpop.f32.mrb[37].mxu0 }
 0x80a   : > { %v3150_v26 = vadd.f32 %v3149_v24, %v3148_v36 }
 0x80c   : > { %3152 = vst.msk [vmem:[%s432_s21] sm:$0x1] %vm3151_vm6, %v3150_v26 }
 0x80d   : > { %5272 = shalt.err (!%p5269_p3)
}
 0x80e   : > { %s5273_s23 = scalar_lea.hbm %s7231_s30, 16  ;;  %s5277_s21 = scalar_lea.hbm %s7286_s13, 32 }
 0x80f   : > { %p5274_p4 = scmp.ne.s32.totalorder %s7231_s30, %s5273_s23  ;;  %p5278_p9 = scmp.lt.u32.totalorder %s7231_s30, %s7286_s13 }
 0x810   : > { %p5279_p10 = scmp.lt.u32.totalorder %s5277_s21, %s5273_s23  ;;  %p5281_p12 = scmp.lt.u32.totalorder %s5273_s23, %s7231_s30 }
 0x811   : > { %p5275_p7 = pnand %p5274_p4, %p5435_p5 }
 0x812   : > { %p5280_p11 = por %p5279_p10, %p5278_p9 }
 0x813   : > { %p5276_p8 = pneg %p5275_p7 }
 0x814   : > { %p5282_p13 = por %p5281_p12, %p5280_p11 }
 0x816   : > { %p5283_p0 = pnand %p5282_p13, %p5276_p8 }
 0x818   : > { %5286 = shalt.err (!%p5283_p0)
}
 0x819   : > { %5217 = dma.vmem_to_hbm [thread:$0]  (%p5435_p5), %s7233_s22, 16, %s7231_s30, %s3154_s19  }
 0x81a PF: > { %p5223_p1 = scmp.ge.s32.totalorder %s5321_s28, 2  ;;  %s3178_s29 = sand.u32 1, %s5309_s25  }
 0x81b   : > { %s3179_s16 = scalar_lea.sflag [#allocation8], %s3178_s29 }
 0x81c   : > { %p5220_p2 = pnand %p5223_p1, %p5439_p6 }
 0x81e   : > { %5304 = dma.done.wait (!%p5220_p2), %s3179_s16, 16  }
 0x81f   : > { %5306 = vsyncadd (!%p5220_p2), %s3179_s16, 4294967280  ;;  %s7298_s28 = sld [smem:[#allocation11_spill]]  ;;  %s7299_s20 = sld [smem:[#allocation10_spill]] }
 0x820   : > { %s7300_s27 = sld [smem:[#allocation12_spill]]  ;;  %s7301_s25 = smov %s5313_s26 }
 0x825   : > { %p23_p3 = scmp.ge.s32.totalorder %s7298_s28, 4   ;;  %s7302_s26 = smov %s7299_s20 }
 0x827   :  { %25 = sbr.rel (!%p23_p3) target bundleno = 3 (0x3), region = 124 }
 0x82e   :  { %3183 = vsyncpa [#allocation8], 1 }
 0x82f   :  { %3185 = vsyncpa [#allocation8 + $0x1], 1 }

</bundles_post_ra>
